<compile_context>
chip_gen: v7x
topology: tpu7x:2x2x1
jax: 0.10.0
libtpu: 0.0.40
codegen_flags: <defaults>
</compile_context>

<pallas_src>
import functools

import jax
import jax.numpy as jnp
from jax import lax
from jax.experimental import pallas as pl
from jax.experimental.pallas import tpu as pltpu

LANE = 128
_BN_EPS = 1e-5


# ---------------------------------------------------------------------------
# host-side helpers (static tile-size selection, generation-aware VMEM budget)
# ---------------------------------------------------------------------------
def _round_up(x, m):
    return (x + m - 1) // m * m


def _vmem_budgets():
    """(tile-selection budget, scoped-vmem limit) in bytes, generation-aware."""
    cap = 64 * 1024 * 1024                       # conservative default (v7x per-core)
    try:
        cap = int(pltpu.get_tpu_info().vmem_capacity_bytes)
    except Exception:
        pass
    cap = max(32 * 1024 * 1024, min(cap, 128 * 1024 * 1024))
    return int(cap * 0.40), int(cap * 0.85)


def _pick_pool_row_tile(rows, wh, c, budget):
    best = 1
    for tr in range(1, rows + 1):
        if rows % tr:
            continue
        # double-buffered bf16 in/out tiles + in-kernel temporaries
        need = 2 * (tr * 2 * wh * 2 * c * 2) + 2 * (tr * wh * c * 2) + tr * 2 * wh * 2 * c * 2
        if need <= budget:
            best = tr
    return best


def _pick_conv_row_tile(h, w, cinp, coutp, budget):
    best = None
    for th in range(1, h + 1):
        if h % th:
            continue
        m = th * w
        if m % 8:
            continue
        need = (2 * m * cinp * 2                    # x tile, double-buffered bf16
                + 2 * m * coutp * 2                 # y tile, double-buffered bf16
                + 2 * 9 * cinp * coutp * 2          # resident weights (2 buffers)
                + (th + 2) * (w + 2) * cinp * 2     # window scratch
                + m * 9 * cinp * 2                  # im2col slab (fold path bound)
                + 2 * m * coutp * 4)                # f32 accumulator + headroom
        if need <= budget:
            best = th
    if best is None:
        for th in range(1, h + 1):                  # explicit fallback: smallest legal tile
            if h % th == 0 and (th * w) % 8 == 0:
                return th
        return h
    return best


def _pick_bn_row_tile(m, coutp, budget):
    cands = [d for d in range(8, m + 1, 8) if m % d == 0]
    if not cands:
        return m
    best = cands[0]
    for d in cands:
        need = 2 * d * coutp * 2 + 2 * d * coutp * 4 + d * coutp * 4
        if need <= budget:
            best = d
    return best


# ---------------------------------------------------------------------------
# Kernel 1: 2x2 max-pool (stride 2), gridded over rows, bf16 in / bf16 out.
# Input is a free reshape of NHWC to (N*H/2, 2, W/2, 2, C).
# ---------------------------------------------------------------------------
def _maxpool_kernel(x_ref, o_ref):
    v = x_ref[...]                                        # (TR, 2, Wh, 2, C)
    m = jnp.maximum(v[:, 0], v[:, 1])                     # (TR, Wh, 2, C)
    m = jnp.maximum(m[:, :, 0, :], m[:, :, 1, :])         # (TR, Wh, C)
    o_ref[...] = m.astype(o_ref.dtype)


def maxpool2x2_nhwc(x):
    n, h, w, c = x.shape
    assert h % 2 == 0 and w % 2 == 0
    hh, wh = h // 2, w // 2
    rows = n * hh
    xr = x.reshape(rows, 2, wh, 2, c)                     # contiguous -> free reshape
    budget, vlimit = _vmem_budgets()
    tr = _pick_pool_row_tile(rows, wh, c, budget)
    out = pl.pallas_call(
        _maxpool_kernel,
        out_shape=jax.ShapeDtypeStruct((rows, wh, c), x.dtype),
        grid=(rows // tr,),
        in_specs=[pl.BlockSpec((tr, 2, wh, 2, c), lambda i: (i, 0, 0, 0, 0))],
        out_specs=pl.BlockSpec((tr, wh, c), lambda i: (i, 0, 0)),
        compiler_params=pltpu.CompilerParams(
            dimension_semantics=("parallel",), vmem_limit_bytes=vlimit),
    )(xr)
    return out.reshape(n, hh, wh, c)


# ---------------------------------------------------------------------------
# Kernel 2: Conv3x3 (pad=1, no bias) with
#   * optional fused BN+ReLU of the PREVIOUS block applied to the loaded tile,
#   * zero-padded window assembled in VMEM scratch (no host-side pad/stack),
#   * one fat K = 9*Cin MXU dot when Cin % 128 == 0, else 9 per-tap dots,
#   * per-tile per-channel sum / sum-of-squares partials (exact BN statistics).
# Refs:
#   x_ref   (1, TH, W, CinP) bf16    top/bot_ref (1, 1, W, CinP) bf16
#   w_ref   (9, CinP, CoutP) bf16    [sc/sh_ref (1, CinP) f32 when fused]
#   y_ref   (TH*W, CoutP) bf16       ssum/ssq_ref (1, 8, CoutP) f32
#   win_ref (TH+2, W+2, CinP) bf16 scratch
# ---------------------------------------------------------------------------
def _conv_stats_kernel(x_ref, top_ref, bot_ref, w_ref, *rest,
                       th, w, cinp, coutp, fuse_in, fold):
    if fuse_in:
        sc_ref, sh_ref, y_ref, ssum_ref, ssq_ref, win_ref = rest
    else:
        y_ref, ssum_ref, ssq_ref, win_ref = rest

    x = x_ref[0]                                          # (TH, W, CinP) bf16
    if fuse_in:
        # BN + ReLU of the previous block, fused into this block's tile load.
        sc = sc_ref[...].reshape(1, 1, cinp)
        sh = sh_ref[...].reshape(1, 1, cinp)
        x = jnp.maximum(x.astype(jnp.float32) * sc + sh, 0.0).astype(jnp.bfloat16)

    # Assemble zero-padded (TH+2, W+2, CinP) window in VMEM scratch.
    zcol = jnp.zeros((th + 2, 1, cinp), jnp.bfloat16)
    win_ref[:, 0:1, :] = zcol
    win_ref[:, w + 1:w + 2, :] = zcol
    win_ref[0:1, 1:w + 1, :] = top_ref[0]
    win_ref[th + 1:th + 2, 1:w + 1, :] = bot_ref[0]
    win_ref[1:th + 1, 1:w + 1, :] = x

    if fold:
        # Lane-aligned (CinP % 128 == 0): one MXU dot with K = 9*CinP.
        taps = [win_ref[dh:dh + th, dw:dw + w, :]
                for dh in range(3) for dw in range(3)]
        slab = jnp.concatenate(taps, axis=-1).reshape(th * w, 9 * cinp)
        acc = jnp.dot(slab, w_ref[...].reshape(9 * cinp, coutp),
                      preferred_element_type=jnp.float32)
    else:
        # Small / unaligned Cin (first block): 9 per-tap MXU dots.
        # TODO(synk): fold K for non-128 Cin too once unaligned lane-concat is safe.
        acc = jnp.zeros((th * w, coutp), jnp.float32)
        for t in range(9):
            dh, dw = divmod(t, 3)
            tap = win_ref[dh:dh + th, dw:dw + w, :].reshape(th * w, cinp)
            acc = acc + jnp.dot(tap, w_ref[t],
                                preferred_element_type=jnp.float32)

    y_ref[...] = acc.astype(y_ref.dtype)
    a3 = acc.reshape(th * w // 8, 8, coutp)               # free split of the row dim
    ssum_ref[0] = jnp.sum(a3, axis=0)                      # sublane-partial sums (VPU only)
    ssq_ref[0] = jnp.sum(a3 * a3, axis=0)


def _conv3x3_stats(x_nhwc, w_oihw, coutp, in_scale=None, in_shift=None):
    """Returns (y, ssum, ssq): y (N*H*W, CoutP) bf16, ssum/ssq (CoutP,) f32."""
    x_nhwc = x_nhwc.astype(jnp.bfloat16)
    n, h, w, cinp = x_nhwc.shape
    cout, cin = w_oihw.shape[0], w_oihw.shape[1]
    assert w % 8 == 0, "width after pooling must be a multiple of 8"
    budget, vlimit = _vmem_budgets()
    th = _pick_conv_row_tile(h, w, cinp, coutp, budget)
    assert (th * w) % 8 == 0
    n_t = h // th
    n_tiles = n * n_t
    fuse_in = in_scale is not None
    fold = (cinp % LANE == 0)

    # Weights: (Cout, Cin, 3, 3) -> (3, 3, CinP, CoutP) -> (9, CinP, CoutP) bf16.
    # Zero Cin rows keep padded input channels inert; zero Cout cols keep the
    # padded output channels exactly 0.
    wt = jnp.transpose(w_oihw, (2, 3, 1, 0))
    wt = jnp.pad(wt, ((0, 0), (0, 0), (0, cinp - cin), (0, coutp - cout)))
    w_taps = wt.reshape(9, cinp, coutp).astype(jnp.bfloat16)

    # Row tiles are a FREE reshape; only the 2 halo rows per tile are built
    # host-side (and pre-activated when the previous block's BN is fused).
    xt = x_nhwc.reshape(n_tiles, th, w, cinp)
    x5 = x_nhwc.reshape(n, n_t, th, w, cinp)
    zrow = jnp.zeros((n, 1, 1, w, cinp), jnp.bfloat16)
    top_rows = x5[:, :-1, th - 1:th]                      # (n, n_t-1, 1, w, cinp)
    bot_rows = x5[:, 1:, 0:1]
    if fuse_in:
        sc5 = in_scale.reshape(1, 1, 1, 1, cinp).astype(jnp.float32)
        sh5 = in_shift.reshape(1, 1, 1, 1, cinp).astype(jnp.float32)
        top_rows = jnp.maximum(top_rows.astype(jnp.float32) * sc5 + sh5,
                               0.0).astype(jnp.bfloat16)
        bot_rows = jnp.maximum(bot_rows.astype(jnp.float32) * sc5 + sh5,
                               0.0).astype(jnp.bfloat16)
    top = jnp.concatenate([zrow, top_rows], axis=1).reshape(n_tiles, 1, w, cinp)
    bot = jnp.concatenate([bot_rows, zrow], axis=1).reshape(n_tiles, 1, w, cinp)

    kernel = functools.partial(_conv_stats_kernel, th=th, w=w, cinp=cinp,
                               coutp=coutp, fuse_in=fuse_in, fold=fold)

    in_specs = [
        pl.BlockSpec((1, th, w, cinp), lambda i: (i, 0, 0, 0)),
        pl.BlockSpec((1, 1, w, cinp), lambda i: (i, 0, 0, 0)),
        pl.BlockSpec((1, 1, w, cinp), lambda i: (i, 0, 0, 0)),
        pl.BlockSpec((9, cinp, coutp), lambda i: (0, 0, 0)),      # resident weights
    ]
    operands = [xt, top, bot, w_taps]
    if fuse_in:
        in_specs += [pl.BlockSpec((1, cinp), lambda i: (0, 0)),
                     pl.BlockSpec((1, cinp), lambda i: (0, 0))]
        operands += [in_scale.reshape(1, cinp).astype(jnp.float32),
                     in_shift.reshape(1, cinp).astype(jnp.float32)]

    m_rows = n * h * w
    y, ssum, ssq = pl.pallas_call(
        kernel,
        out_shape=(
            jax.ShapeDtypeStruct((m_rows, coutp), jnp.bfloat16),
            jax.ShapeDtypeStruct((n_tiles, 8, coutp), jnp.float32),
            jax.ShapeDtypeStruct((n_tiles, 8, coutp), jnp.float32),
        ),
        grid=(n_tiles,),
        in_specs=in_specs,
        out_specs=(
            pl.BlockSpec((th * w, coutp), lambda i: (i, 0)),
            pl.BlockSpec((1, 8, coutp), lambda i: (i, 0, 0)),
            pl.BlockSpec((1, 8, coutp), lambda i: (i, 0, 0)),
        ),
        scratch_shapes=[pltpu.VMEM((th + 2, w + 2, cinp), jnp.bfloat16)],
        compiler_params=pltpu.CompilerParams(
            dimension_semantics=("parallel",),   # no resident state -> megacore-friendly
            vmem_limit_bytes=vlimit,
        ),
    )(*operands)
    return y, jnp.sum(ssum, axis=(0, 1)), jnp.sum(ssq, axis=(0, 1))


# ---------------------------------------------------------------------------
# Kernel 3: final BN (precomputed per-channel scale/shift) + ReLU, tiled,
# fully parallel.  Only runs for the LAST block (earlier blocks are fused
# into the following conv's load).
# ---------------------------------------------------------------------------
def _bn_relu_kernel(y_ref, scale_ref, shift_ref, o_ref):
    y = y_ref[...].astype(jnp.float32)
    o_ref[...] = jnp.maximum(y * scale_ref[...] + shift_ref[...],
                             0.0).astype(o_ref.dtype)


def _bn_relu_apply(y, scale, shift, out_dtype=jnp.float32):
    m, coutp = y.shape
    budget, vlimit = _vmem_budgets()
    tb = _pick_bn_row_tile(m, coutp, budget)
    return pl.pallas_call(
        _bn_relu_kernel,
        out_shape=jax.ShapeDtypeStruct((m, coutp), out_dtype),
        grid=(m // tb,),
        in_specs=[
            pl.BlockSpec((tb, coutp), lambda i: (i, 0)),
            pl.BlockSpec((1, coutp), lambda i: (0, 0)),
            pl.BlockSpec((1, coutp), lambda i: (0, 0)),
        ],
        out_specs=pl.BlockSpec((tb, coutp), lambda i: (i, 0)),
        compiler_params=pltpu.CompilerParams(
            dimension_semantics=("parallel",), vmem_limit_bytes=vlimit),
    )(y, scale, shift)


# ---------------------------------------------------------------------------
# Down module: maxpool(2) then `blocks` x (conv3x3 -> BN -> ReLU)
# ---------------------------------------------------------------------------
def init_down_params(key, in_channels, out_channels, blocks):
    params = []
    cin = in_channels
    for _ in range(blocks):
        key, sub = jax.random.split(key)
        w = (jax.random.normal(sub, (out_channels, cin, 3, 3), jnp.float32)
             * (1.0 / jnp.sqrt(9.0 * cin)))
        params.append({"w": w,
                       "gamma": jnp.ones((out_channels,), jnp.float32),
                       "beta": jnp.zeros((out_channels,), jnp.float32)})
        cin = out_channels
    return params


def down_forward(x_nchw, params):
    # x_nchw: (N, C, H, W) f32  ->  (N, Cout, H/2, W/2) f32
    # TODO(synk): keep the whole model NHWC and hoist these boundary transposes
    # out of the per-module hot path.
    x = jnp.transpose(x_nchw.astype(jnp.bfloat16), (0, 2, 3, 1))   # bf16 NHWC
    x = maxpool2x2_nhwc(x)                                         # (N, H/2, W/2, C) bf16
    # TODO(synk): fuse the 2x2 maxpool into the first conv block's tile load to
    # save one pooled-tensor HBM round trip.
    n, h, w, _ = x.shape

    in_scale = in_shift = None            # BN of the previous block, fused into next conv
    y = scale = shift = None
    cout = coutp = None
    for p in params:
        cout = p["w"].shape[0]
        coutp = _round_up(cout, LANE)
        y, ssum, ssq = _conv3x3_stats(x, p["w"], coutp, in_scale, in_shift)

        # Exact BatchNorm2d training-mode batch statistics (biased variance).
        # Tiny O(Cout) per-channel glue between kernels.
        m_rows = jnp.float32(n * h * w)
        mean = ssum / m_rows
        var = jnp.maximum(ssq / m_rows - mean * mean, 0.0)
        g = jnp.pad(p["gamma"].astype(jnp.float32), (0, coutp - cout),
                    constant_values=1.0)
        b = jnp.pad(p["beta"].astype(jnp.float32), (0, coutp - cout))
        scale = g * lax.rsqrt(var + _BN_EPS)
        shift = b - mean * scale

        # BN+ReLU of this block is applied inside the NEXT block's conv kernel;
        # only the raw bf16 conv output travels through HBM.
        x = y.reshape(n, h, w, coutp)
        in_scale, in_shift = scale, shift

    out = _bn_relu_apply(y, scale.reshape(1, coutp), shift.reshape(1, coutp),
                         out_dtype=jnp.float32)                    # (M, CoutP) f32
    out = out.reshape(n, h, w, coutp)[..., :cout]                  # drop channel padding
    return jnp.transpose(out, (0, 3, 1, 2))                        # NHWC -> NCHW


# ---------------------------------------------------------------------------
# Pure-JAX reference (matches the kernel's numerics: bf16 activations/weights
# on the MXU path, f32 conv accumulation and BN statistics, bf16 conv output).
# ---------------------------------------------------------------------------
def down_forward_ref(x_nchw, params):
    x = lax.reduce_window(x_nchw, -jnp.inf, lax.max,
                          (1, 1, 2, 2), (1, 1, 2, 2), "VALID")
    x = x.astype(jnp.bfloat16)
    out = None
    for p in params:
        xin = x.astype(jnp.float32)
        wb = p["w"].astype(jnp.bfloat16).astype(jnp.float32)
        y = lax.conv_general_dilated(
            xin, wb, window_strides=(1, 1), padding=((1, 1), (1, 1)),
            dimension_numbers=("NCHW", "OIHW", "NCHW"),
            precision=lax.Precision.HIGHEST)
        mean = jnp.mean(y, axis=(0, 2, 3), keepdims=True)
        var = jnp.mean(jnp.square(y - mean), axis=(0, 2, 3), keepdims=True)
        yq = y.astype(jnp.bfloat16).astype(jnp.float32)   # kernel stores y in bf16
        out = jnp.maximum(
            (yq - mean) * lax.rsqrt(var + _BN_EPS) * p["gamma"].reshape(1, -1, 1, 1)
            + p["beta"].reshape(1, -1, 1, 1), 0.0)
        x = out.astype(jnp.bfloat16)
    return out


if __name__ == "__main__":
    key = jax.random.PRNGKey(0)
    k_x, k_p = jax.random.split(key)

    N, Cin, H, W = 2, 4, 16, 16
    Cout, blocks = 8, 2

    x = jax.random.normal(k_x, (N, Cin, H, W), jnp.float32)
    params = init_down_params(k_p, Cin, Cout, blocks)

    down_jit = jax.jit(down_forward)
    out = jax.block_until_ready(down_jit(x, params))
    ref = jax.block_until_ready(down_forward_ref(x, params))

    assert out.shape == (N, Cout, H // 2, W // 2), out.shape
    assert out.dtype == jnp.float32, out.dtype
    max_err = float(jnp.max(jnp.abs(out - ref)))
    assert jnp.allclose(out, ref, rtol=1e-2, atol=1e-2), (
        f"mismatch vs reference, max abs err {max_err}")

    print("KERNEL_OK")
</pallas_src>

<mosaic_0001>
module attributes {stable_mosaic.version = 11 : i64} {
  func.func @_maxpool_kernel(%arg0: i32, %arg1: memref<16x2x8x2x4xbf16, #tpu.memory_space<vmem>>, %arg2: memref<16x8x4xbf16, #tpu.memory_space<vmem>>) attributes {dimension_semantics = [#tpu.dimension_semantics<parallel>], iteration_bounds = array<i64: 1>, scalar_prefetch = 0 : i64, scratch_operands = 0 : i64, tpu.core_type = #tpu.core_type<tc>, window_params = [{transform_indices = @transform_0, window_bounds = array<i64: 16, 2, 8, 2, 4>}, {transform_indices = @transform_1, window_bounds = array<i64: 16, 8, 4>}]} {
    %c0 = arith.constant 0 : index
    %c0_0 = arith.constant 0 : index
    %c0_1 = arith.constant 0 : index
    %c0_2 = arith.constant 0 : index
    %c0_3 = arith.constant 0 : index
    %0 = vector.load %arg1[%c0, %c0_0, %c0_1, %c0_2, %c0_3] : memref<16x2x8x2x4xbf16, #tpu.memory_space<vmem>>, vector<16x2x8x2x4xbf16>
    %1 = vector.extract_strided_slice %0 {offsets = [0, 0, 0, 0, 0], sizes = [16, 1, 8, 2, 4], strides = [1, 1, 1, 1, 1]} : vector<16x2x8x2x4xbf16> to vector<16x1x8x2x4xbf16>
    %2 = vector.shape_cast %1 : vector<16x1x8x2x4xbf16> to vector<16x8x2x4xbf16>
    %3 = vector.extract_strided_slice %0 {offsets = [0, 1, 0, 0, 0], sizes = [16, 1, 8, 2, 4], strides = [1, 1, 1, 1, 1]} : vector<16x2x8x2x4xbf16> to vector<16x1x8x2x4xbf16>
    %4 = vector.shape_cast %3 : vector<16x1x8x2x4xbf16> to vector<16x8x2x4xbf16>
    %5 = arith.maximumf %2, %4 : vector<16x8x2x4xbf16>
    %6 = vector.extract_strided_slice %5 {offsets = [0, 0, 0, 0], sizes = [16, 8, 1, 4], strides = [1, 1, 1, 1]} : vector<16x8x2x4xbf16> to vector<16x8x1x4xbf16>
    %7 = vector.shape_cast %6 : vector<16x8x1x4xbf16> to vector<16x8x4xbf16>
    %8 = vector.extract_strided_slice %5 {offsets = [0, 0, 1, 0], sizes = [16, 8, 1, 4], strides = [1, 1, 1, 1]} : vector<16x8x2x4xbf16> to vector<16x8x1x4xbf16>
    %9 = vector.shape_cast %8 : vector<16x8x1x4xbf16> to vector<16x8x4xbf16>
    %10 = arith.maximumf %7, %9 : vector<16x8x4xbf16>
    %c0_4 = arith.constant 0 : index
    %c0_5 = arith.constant 0 : index
    %c0_6 = arith.constant 0 : index
    %11 = vector.load %arg2[%c0_4, %c0_5, %c0_6] : memref<16x8x4xbf16, #tpu.memory_space<vmem>>, vector<16x8x4xbf16>
    tpu.vector_store %arg2[%c0_4, %c0_5, %c0_6], %10 {strides = array<i32>} : memref<16x8x4xbf16, #tpu.memory_space<vmem>>, vector<16x8x4xbf16>,
    return
  }
  func.func @transform_0(%arg0: i32) -> (i32, i32, i32, i32, i32) {
    %c0_i32 = arith.constant 0 : i32
    %c0_i32_0 = arith.constant 0 : i32
    %c0_i32_1 = arith.constant 0 : i32
    %c0_i32_2 = arith.constant 0 : i32
    %c0_i32_3 = arith.constant 0 : i32
    return %arg0, %c0_i32, %c0_i32_0, %c0_i32_1, %c0_i32_2 : i32, i32, i32, i32, i32
  }
  func.func @transform_1(%arg0: i32) -> (i32, i32, i32) {
    %c0_i32 = arith.constant 0 : i32
    %c0_i32_0 = arith.constant 0 : i32
    %c0_i32_1 = arith.constant 0 : i32
    return %arg0, %c0_i32, %c0_i32_0 : i32, i32, i32
  }
}

module attributes {stable_mosaic.version = 11 : i64} {
  func.func @_conv_stats_kernel(%arg0: i32, %arg1: memref<1x8x8x4xbf16, #tpu.memory_space<vmem>>, %arg2: memref<1x1x8x4xbf16, #tpu.memory_space<vmem>>, %arg3: memref<1x1x8x4xbf16, #tpu.memory_space<vmem>>, %arg4: memref<9x4x128xbf16, #tpu.memory_space<vmem>>, %arg5: memref<64x128xbf16, #tpu.memory_space<vmem>>, %arg6: memref<1x8x128xf32, #tpu.memory_space<vmem>>, %arg7: memref<1x8x128xf32, #tpu.memory_space<vmem>>, %arg8: memref<10x10x4xbf16, #tpu.memory_space<vmem>>) attributes {dimension_semantics = [#tpu.dimension_semantics<parallel>], iteration_bounds = array<i64: 2>, scalar_prefetch = 0 : i64, scratch_operands = 1 : i64, tpu.core_type = #tpu.core_type<tc>, window_params = [{transform_indices = @transform_0, window_bounds = array<i64: 1, 8, 8, 4>}, {transform_indices = @transform_1, window_bounds = array<i64: 1, 1, 8, 4>}, {transform_indices = @transform_2, window_bounds = array<i64: 1, 1, 8, 4>}, {pipeline_mode = #tpu.pipeline_mode<synchronous>, transform_indices = @transform_3, window_bounds = array<i64: 9, 4, 128>}, {transform_indices = @transform_4, window_bounds = array<i64: 64, 128>}, {transform_indices = @transform_5, window_bounds = array<i64: 1, 8, 128>}, {transform_indices = @transform_6, window_bounds = array<i64: 1, 8, 128>}]} {
    %c0 = arith.constant 0 : index
    %c0_0 = arith.constant 0 : index
    %c0_1 = arith.constant 0 : index
    %c0_2 = arith.constant 0 : index
    %0 = vector.load %arg1[%c0, %c0_0, %c0_1, %c0_2] : memref<1x8x8x4xbf16, #tpu.memory_space<vmem>>, vector<1x8x8x4xbf16>
    %1 = vector.shape_cast %0 : vector<1x8x8x4xbf16> to vector<8x8x4xbf16>
    %cst = arith.constant 0.000000e+00 : bf16
    %2 = vector.broadcast %cst : bf16 to vector<10x1x4xbf16>
    %c0_3 = arith.constant 0 : index
    %c0_4 = arith.constant 0 : index
    %c0_5 = arith.constant 0 : index
    %3 = vector.load %arg8[%c0_3, %c0_4, %c0_5] : memref<10x10x4xbf16, #tpu.memory_space<vmem>>, vector<10x1x4xbf16>
    tpu.vector_store %arg8[%c0_3, %c0_4, %c0_5], %2 {strides = array<i32>} : memref<10x10x4xbf16, #tpu.memory_space<vmem>>, vector<10x1x4xbf16>,
    %c0_6 = arith.constant 0 : index
    %c9 = arith.constant 9 : index
    %c0_7 = arith.constant 0 : index
    %4 = vector.load %arg8[%c0_6, %c9, %c0_7] : memref<10x10x4xbf16, #tpu.memory_space<vmem>>, vector<10x1x4xbf16>
    tpu.vector_store %arg8[%c0_6, %c9, %c0_7], %2 {strides = array<i32>} : memref<10x10x4xbf16, #tpu.memory_space<vmem>>, vector<10x1x4xbf16>,
    %c0_8 = arith.constant 0 : index
    %c0_9 = arith.constant 0 : index
    %c0_10 = arith.constant 0 : index
    %c0_11 = arith.constant 0 : index
    %5 = vector.load %arg2[%c0_8, %c0_9, %c0_10, %c0_11] : memref<1x1x8x4xbf16, #tpu.memory_space<vmem>>, vector<1x1x8x4xbf16>
    %6 = vector.shape_cast %5 : vector<1x1x8x4xbf16> to vector<1x8x4xbf16>
    %c0_12 = arith.constant 0 : index
    %c1 = arith.constant 1 : index
    %c0_13 = arith.constant 0 : index
    %7 = vector.load %arg8[%c0_12, %c1, %c0_13] : memref<10x10x4xbf16, #tpu.memory_space<vmem>>, vector<1x8x4xbf16>
    tpu.vector_store %arg8[%c0_12, %c1, %c0_13], %6 {strides = array<i32>} : memref<10x10x4xbf16, #tpu.memory_space<vmem>>, vector<1x8x4xbf16>,
    %c0_14 = arith.constant 0 : index
    %c0_15 = arith.constant 0 : index
    %c0_16 = arith.constant 0 : index
    %c0_17 = arith.constant 0 : index
    %8 = vector.load %arg3[%c0_14, %c0_15, %c0_16, %c0_17] : memref<1x1x8x4xbf16, #tpu.memory_space<vmem>>, vector<1x1x8x4xbf16>
    %9 = vector.shape_cast %8 : vector<1x1x8x4xbf16> to vector<1x8x4xbf16>
    %c9_18 = arith.constant 9 : index
    %c1_19 = arith.constant 1 : index
    %c0_20 = arith.constant 0 : index
    %10 = vector.load %arg8[%c9_18, %c1_19, %c0_20] : memref<10x10x4xbf16, #tpu.memory_space<vmem>>, vector<1x8x4xbf16>
    tpu.vector_store %arg8[%c9_18, %c1_19, %c0_20], %9 {strides = array<i32>} : memref<10x10x4xbf16, #tpu.memory_space<vmem>>, vector<1x8x4xbf16>,
    %c1_21 = arith.constant 1 : index
    %c1_22 = arith.constant 1 : index
    %c0_23 = arith.constant 0 : index
    %11 = vector.load %arg8[%c1_21, %c1_22, %c0_23] : memref<10x10x4xbf16, #tpu.memory_space<vmem>>, vector<8x8x4xbf16>
    tpu.vector_store %arg8[%c1_21, %c1_22, %c0_23], %1 {strides = array<i32>} : memref<10x10x4xbf16, #tpu.memory_space<vmem>>, vector<8x8x4xbf16>,
    %cst_24 = arith.constant 0.000000e+00 : f32
    %12 = vector.broadcast %cst_24 : f32 to vector<64x128xf32>
    %c0_25 = arith.constant 0 : index
    %c0_26 = arith.constant 0 : index
    %c0_27 = arith.constant 0 : index
    %13 = vector.load %arg8[%c0_25, %c0_26, %c0_27] : memref<10x10x4xbf16, #tpu.memory_space<vmem>>, vector<8x8x4xbf16>
    %14 = vector.shape_cast %13 : vector<8x8x4xbf16> to vector<64x4xbf16>
    %c0_28 = arith.constant 0 : index
    %c0_29 = arith.constant 0 : index
    %c0_30 = arith.constant 0 : index
    %15 = vector.load %arg4[%c0_28, %c0_29, %c0_30] : memref<9x4x128xbf16, #tpu.memory_space<vmem>>, vector<1x4x128xbf16>
    %16 = vector.shape_cast %15 : vector<1x4x128xbf16> to vector<4x128xbf16>
    %cst_31 = arith.constant dense<0.000000e+00> : vector<64x128xf32>
    %17 = tpu.matmul %14, %16, %cst_31 {dimension_numbers = #tpu.dot_dimension_numbers<[1], [0], [0], [1], [0, 0, 1, 1], [], []>} : vector<64x4xbf16>, vector<4x128xbf16>, vector<64x128xf32> -> vector<64x128xf32>
    %18 = arith.addf %12, %17 : vector<64x128xf32>
    %c0_32 = arith.constant 0 : index
    %c1_33 = arith.constant 1 : index
    %c0_34 = arith.constant 0 : index
    %19 = vector.load %arg8[%c0_32, %c1_33, %c0_34] : memref<10x10x4xbf16, #tpu.memory_space<vmem>>, vector<8x8x4xbf16>
    %20 = vector.shape_cast %19 : vector<8x8x4xbf16> to vector<64x4xbf16>
    %c1_35 = arith.constant 1 : index
    %c0_36 = arith.constant 0 : index
    %c0_37 = arith.constant 0 : index
    %21 = vector.load %arg4[%c1_35, %c0_36, %c0_37] : memref<9x4x128xbf16, #tpu.memory_space<vmem>>, vector<1x4x128xbf16>
    %22 = vector.shape_cast %21 : vector<1x4x128xbf16> to vector<4x128xbf16>
    %cst_38 = arith.constant dense<0.000000e+00> : vector<64x128xf32>
    %23 = tpu.matmul %20, %22, %cst_38 {dimension_numbers = #tpu.dot_dimension_numbers<[1], [0], [0], [1], [0, 0, 1, 1], [], []>} : vector<64x4xbf16>, vector<4x128xbf16>, vector<64x128xf32> -> vector<64x128xf32>
    %24 = arith.addf %18, %23 : vector<64x128xf32>
    %c0_39 = arith.constant 0 : index
    %c2 = arith.constant 2 : index
    %c0_40 = arith.constant 0 : index
    %25 = vector.load %arg8[%c0_39, %c2, %c0_40] : memref<10x10x4xbf16, #tpu.memory_space<vmem>>, vector<8x8x4xbf16>
    %26 = vector.shape_cast %25 : vector<8x8x4xbf16> to vector<64x4xbf16>
    %c2_41 = arith.constant 2 : index
    %c0_42 = arith.constant 0 : index
    %c0_43 = arith.constant 0 : index
    %27 = vector.load %arg4[%c2_41, %c0_42, %c0_43] : memref<9x4x128xbf16, #tpu.memory_space<vmem>>, vector<1x4x128xbf16>
    %28 = vector.shape_cast %27 : vector<1x4x128xbf16> to vector<4x128xbf16>
    %cst_44 = arith.constant dense<0.000000e+00> : vector<64x128xf32>
    %29 = tpu.matmul %26, %28, %cst_44 {dimension_numbers = #tpu.dot_dimension_numbers<[1], [0], [0], [1], [0, 0, 1, 1], [], []>} : vector<64x4xbf16>, vector<4x128xbf16>, vector<64x128xf32> -> vector<64x128xf32>
    %30 = arith.addf %24, %29 : vector<64x128xf32>
    %c1_45 = arith.constant 1 : index
    %c0_46 = arith.constant 0 : index
    %c0_47 = arith.constant 0 : index
    %31 = vector.load %arg8[%c1_45, %c0_46, %c0_47] : memref<10x10x4xbf16, #tpu.memory_space<vmem>>, vector<8x8x4xbf16>
    %32 = vector.shape_cast %31 : vector<8x8x4xbf16> to vector<64x4xbf16>
    %c3 = arith.constant 3 : index
    %c0_48 = arith.constant 0 : index
    %c0_49 = arith.constant 0 : index
    %33 = vector.load %arg4[%c3, %c0_48, %c0_49] : memref<9x4x128xbf16, #tpu.memory_space<vmem>>, vector<1x4x128xbf16>
    %34 = vector.shape_cast %33 : vector<1x4x128xbf16> to vector<4x128xbf16>
    %cst_50 = arith.constant dense<0.000000e+00> : vector<64x128xf32>
    %35 = tpu.matmul %32, %34, %cst_50 {dimension_numbers = #tpu.dot_dimension_numbers<[1], [0], [0], [1], [0, 0, 1, 1], [], []>} : vector<64x4xbf16>, vector<4x128xbf16>, vector<64x128xf32> -> vector<64x128xf32>
    %36 = arith.addf %30, %35 : vector<64x128xf32>
    %c1_51 = arith.constant 1 : index
    %c1_52 = arith.constant 1 : index
    %c0_53 = arith.constant 0 : index
    %37 = vector.load %arg8[%c1_51, %c1_52, %c0_53] : memref<10x10x4xbf16, #tpu.memory_space<vmem>>, vector<8x8x4xbf16>
    %38 = vector.shape_cast %37 : vector<8x8x4xbf16> to vector<64x4xbf16>
    %c4 = arith.constant 4 : index
    %c0_54 = arith.constant 0 : index
    %c0_55 = arith.constant 0 : index
    %39 = vector.load %arg4[%c4, %c0_54, %c0_55] : memref<9x4x128xbf16, #tpu.memory_space<vmem>>, vector<1x4x128xbf16>
    %40 = vector.shape_cast %39 : vector<1x4x128xbf16> to vector<4x128xbf16>
    %cst_56 = arith.constant dense<0.000000e+00> : vector<64x128xf32>
    %41 = tpu.matmul %38, %40, %cst_56 {dimension_numbers = #tpu.dot_dimension_numbers<[1], [0], [0], [1], [0, 0, 1, 1], [], []>} : vector<64x4xbf16>, vector<4x128xbf16>, vector<64x128xf32> -> vector<64x128xf32>
    %42 = arith.addf %36, %41 : vector<64x128xf32>
    %c1_57 = arith.constant 1 : index
    %c2_58 = arith.constant 2 : index
    %c0_59 = arith.constant 0 : index
    %43 = vector.load %arg8[%c1_57, %c2_58, %c0_59] : memref<10x10x4xbf16, #tpu.memory_space<vmem>>, vector<8x8x4xbf16>
    %44 = vector.shape_cast %43 : vector<8x8x4xbf16> to vector<64x4xbf16>
    %c5 = arith.constant 5 : index
    %c0_60 = arith.constant 0 : index
    %c0_61 = arith.constant 0 : index
    %45 = vector.load %arg4[%c5, %c0_60, %c0_61] : memref<9x4x128xbf16, #tpu.memory_space<vmem>>, vector<1x4x128xbf16>
    %46 = vector.shape_cast %45 : vector<1x4x128xbf16> to vector<4x128xbf16>
    %cst_62 = arith.constant dense<0.000000e+00> : vector<64x128xf32>
    %47 = tpu.matmul %44, %46, %cst_62 {dimension_numbers = #tpu.dot_dimension_numbers<[1], [0], [0], [1], [0, 0, 1, 1], [], []>} : vector<64x4xbf16>, vector<4x128xbf16>, vector<64x128xf32> -> vector<64x128xf32>
    %48 = arith.addf %42, %47 : vector<64x128xf32>
    %c2_63 = arith.constant 2 : index
    %c0_64 = arith.constant 0 : index
    %c0_65 = arith.constant 0 : index
    %49 = vector.load %arg8[%c2_63, %c0_64, %c0_65] : memref<10x10x4xbf16, #tpu.memory_space<vmem>>, vector<8x8x4xbf16>
    %50 = vector.shape_cast %49 : vector<8x8x4xbf16> to vector<64x4xbf16>
    %c6 = arith.constant 6 : index
    %c0_66 = arith.constant 0 : index
    %c0_67 = arith.constant 0 : index
    %51 = vector.load %arg4[%c6, %c0_66, %c0_67] : memref<9x4x128xbf16, #tpu.memory_space<vmem>>, vector<1x4x128xbf16>
    %52 = vector.shape_cast %51 : vector<1x4x128xbf16> to vector<4x128xbf16>
    %cst_68 = arith.constant dense<0.000000e+00> : vector<64x128xf32>
    %53 = tpu.matmul %50, %52, %cst_68 {dimension_numbers = #tpu.dot_dimension_numbers<[1], [0], [0], [1], [0, 0, 1, 1], [], []>} : vector<64x4xbf16>, vector<4x128xbf16>, vector<64x128xf32> -> vector<64x128xf32>
    %54 = arith.addf %48, %53 : vector<64x128xf32>
    %c2_69 = arith.constant 2 : index
    %c1_70 = arith.constant 1 : index
    %c0_71 = arith.constant 0 : index
    %55 = vector.load %arg8[%c2_69, %c1_70, %c0_71] : memref<10x10x4xbf16, #tpu.memory_space<vmem>>, vector<8x8x4xbf16>
    %56 = vector.shape_cast %55 : vector<8x8x4xbf16> to vector<64x4xbf16>
    %c7 = arith.constant 7 : index
    %c0_72 = arith.constant 0 : index
    %c0_73 = arith.constant 0 : index
    %57 = vector.load %arg4[%c7, %c0_72, %c0_73] : memref<9x4x128xbf16, #tpu.memory_space<vmem>>, vector<1x4x128xbf16>
    %58 = vector.shape_cast %57 : vector<1x4x128xbf16> to vector<4x128xbf16>
    %cst_74 = arith.constant dense<0.000000e+00> : vector<64x128xf32>
    %59 = tpu.matmul %56, %58, %cst_74 {dimension_numbers = #tpu.dot_dimension_numbers<[1], [0], [0], [1], [0, 0, 1, 1], [], []>} : vector<64x4xbf16>, vector<4x128xbf16>, vector<64x128xf32> -> vector<64x128xf32>
    %60 = arith.addf %54, %59 : vector<64x128xf32>
    %c2_75 = arith.constant 2 : index
    %c2_76 = arith.constant 2 : index
    %c0_77 = arith.constant 0 : index
    %61 = vector.load %arg8[%c2_75, %c2_76, %c0_77] : memref<10x10x4xbf16, #tpu.memory_space<vmem>>, vector<8x8x4xbf16>
    %62 = vector.shape_cast %61 : vector<8x8x4xbf16> to vector<64x4xbf16>
    %c8 = arith.constant 8 : index
    %c0_78 = arith.constant 0 : index
    %c0_79 = arith.constant 0 : index
    %63 = vector.load %arg4[%c8, %c0_78, %c0_79] : memref<9x4x128xbf16, #tpu.memory_space<vmem>>, vector<1x4x128xbf16>
    %64 = vector.shape_cast %63 : vector<1x4x128xbf16> to vector<4x128xbf16>
    %cst_80 = arith.constant dense<0.000000e+00> : vector<64x128xf32>
    %65 = tpu.matmul %62, %64, %cst_80 {dimension_numbers = #tpu.dot_dimension_numbers<[1], [0], [0], [1], [0, 0, 1, 1], [], []>} : vector<64x4xbf16>, vector<4x128xbf16>, vector<64x128xf32> -> vector<64x128xf32>
    %66 = arith.addf %60, %65 : vector<64x128xf32>
    %67 = arith.truncf %66 : vector<64x128xf32> to vector<64x128xbf16>
    %c0_81 = arith.constant 0 : index
    %c0_82 = arith.constant 0 : index
    %68 = vector.load %arg5[%c0_81, %c0_82] : memref<64x128xbf16, #tpu.memory_space<vmem>>, vector<64x128xbf16>
    tpu.vector_store %arg5[%c0_81, %c0_82], %67 {strides = array<i32>} : memref<64x128xbf16, #tpu.memory_space<vmem>>, vector<64x128xbf16>,
    %69 = vector.shape_cast %66 : vector<64x128xf32> to vector<8x8x128xf32>
    %cst_83 = arith.constant dense<0.000000e+00> : vector<8x128xf32>
    %70 = vector.multi_reduction <add>, %69, %cst_83 [0] : vector<8x8x128xf32> to vector<8x128xf32>
    %c0_84 = arith.constant 0 : index
    %c0_85 = arith.constant 0 : index
    %c0_86 = arith.constant 0 : index
    %71 = vector.load %arg6[%c0_84, %c0_85, %c0_86] : memref<1x8x128xf32, #tpu.memory_space<vmem>>, vector<1x8x128xf32>
    %72 = vector.shape_cast %71 : vector<1x8x128xf32> to vector<8x128xf32>
    %73 = vector.shape_cast %70 : vector<8x128xf32> to vector<1x8x128xf32>
    tpu.vector_store %arg6[%c0_84, %c0_85, %c0_86], %73 {strides = array<i32>} : memref<1x8x128xf32, #tpu.memory_space<vmem>>, vector<1x8x128xf32>,
    %74 = arith.mulf %69, %69 : vector<8x8x128xf32>
    %cst_87 = arith.constant dense<0.000000e+00> : vector<8x128xf32>
    %75 = vector.multi_reduction <add>, %74, %cst_87 [0] : vector<8x8x128xf32> to vector<8x128xf32>
    %c0_88 = arith.constant 0 : index
    %c0_89 = arith.constant 0 : index
    %c0_90 = arith.constant 0 : index
    %76 = vector.load %arg7[%c0_88, %c0_89, %c0_90] : memref<1x8x128xf32, #tpu.memory_space<vmem>>, vector<1x8x128xf32>
    %77 = vector.shape_cast %76 : vector<1x8x128xf32> to vector<8x128xf32>
    %78 = vector.shape_cast %75 : vector<8x128xf32> to vector<1x8x128xf32>
    tpu.vector_store %arg7[%c0_88, %c0_89, %c0_90], %78 {strides = array<i32>} : memref<1x8x128xf32, #tpu.memory_space<vmem>>, vector<1x8x128xf32>,
    return
  }
  func.func @transform_0(%arg0: i32) -> (i32, i32, i32, i32) {
    %c0_i32 = arith.constant 0 : i32
    %c0_i32_0 = arith.constant 0 : i32
    %c0_i32_1 = arith.constant 0 : i32
    %c0_i32_2 = arith.constant 0 : i32
    return %arg0, %c0_i32, %c0_i32_0, %c0_i32_1 : i32, i32, i32, i32
  }
  func.func @transform_1(%arg0: i32) -> (i32, i32, i32, i32) {
    %c0_i32 = arith.constant 0 : i32
    %c0_i32_0 = arith.constant 0 : i32
    %c0_i32_1 = arith.constant 0 : i32
    %c0_i32_2 = arith.constant 0 : i32
    return %arg0, %c0_i32, %c0_i32_0, %c0_i32_1 : i32, i32, i32, i32
  }
  func.func @transform_2(%arg0: i32) -> (i32, i32, i32, i32) {
    %c0_i32 = arith.constant 0 : i32
    %c0_i32_0 = arith.constant 0 : i32
    %c0_i32_1 = arith.constant 0 : i32
    %c0_i32_2 = arith.constant 0 : i32
    return %arg0, %c0_i32, %c0_i32_0, %c0_i32_1 : i32, i32, i32, i32
  }
  func.func @transform_3(%arg0: i32) -> (i32, i32, i32) {
    %c0_i32 = arith.constant 0 : i32
    %c0_i32_0 = arith.constant 0 : i32
    %c0_i32_1 = arith.constant 0 : i32
    %c0_i32_2 = arith.constant 0 : i32
    return %c0_i32, %c0_i32_0, %c0_i32_1 : i32, i32, i32
  }
  func.func @transform_4(%arg0: i32) -> (i32, i32) {
    %c0_i32 = arith.constant 0 : i32
    %c0_i32_0 = arith.constant 0 : i32
    return %arg0, %c0_i32 : i32, i32
  }
  func.func @transform_5(%arg0: i32) -> (i32, i32, i32) {
    %c0_i32 = arith.constant 0 : i32
    %c0_i32_0 = arith.constant 0 : i32
    %c0_i32_1 = arith.constant 0 : i32
    return %arg0, %c0_i32, %c0_i32_0 : i32, i32, i32
  }
  func.func @transform_6(%arg0: i32) -> (i32, i32, i32) {
    %c0_i32 = arith.constant 0 : i32
    %c0_i32_0 = arith.constant 0 : i32
    %c0_i32_1 = arith.constant 0 : i32
    return %arg0, %c0_i32, %c0_i32_0 : i32, i32, i32
  }
}

module attributes {stable_mosaic.version = 11 : i64} {
  func.func @_bn_relu_kernel(%arg0: i32, %arg1: memref<128x128xbf16, #tpu.memory_space<vmem>>, %arg2: memref<1x128xf32, #tpu.memory_space<vmem>>, %arg3: memref<1x128xf32, #tpu.memory_space<vmem>>, %arg4: memref<128x128xf32, #tpu.memory_space<vmem>>) attributes {dimension_semantics = [#tpu.dimension_semantics<parallel>], iteration_bounds = array<i64: 1>, scalar_prefetch = 0 : i64, scratch_operands = 0 : i64, tpu.core_type = #tpu.core_type<tc>, window_params = [{transform_indices = @transform_0, window_bounds = array<i64: 128, 128>}, {pipeline_mode = #tpu.pipeline_mode<synchronous>, transform_indices = @transform_1, window_bounds = array<i64: 1, 128>}, {pipeline_mode = #tpu.pipeline_mode<synchronous>, transform_indices = @transform_2, window_bounds = array<i64: 1, 128>}, {transform_indices = @transform_3, window_bounds = array<i64: 128, 128>}]} {
    %c0 = arith.constant 0 : index
    %c0_0 = arith.constant 0 : index
    %0 = vector.load %arg1[%c0, %c0_0] : memref<128x128xbf16, #tpu.memory_space<vmem>>, vector<128x128xbf16>
    %1 = arith.extf %0 : vector<128x128xbf16> to vector<128x128xf32>
    %c0_1 = arith.constant 0 : index
    %c0_2 = arith.constant 0 : index
    %2 = vector.load %arg2[%c0_1, %c0_2] : memref<1x128xf32, #tpu.memory_space<vmem>>, vector<1x128xf32>
    %3 = vector.broadcast %2 : vector<1x128xf32> to vector<128x128xf32>
    %4 = arith.mulf %1, %3 : vector<128x128xf32>
    %c0_3 = arith.constant 0 : index
    %c0_4 = arith.constant 0 : index
    %5 = vector.load %arg3[%c0_3, %c0_4] : memref<1x128xf32, #tpu.memory_space<vmem>>, vector<1x128xf32>
    %6 = vector.broadcast %5 : vector<1x128xf32> to vector<128x128xf32>
    %7 = arith.addf %4, %6 : vector<128x128xf32>
    %cst = arith.constant 0.000000e+00 : f32
    %8 = vector.broadcast %cst : f32 to vector<128x128xf32>
    %9 = arith.maximumf %7, %8 : vector<128x128xf32>
    %c0_5 = arith.constant 0 : index
    %c0_6 = arith.constant 0 : index
    %10 = vector.load %arg4[%c0_5, %c0_6] : memref<128x128xf32, #tpu.memory_space<vmem>>, vector<128x128xf32>
    tpu.vector_store %arg4[%c0_5, %c0_6], %9 {strides = array<i32>} : memref<128x128xf32, #tpu.memory_space<vmem>>, vector<128x128xf32>,
    return
  }
  func.func @transform_0(%arg0: i32) -> (i32, i32) {
    %c0_i32 = arith.constant 0 : i32
    %c0_i32_0 = arith.constant 0 : i32
    return %arg0, %c0_i32 : i32, i32
  }
  func.func @transform_1(%arg0: i32) -> (i32, i32) {
    %c0_i32 = arith.constant 0 : i32
    %c0_i32_0 = arith.constant 0 : i32
    %c0_i32_1 = arith.constant 0 : i32
    return %c0_i32, %c0_i32_0 : i32, i32
  }
  func.func @transform_2(%arg0: i32) -> (i32, i32) {
    %c0_i32 = arith.constant 0 : i32
    %c0_i32_0 = arith.constant 0 : i32
    %c0_i32_1 = arith.constant 0 : i32
    return %c0_i32, %c0_i32_0 : i32, i32
  }
  func.func @transform_3(%arg0: i32) -> (i32, i32) {
    %c0_i32 = arith.constant 0 : i32
    %c0_i32_0 = arith.constant 0 : i32
    return %arg0, %c0_i32 : i32, i32
  }
}

module attributes {stable_mosaic.version = 11 : i64} {
  func.func @_conv_stats_kernel(%arg0: i32, %arg1: memref<1x8x8x128xbf16, #tpu.memory_space<vmem>>, %arg2: memref<1x1x8x128xbf16, #tpu.memory_space<vmem>>, %arg3: memref<1x1x8x128xbf16, #tpu.memory_space<vmem>>, %arg4: memref<9x128x128xbf16, #tpu.memory_space<vmem>>, %arg5: memref<1x128xf32, #tpu.memory_space<vmem>>, %arg6: memref<1x128xf32, #tpu.memory_space<vmem>>, %arg7: memref<64x128xbf16, #tpu.memory_space<vmem>>, %arg8: memref<1x8x128xf32, #tpu.memory_space<vmem>>, %arg9: memref<1x8x128xf32, #tpu.memory_space<vmem>>, %arg10: memref<10x10x128xbf16, #tpu.memory_space<vmem>>) attributes {dimension_semantics = [#tpu.dimension_semantics<parallel>], iteration_bounds = array<i64: 2>, scalar_prefetch = 0 : i64, scratch_operands = 1 : i64, tpu.core_type = #tpu.core_type<tc>, window_params = [{transform_indices = @transform_0, window_bounds = array<i64: 1, 8, 8, 128>}, {transform_indices = @transform_1, window_bounds = array<i64: 1, 1, 8, 128>}, {transform_indices = @transform_2, window_bounds = array<i64: 1, 1, 8, 128>}, {pipeline_mode = #tpu.pipeline_mode<synchronous>, transform_indices = @transform_3, window_bounds = array<i64: 9, 128, 128>}, {pipeline_mode = #tpu.pipeline_mode<synchronous>, transform_indices = @transform_4, window_bounds = array<i64: 1, 128>}, {pipeline_mode = #tpu.pipeline_mode<synchronous>, transform_indices = @transform_5, window_bounds = array<i64: 1, 128>}, {transform_indices = @transform_6, window_bounds = array<i64: 64, 128>}, {transform_indices = @transform_7, window_bounds = array<i64: 1, 8, 128>}, {transform_indices = @transform_8, window_bounds = array<i64: 1, 8, 128>}]} {
    %c0 = arith.constant 0 : index
    %c0_0 = arith.constant 0 : index
    %c0_1 = arith.constant 0 : index
    %c0_2 = arith.constant 0 : index
    %0 = vector.load %arg1[%c0, %c0_0, %c0_1, %c0_2] : memref<1x8x8x128xbf16, #tpu.memory_space<vmem>>, vector<1x8x8x128xbf16>
    %1 = vector.shape_cast %0 : vector<1x8x8x128xbf16> to vector<8x8x128xbf16>
    %c0_3 = arith.constant 0 : index
    %c0_4 = arith.constant 0 : index
    %2 = vector.load %arg5[%c0_3, %c0_4] : memref<1x128xf32, #tpu.memory_space<vmem>>, vector<1x128xf32>
    %3 = vector.shape_cast %2 : vector<1x128xf32> to vector<1x1x128xf32>
    %c0_5 = arith.constant 0 : index
    %c0_6 = arith.constant 0 : index
    %4 = vector.load %arg6[%c0_5, %c0_6] : memref<1x128xf32, #tpu.memory_space<vmem>>, vector<1x128xf32>
    %5 = vector.shape_cast %4 : vector<1x128xf32> to vector<1x1x128xf32>
    %6 = arith.extf %1 : vector<8x8x128xbf16> to vector<8x8x128xf32>
    %7 = vector.broadcast %3 : vector<1x1x128xf32> to vector<8x8x128xf32>
    %8 = arith.mulf %6, %7 : vector<8x8x128xf32>
    %9 = vector.broadcast %5 : vector<1x1x128xf32> to vector<8x8x128xf32>
    %10 = arith.addf %8, %9 : vector<8x8x128xf32>
    %cst = arith.constant 0.000000e+00 : f32
    %11 = vector.broadcast %cst : f32 to vector<8x8x128xf32>
    %12 = arith.maximumf %10, %11 : vector<8x8x128xf32>
    %13 = arith.truncf %12 : vector<8x8x128xf32> to vector<8x8x128xbf16>
    %cst_7 = arith.constant 0.000000e+00 : bf16
    %14 = vector.broadcast %cst_7 : bf16 to vector<10x1x128xbf16>
    %c0_8 = arith.constant 0 : index
    %c0_9 = arith.constant 0 : index
    %c0_10 = arith.constant 0 : index
    %15 = vector.load %arg10[%c0_8, %c0_9, %c0_10] : memref<10x10x128xbf16, #tpu.memory_space<vmem>>, vector<10x1x128xbf16>
    tpu.vector_store %arg10[%c0_8, %c0_9, %c0_10], %14 {strides = array<i32>} : memref<10x10x128xbf16, #tpu.memory_space<vmem>>, vector<10x1x128xbf16>,
    %c0_11 = arith.constant 0 : index
    %c9 = arith.constant 9 : index
    %c0_12 = arith.constant 0 : index
    %16 = vector.load %arg10[%c0_11, %c9, %c0_12] : memref<10x10x128xbf16, #tpu.memory_space<vmem>>, vector<10x1x128xbf16>
    tpu.vector_store %arg10[%c0_11, %c9, %c0_12], %14 {strides = array<i32>} : memref<10x10x128xbf16, #tpu.memory_space<vmem>>, vector<10x1x128xbf16>,
    %c0_13 = arith.constant 0 : index
    %c0_14 = arith.constant 0 : index
    %c0_15 = arith.constant 0 : index
    %c0_16 = arith.constant 0 : index
    %17 = vector.load %arg2[%c0_13, %c0_14, %c0_15, %c0_16] : memref<1x1x8x128xbf16, #tpu.memory_space<vmem>>, vector<1x1x8x128xbf16>
    %18 = vector.shape_cast %17 : vector<1x1x8x128xbf16> to vector<1x8x128xbf16>
    %c0_17 = arith.constant 0 : index
    %c1 = arith.constant 1 : index
    %c0_18 = arith.constant 0 : index
    %19 = vector.load %arg10[%c0_17, %c1, %c0_18] : memref<10x10x128xbf16, #tpu.memory_space<vmem>>, vector<1x8x128xbf16>
    tpu.vector_store %arg10[%c0_17, %c1, %c0_18], %18 {strides = array<i32>} : memref<10x10x128xbf16, #tpu.memory_space<vmem>>, vector<1x8x128xbf16>,
    %c0_19 = arith.constant 0 : index
    %c0_20 = arith.constant 0 : index
    %c0_21 = arith.constant 0 : index
    %c0_22 = arith.constant 0 : index
    %20 = vector.load %arg3[%c0_19, %c0_20, %c0_21, %c0_22] : memref<1x1x8x128xbf16, #tpu.memory_space<vmem>>, vector<1x1x8x128xbf16>
    %21 = vector.shape_cast %20 : vector<1x1x8x128xbf16> to vector<1x8x128xbf16>
    %c9_23 = arith.constant 9 : index
    %c1_24 = arith.constant 1 : index
    %c0_25 = arith.constant 0 : index
    %22 = vector.load %arg10[%c9_23, %c1_24, %c0_25] : memref<10x10x128xbf16, #tpu.memory_space<vmem>>, vector<1x8x128xbf16>
    tpu.vector_store %arg10[%c9_23, %c1_24, %c0_25], %21 {strides = array<i32>} : memref<10x10x128xbf16, #tpu.memory_space<vmem>>, vector<1x8x128xbf16>,
    %c1_26 = arith.constant 1 : index
    %c1_27 = arith.constant 1 : index
    %c0_28 = arith.constant 0 : index
    %23 = vector.load %arg10[%c1_26, %c1_27, %c0_28] : memref<10x10x128xbf16, #tpu.memory_space<vmem>>, vector<8x8x128xbf16>
    tpu.vector_store %arg10[%c1_26, %c1_27, %c0_28], %13 {strides = array<i32>} : memref<10x10x128xbf16, #tpu.memory_space<vmem>>, vector<8x8x128xbf16>,
    %c0_29 = arith.constant 0 : index
    %c0_30 = arith.constant 0 : index
    %c0_31 = arith.constant 0 : index
    %24 = vector.load %arg10[%c0_29, %c0_30, %c0_31] : memref<10x10x128xbf16, #tpu.memory_space<vmem>>, vector<8x8x128xbf16>
    %c0_32 = arith.constant 0 : index
    %c1_33 = arith.constant 1 : index
    %c0_34 = arith.constant 0 : index
    %25 = vector.load %arg10[%c0_32, %c1_33, %c0_34] : memref<10x10x128xbf16, #tpu.memory_space<vmem>>, vector<8x8x128xbf16>
    %c0_35 = arith.constant 0 : index
    %c2 = arith.constant 2 : index
    %c0_36 = arith.constant 0 : index
    %26 = vector.load %arg10[%c0_35, %c2, %c0_36] : memref<10x10x128xbf16, #tpu.memory_space<vmem>>, vector<8x8x128xbf16>
    %c1_37 = arith.constant 1 : index
    %c0_38 = arith.constant 0 : index
    %c0_39 = arith.constant 0 : index
    %27 = vector.load %arg10[%c1_37, %c0_38, %c0_39] : memref<10x10x128xbf16, #tpu.memory_space<vmem>>, vector<8x8x128xbf16>
    %c1_40 = arith.constant 1 : index
    %c1_41 = arith.constant 1 : index
    %c0_42 = arith.constant 0 : index
    %28 = vector.load %arg10[%c1_40, %c1_41, %c0_42] : memref<10x10x128xbf16, #tpu.memory_space<vmem>>, vector<8x8x128xbf16>
    %c1_43 = arith.constant 1 : index
    %c2_44 = arith.constant 2 : index
    %c0_45 = arith.constant 0 : index
    %29 = vector.load %arg10[%c1_43, %c2_44, %c0_45] : memref<10x10x128xbf16, #tpu.memory_space<vmem>>, vector<8x8x128xbf16>
    %c2_46 = arith.constant 2 : index
    %c0_47 = arith.constant 0 : index
    %c0_48 = arith.constant 0 : index
    %30 = vector.load %arg10[%c2_46, %c0_47, %c0_48] : memref<10x10x128xbf16, #tpu.memory_space<vmem>>, vector<8x8x128xbf16>
    %c2_49 = arith.constant 2 : index
    %c1_50 = arith.constant 1 : index
    %c0_51 = arith.constant 0 : index
    %31 = vector.load %arg10[%c2_49, %c1_50, %c0_51] : memref<10x10x128xbf16, #tpu.memory_space<vmem>>, vector<8x8x128xbf16>
    %c2_52 = arith.constant 2 : index
    %c2_53 = arith.constant 2 : index
    %c0_54 = arith.constant 0 : index
    %32 = vector.load %arg10[%c2_52, %c2_53, %c0_54] : memref<10x10x128xbf16, #tpu.memory_space<vmem>>, vector<8x8x128xbf16>
    %33 = tpu.concatenate %24, %25, %26, %27, %28, %29, %30, %31, %32 in 2 : vector<8x8x128xbf16>, vector<8x8x128xbf16>, vector<8x8x128xbf16>, vector<8x8x128xbf16>, vector<8x8x128xbf16>, vector<8x8x128xbf16>, vector<8x8x128xbf16>, vector<8x8x128xbf16>, vector<8x8x128xbf16> -> vector<8x8x1152xbf16>
    %34 = vector.shape_cast %33 : vector<8x8x1152xbf16> to vector<64x1152xbf16>
    %c0_55 = arith.constant 0 : index
    %c0_56 = arith.constant 0 : index
    %c0_57 = arith.constant 0 : index
    %35 = vector.load %arg4[%c0_55, %c0_56, %c0_57] : memref<9x128x128xbf16, #tpu.memory_space<vmem>>, vector<9x128x128xbf16>
    %36 = vector.shape_cast %35 : vector<9x128x128xbf16> to vector<1152x128xbf16>
    %cst_58 = arith.constant dense<0.000000e+00> : vector<64x128xf32>
    %37 = tpu.matmul %34, %36, %cst_58 {dimension_numbers = #tpu.dot_dimension_numbers<[1], [0], [0], [1], [0, 0, 1, 1], [], []>} : vector<64x1152xbf16>, vector<1152x128xbf16>, vector<64x128xf32> -> vector<64x128xf32>
    %38 = arith.truncf %37 : vector<64x128xf32> to vector<64x128xbf16>
    %c0_59 = arith.constant 0 : index
    %c0_60 = arith.constant 0 : index
    %39 = vector.load %arg7[%c0_59, %c0_60] : memref<64x128xbf16, #tpu.memory_space<vmem>>, vector<64x128xbf16>
    tpu.vector_store %arg7[%c0_59, %c0_60], %38 {strides = array<i32>} : memref<64x128xbf16, #tpu.memory_space<vmem>>, vector<64x128xbf16>,
    %40 = vector.shape_cast %37 : vector<64x128xf32> to vector<8x8x128xf32>
    %cst_61 = arith.constant dense<0.000000e+00> : vector<8x128xf32>
    %41 = vector.multi_reduction <add>, %40, %cst_61 [0] : vector<8x8x128xf32> to vector<8x128xf32>
    %c0_62 = arith.constant 0 : index
    %c0_63 = arith.constant 0 : index
    %c0_64 = arith.constant 0 : index
    %42 = vector.load %arg8[%c0_62, %c0_63, %c0_64] : memref<1x8x128xf32, #tpu.memory_space<vmem>>, vector<1x8x128xf32>
    %43 = vector.shape_cast %42 : vector<1x8x128xf32> to vector<8x128xf32>
    %44 = vector.shape_cast %41 : vector<8x128xf32> to vector<1x8x128xf32>
    tpu.vector_store %arg8[%c0_62, %c0_63, %c0_64], %44 {strides = array<i32>} : memref<1x8x128xf32, #tpu.memory_space<vmem>>, vector<1x8x128xf32>,
    %45 = arith.mulf %40, %40 : vector<8x8x128xf32>
    %cst_65 = arith.constant dense<0.000000e+00> : vector<8x128xf32>
    %46 = vector.multi_reduction <add>, %45, %cst_65 [0] : vector<8x8x128xf32> to vector<8x128xf32>
    %c0_66 = arith.constant 0 : index
    %c0_67 = arith.constant 0 : index
    %c0_68 = arith.constant 0 : index
    %47 = vector.load %arg9[%c0_66, %c0_67, %c0_68] : memref<1x8x128xf32, #tpu.memory_space<vmem>>, vector<1x8x128xf32>
    %48 = vector.shape_cast %47 : vector<1x8x128xf32> to vector<8x128xf32>
    %49 = vector.shape_cast %46 : vector<8x128xf32> to vector<1x8x128xf32>
    tpu.vector_store %arg9[%c0_66, %c0_67, %c0_68], %49 {strides = array<i32>} : memref<1x8x128xf32, #tpu.memory_space<vmem>>, vector<1x8x128xf32>,
    return
  }
  func.func @transform_0(%arg0: i32) -> (i32, i32, i32, i32) {
    %c0_i32 = arith.constant 0 : i32
    %c0_i32_0 = arith.constant 0 : i32
    %c0_i32_1 = arith.constant 0 : i32
    %c0_i32_2 = arith.constant 0 : i32
    return %arg0, %c0_i32, %c0_i32_0, %c0_i32_1 : i32, i32, i32, i32
  }
  func.func @transform_1(%arg0: i32) -> (i32, i32, i32, i32) {
    %c0_i32 = arith.constant 0 : i32
    %c0_i32_0 = arith.constant 0 : i32
    %c0_i32_1 = arith.constant 0 : i32
    %c0_i32_2 = arith.constant 0 : i32
    return %arg0, %c0_i32, %c0_i32_0, %c0_i32_1 : i32, i32, i32, i32
  }
  func.func @transform_2(%arg0: i32) -> (i32, i32, i32, i32) {
    %c0_i32 = arith.constant 0 : i32
    %c0_i32_0 = arith.constant 0 : i32
    %c0_i32_1 = arith.constant 0 : i32
    %c0_i32_2 = arith.constant 0 : i32
    return %arg0, %c0_i32, %c0_i32_0, %c0_i32_1 : i32, i32, i32, i32
  }
  func.func @transform_3(%arg0: i32) -> (i32, i32, i32) {
    %c0_i32 = arith.constant 0 : i32
    %c0_i32_0 = arith.constant 0 : i32
    %c0_i32_1 = arith.constant 0 : i32
    %c0_i32_2 = arith.constant 0 : i32
    return %c0_i32, %c0_i32_0, %c0_i32_1 : i32, i32, i32
  }
  func.func @transform_4(%arg0: i32) -> (i32, i32) {
    %c0_i32 = arith.constant 0 : i32
    %c0_i32_0 = arith.constant 0 : i32
    %c0_i32_1 = arith.constant 0 : i32
    return %c0_i32, %c0_i32_0 : i32, i32
  }
  func.func @transform_5(%arg0: i32) -> (i32, i32) {
    %c0_i32 = arith.constant 0 : i32
    %c0_i32_0 = arith.constant 0 : i32
    %c0_i32_1 = arith.constant 0 : i32
    return %c0_i32, %c0_i32_0 : i32, i32
  }
  func.func @transform_6(%arg0: i32) -> (i32, i32) {
    %c0_i32 = arith.constant 0 : i32
    %c0_i32_0 = arith.constant 0 : i32
    return %arg0, %c0_i32 : i32, i32
  }
  func.func @transform_7(%arg0: i32) -> (i32, i32, i32) {
    %c0_i32 = arith.constant 0 : i32
    %c0_i32_0 = arith.constant 0 : i32
    %c0_i32_1 = arith.constant 0 : i32
    return %arg0, %c0_i32, %c0_i32_0 : i32, i32, i32
  }
  func.func @transform_8(%arg0: i32) -> (i32, i32, i32) {
    %c0_i32 = arith.constant 0 : i32
    %c0_i32_0 = arith.constant 0 : i32
    %c0_i32_1 = arith.constant 0 : i32
    return %arg0, %c0_i32, %c0_i32_0 : i32, i32, i32
  }
}

</mosaic_0001>

<bundles_post_ra>
// kernel: down_forward.7
= control target key start
LH: loop header
LB: loop body
LE: loop exit
PB: predicated region body
PF: predicated region fallthrough
CT: control target
= control target key end

     0   :  { %s303_s0 = inlined_call_operand.vmem [shape: bf16[128,128], index: 0, kind: input, shape index: {}]   ;;  %s304_s1 = inlined_call_operand.vmem [shape: f32[1,128], index: 1, kind: input, shape index: {}]   ;;  %s305_s2 = inlined_call_operand.vmem [shape: f32[1,128], index: 2, kind: input, shape index: {}]   ;;  %s306_s3 = inlined_call_operand.vmem [shape: f32[128,128], index: 3, kind: output, shape index: {}]  }
   0x1   :  { %v131_v0 = vld [vmem:[%s303_s0] sm:$0xff]   ;;  %v162_v4 = vld [vmem:[%s303_s0 + $0x8] sm:$0xff]   ;;  %v163_v5 = vld [vmem:[%s303_s0 + $0x10] sm:$0xff]  }
   0x2   :  { %v195_v1 = vld [vmem:[%s304_s1] ss:$0 sm:$0xff]  ;;  %v132_v2 = vunpack.c.l.bf16 %v131_v0  ;;  %v133_v3 = vunpack.c.h.bf16 %v131_v0  ;;  %v164_v6 = vld [vmem:[%s303_s0 + $0x18] sm:$0xff]   ;;  %v136_v8 = vunpack.c.l.bf16 %v162_v4  ;;  %v137_v9 = vunpack.c.h.bf16 %v162_v4  ;;  %v166_v33 = vld [vmem:[%s303_s0 + $0x28] sm:$0xff]  }
   0x3   :  { %v209_v7 = vld [vmem:[%s305_s2] ss:$0 sm:$0xff]  ;;  %v140_v10 = vunpack.c.l.bf16 %v163_v5  ;;  %v141_v11 = vunpack.c.h.bf16 %v163_v5  ;;  %v144_v14 = vunpack.c.l.bf16 %v164_v6  ;;  %v145_v15 = vunpack.c.h.bf16 %v164_v6  ;;  %v167_v34 = vld [vmem:[%s303_s0 + $0x30] sm:$0xff]   ;;  %v168_v39 = vld [vmem:[%s303_s0 + $0x38] sm:$0xff]  }
   0x4   :  { %v53_v12 = vmul.f32 %v132_v2, %v195_v1  ;;  %v54_v13 = vmul.f32 %v133_v3, %v195_v1  ;;  %v55_v16 = vmul.f32 %v136_v8, %v195_v1  ;;  %v56_v17 = vmul.f32 %v137_v9, %v195_v1  ;;  %v165_v28 = vld [vmem:[%s303_s0 + $0x20] sm:$0xff]  }
   0x5   :  { %v57_v18 = vmul.f32 %v140_v10, %v195_v1  ;;  %v58_v19 = vmul.f32 %v141_v11, %v195_v1  ;;  %v59_v22 = vmul.f32 %v144_v14, %v195_v1  ;;  %v60_v23 = vmul.f32 %v145_v15, %v195_v1 }
   0x6   :  { %v76_v20 = vadd.f32 %v209_v7, %v53_v12  ;;  %v77_v21 = vadd.f32 %v209_v7, %v54_v13  ;;  %v78_v24 = vadd.f32 %v209_v7, %v55_v16  ;;  %v79_v25 = vadd.f32 %v209_v7, %v56_v17 }
   0x7   :  { %v80_v26 = vadd.f32 %v209_v7, %v57_v18  ;;  %v81_v27 = vadd.f32 %v209_v7, %v58_v19  ;;  %v82_v31 = vadd.f32 %v209_v7, %v59_v22  ;;  %v83_v32 = vadd.f32 %v209_v7, %v60_v23 }
   0x8   :  { %v92_v29 = vmax.f32 %v76_v20, 0.0  ;;  %v93_v30 = vmax.f32 %v77_v21, 0.0  ;;  %v94_v35 = vmax.f32 %v78_v24, 0.0  ;;  %v95_v36 = vmax.f32 %v79_v25, 0.0 }
   0x9   :  { %v96_v37 = vmax.f32 %v80_v26, 0.0  ;;  %v97_v38 = vmax.f32 %v81_v27, 0.0  ;;  %v98_v40 = vmax.f32 %v82_v31, 0.0  ;;  %v99_v41 = vmax.f32 %v83_v32, 0.0 }
   0xa   :  { %108 = vst [vmem:[%s306_s3] sm:$0xff] %v92_v29  ;;  %109 = vst [vmem:[%s306_s3 + $0x8] sm:$0xff] %v93_v30  ;;  %v148_v42 = vunpack.c.l.bf16 %v165_v28  ;;  %v149_v43 = vunpack.c.h.bf16 %v165_v28  ;;  %v152_v44 = vunpack.c.l.bf16 %v166_v33  ;;  %v153_v45 = vunpack.c.h.bf16 %v166_v33 }
   0xb   :  { %110 = vst [vmem:[%s306_s3 + $0x10] sm:$0xff] %v94_v35  ;;  %111 = vst [vmem:[%s306_s3 + $0x18] sm:$0xff] %v95_v36  ;;  %v156_v46 = vunpack.c.l.bf16 %v167_v34  ;;  %v157_v47 = vunpack.c.h.bf16 %v167_v34  ;;  %v160_v50 = vunpack.c.l.bf16 %v168_v39  ;;  %v161_v51 = vunpack.c.h.bf16 %v168_v39 }
   0xc   :  { %112 = vst [vmem:[%s306_s3 + $0x20] sm:$0xff] %v96_v37  ;;  %113 = vst [vmem:[%s306_s3 + $0x28] sm:$0xff] %v97_v38  ;;  %v61_v48 = vmul.f32 %v148_v42, %v195_v1  ;;  %v62_v49 = vmul.f32 %v149_v43, %v195_v1  ;;  %v63_v52 = vmul.f32 %v152_v44, %v195_v1 }
   0xd   :  { %114 = vst [vmem:[%s306_s3 + $0x30] sm:$0xff] %v98_v40  ;;  %115 = vst [vmem:[%s306_s3 + $0x38] sm:$0xff] %v99_v41  ;;  %v64_v53 = vmul.f32 %v153_v45, %v195_v1  ;;  %v65_v54 = vmul.f32 %v156_v46, %v195_v1  ;;  %v66_v55 = vmul.f32 %v157_v47, %v195_v1 }
   0xe   :  { %v84_v56 = vadd.f32 %v209_v7, %v61_v48  ;;  %v85_v57 = vadd.f32 %v209_v7, %v62_v49  ;;  %v67_v58 = vmul.f32 %v160_v50, %v195_v1  ;;  %v68_v59 = vmul.f32 %v161_v51, %v195_v1 }
   0xf   :  { %v86_v60 = vadd.f32 %v209_v7, %v63_v52  ;;  %v87_v61 = vadd.f32 %v209_v7, %v64_v53  ;;  %v88_v62 = vadd.f32 %v209_v7, %v65_v54  ;;  %v89_v63 = vadd.f32 %v209_v7, %v66_v55 }
  0x10   :  { %v100_v0 = vmax.f32 %v84_v56, 0.0  ;;  %v101_v2 = vmax.f32 %v85_v57, 0.0  ;;  %v90_v3 = vadd.f32 %v209_v7, %v67_v58  ;;  %v91_v4 = vadd.f32 %v209_v7, %v68_v59 }
  0x11   :  { %v102_v5 = vmax.f32 %v86_v60, 0.0  ;;  %v103_v6 = vmax.f32 %v87_v61, 0.0  ;;  %v104_v8 = vmax.f32 %v88_v62, 0.0  ;;  %v105_v9 = vmax.f32 %v89_v63, 0.0 }
  0x12   :  { %116 = vst [vmem:[%s306_s3 + $0x40] sm:$0xff] %v100_v0  ;;  %117 = vst [vmem:[%s306_s3 + $0x48] sm:$0xff] %v101_v2  ;;  %v106_v1 = vmax.f32 %v90_v3, 0.0  ;;  %v107_v10 = vmax.f32 %v91_v4, 0.0 }
  0x13   :  { %118 = vst [vmem:[%s306_s3 + $0x50] sm:$0xff] %v102_v5  ;;  %119 = vst [vmem:[%s306_s3 + $0x58] sm:$0xff] %v103_v6 }
  0x14   :  { %120 = vst [vmem:[%s306_s3 + $0x60] sm:$0xff] %v104_v8  ;;  %121 = vst [vmem:[%s306_s3 + $0x68] sm:$0xff] %v105_v9 }
  0x15   :  { %122 = vst [vmem:[%s306_s3 + $0x70] sm:$0xff] %v106_v1  ;;  %123 = vst [vmem:[%s306_s3 + $0x78] sm:$0xff] %v107_v10 }

// kernel: down_forward.5
= control target key start
LH: loop header
LB: loop body
LE: loop exit
PB: predicated region body
PF: predicated region fallthrough
CT: control target
= control target key end

     0   :  { %s2690_s21 = smov 0   ;;  %s3296_s0 = inlined_call_operand.vmem [shape: bf16[2,8,8,4], index: 0, kind: input, shape index: {}]   ;;  %s3297_s1 = inlined_call_operand.vmem [shape: bf16[2,1,8,4], index: 1, kind: input, shape index: {}, may-alias: {1,2}]   ;;  %s3298_s2 = inlined_call_operand.vmem [shape: bf16[2,1,8,4], index: 2, kind: input, shape index: {}, may-alias: {1,2}]   ;;  %s3299_s3 = inlined_call_operand.vmem [shape: bf16[9,4,128], index: 3, kind: input, shape index: {}]   ;;  %s3300_s4 = inlined_call_operand.vmem [shape: bf16[128,128], index: 4, kind: output, shape index: {0}]   ;;  %s3301_s5 = inlined_call_operand.vmem [shape: f32[2,8,128], index: 5, kind: output, shape index: {1}]   ;;  %s3302_s6 = inlined_call_operand.vmem [shape: f32[2,8,128], index: 6, kind: output, shape index: {2}]  }
   0x1 LB: > { %s2696_s22 = sadd.s32 4294967295, %s2653_s21   ;;  %p2260_p0 = scmp.ge.s32.totalorder %s2653_s21, 1  ;;  %s2653_s21 = sphi %s2690_s21, %s17_s21  }
   0x2   : > { %p235_p1 = scmp.lt.s32.totalorder %s2653_s21, 3 }
   0x4   : > { %p236_p2 = pnand %p2260_p0, %p235_p1 }
   0x5   : > { %v2269_v0 = vld [vmem:[%s3299_s3 + $0x2] sm:$0x3] (!%p236_p2)  ;;  %vm707_vm0 = vcmask (!%p236_p2), 1041408   ;;  %v2312_v1 = vld [vmem:[%s3299_s3 + $0x8] sm:$0x3] (!%p236_p2)  ;;  %p281_p3 = scmp.lt.s32.totalorder (!%p236_p2), %s2696_s22, 1 }
   0x6   : > { %239 = sbr.rel (%p236_p2) target bundleno = 370 (0x172), region = 36  ;;  %2616 = vmatprep.subr.msk.bf16.mxu1 (!%p236_p2), %vm707_vm0, %v2269_v0  ;;  %2620 = vmatprep.subr.msk.bf16.mxu0 (!%p236_p2), %vm707_vm0, %v2312_v1  ;;  %v709_v2 = vsel (!%p236_p2), %vm707_vm0, %v2269_v0, 0  ;;  %v2711_v3 = vsel (!%p236_p2), %vm707_vm0, %v2312_v1, 0  ;;  %vm317_vm1 = vcmask (!%p236_p2), 24576   ;;  %vm318_vm2 = vsmask.f32 (!%p236_p2), 256 }
   0x7   : > { %2461 = vmatpush3.bf16.msra.mxu1 (!%p236_p2), %v709_v2  ;;  %2501 = vmatpush3.bf16.msra.mxu0 (!%p236_p2), %v2711_v3  ;;  %vm2718_vm3 = vmand (!%p236_p2), %vm317_vm1, %vm318_vm2  ;;  %v320_v5 = vld [vmem:[#allocation2] sm:$0x1] (!%p236_p2)  ;;  %v323_v6 = vld [vmem:[#allocation2 + $0x8] sm:$0x1] (!%p236_p2)  ;;  %vm350_vm4 = vsmask.f32 (!%p236_p2), 7938 }
   0x8   : > { %v321_v7 = vsel (!%p236_p2), %vm2718_vm3, 0, %v320_v5  ;;  %v324_v8 = vsel (!%p236_p2), %vm2718_vm3, 0, %v323_v6  ;;  %v352_v9 = vld [vmem:[#allocation2 + $0x4] sm:$0x1] (!%p236_p2)  ;;  %vm2730_vm5 = vmand (!%p236_p2), %vm317_vm1, %vm350_vm4  ;;  %v355_v11 = vld [vmem:[#allocation2 + $0xc] sm:$0x1] (!%p236_p2) }
   0x9   : > { %322 = vst [vmem:[#allocation2] sm:$0x1] (!%p236_p2), %v321_v7  ;;  %325 = vst [vmem:[#allocation2 + $0x8] sm:$0x1] (!%p236_p2), %v324_v8  ;;  %v353_v12 = vsel (!%p236_p2), %vm2730_vm5, 0, %v352_v9  ;;  %v356_v13 = vsel (!%p236_p2), %vm2730_vm5, 0, %v355_v11 }
   0xa   : > { %354 = vst [vmem:[#allocation2 + $0x4] sm:$0x1] (!%p236_p2), %v353_v12  ;;  %357 = vst [vmem:[#allocation2 + $0xc] sm:$0x1] (!%p236_p2), %v356_v13  ;;  %vm393_vm6 = vcmask (!%p236_p2), 27648   ;;  %vm694_vm10 = vcmask (!%p236_p2), 31744  }
   0xb   : > { %v2752_v20 = vld [vmem:[%s3299_s3] sm:$0x3] (!%p236_p2)  ;;  %v326_v22 = vld [vmem:[#allocation2 + $0x10] sm:$0x1] (!%p236_p2)  ;;  %v358_v23 = vld [vmem:[#allocation2 + $0x14] sm:$0x1] (!%p236_p2) }
   0xc   : > { %2617 = vmatprep.subr.msk.bf16.mxu1 (!%p236_p2), %vm707_vm0, %v2752_v20  ;;  %v327_v26 = vsel (!%p236_p2), %vm2718_vm3, 0, %v326_v22  ;;  %v359_v27 = vsel (!%p236_p2), %vm2730_vm5, 0, %v358_v23  ;;  %v2764_v28 = vld [vmem:[%s3299_s3 + $0xa] sm:$0x3] (!%p236_p2)  ;;  %vm2768_vm7 = vmand (!%p236_p2), %vm393_vm6, %vm350_vm4  ;;  %v329_v33 = vld [vmem:[#allocation2 + $0x18] sm:$0x1] (!%p236_p2) }
   0xd   : > { %s2715_s27 = scalar_select %p281_p3, %s2696_s22, 1  ;;  %328 = vst [vmem:[#allocation2 + $0x10] sm:$0x1] %v327_v26  ;;  %360 = vst [vmem:[#allocation2 + $0x14] sm:$0x1] %v359_v27  ;;  %2622 = vmatprep.subr.msk.bf16.mxu0 %vm707_vm0, %v2764_v28  ;;  %v330_v41 = vsel %vm2718_vm3, 0, %v329_v33 }
   0xe   : > { %v361_v42 = vld [vmem:[#allocation2 + $0x1c] sm:$0x1]  ;;  %331 = vst [vmem:[#allocation2 + $0x18] sm:$0x1] %v330_v41  ;;  %v332_v55 = vld [vmem:[#allocation2 + $0x20] sm:$0x1] }
   0xf   : > { %s2383_s28 = sshll.u32 %s2715_s27, 5  ;;  %s2263_s29 = sshll.u32 %s2715_s27, 2  ;;  %v362_v48 = vsel %vm2730_vm5, 0, %v361_v42  ;;  %v333_v57 = vsel %vm2718_vm3, 0, %v332_v55  ;;  %v364_v58 = vld [vmem:[#allocation2 + $0x24] sm:$0x1] }
  0x10   : > { %s2737_s8 = scalar_lea.vmem %s3296_s0, %s2383_s28  ;;  %s289_s11 = scalar_lea.vmem %s3297_s1, %s2263_s29  ;;  %v395_v36 = vld [vmem:[#allocation2] sm:$0xf]  ;;  %v500_v39 = vld [vmem:[#allocation2 + $0x8] sm:$0xf]  ;;  %363 = vst [vmem:[#allocation2 + $0x1c] sm:$0x1] %v362_v48 }
  0x11   : > { %v309_v14 = vld [vmem:[%s2737_s8] sm:$0xf]  ;;  %v310_v21 = vld [vmem:[%s2737_s8 + $0x4] sm:$0xf]  ;;  %v311_v32 = vld [vmem:[%s2737_s8 + $0x8] sm:$0xf]  ;;  %s293_s24 = scalar_lea.vmem %s3298_s2, %s2263_s29 }
  0x12   : > { %v382_v15 = vld [vmem:[%s289_s11] sm:$0xf]  ;;  %v420_v18 = vshrl.u32 %v309_v14, 16  ;;  %v423_v19 = vshll.u32 %v309_v14, 16  ;;  %v428_v30 = vshrl.u32 %v310_v21, 16  ;;  %v431_v31 = vshll.u32 %v310_v21, 16 }
  0x13   : > { %v384_v16 = vshrl.u32 %v382_v15, 16  ;;  %v387_v17 = vshll.u32 %v382_v15, 16  ;;  %v436_v43 = vshrl.u32 %v311_v32, 16  ;;  %v398_v45 = vld [vmem:[#allocation2 + $0x4] sm:$0x1]  ;;  %v439_v49 = vshll.u32 %v311_v32, 16 }
  0x14   : > { %v422_v25 = vrot.slane %v420_v18, 7  ;;  %v430_v40 = vrot.slane %v428_v30, 7  ;;  %v503_v47 = vld [vmem:[#allocation2 + $0xc] sm:$0x1]  ;;  %334 = vst [vmem:[#allocation2 + $0x20] sm:$0x1] %v333_v57 }
  0x15   : > { %v386_v24 = vrot.slane %v384_v16, 7  ;;  %v312_v54 = vld [vmem:[%s2737_s8 + $0xc] sm:$0xf]  ;;  %v438_v56 = vrot.slane %v436_v43, 7  ;;  %v365_v60 = vsel %vm2730_vm5, 0, %v364_v58  ;;  %v2807_v13 = vsel %vm707_vm0, %v2752_v20, 0 }
  0x16   : > { %v425_v37 = vor.u32 %v423_v19, %v422_v25  ;;  %v426_v38 = vrot.slane %v422_v25, 4  ;;  %v433_v52 = vor.u32 %v431_v31, %v430_v40  ;;  %v434_v53 = vrot.slane %v430_v40, 4  ;;  %v335_v61 = vld [vmem:[#allocation2 + $0x28] sm:$0x1]  ;;  %v506_v62 = vld [vmem:[#allocation2 + $0x10] sm:$0xf] }
  0x17   : > { %v389_v34 = vor.u32 %v387_v17, %v386_v24  ;;  %v390_v35 = vrot.slane %v386_v24, 4  ;;  %v444_v59 = vshrl.u32 %v312_v54, 16  ;;  %v509_v63 = vld [vmem:[#allocation2 + $0x14] sm:$0x1]  ;;  %v441_v0 = vor.u32 %v439_v49, %v438_v56  ;;  %366 = vst [vmem:[#allocation2 + $0x24] sm:$0x1] %v365_v60 }
  0x18   : > { %v501_v46 = vsel %vm2768_vm7, %v425_v37, %v500_v39  ;;  %v504_v51 = vsel %vm2718_vm3, %v426_v38, %v503_v47  ;;  %v2793_v1 = vld [vmem:[%s2737_s8 + $0x10] sm:$0xf]  ;;  %v507_v2 = vsel %vm2768_vm7, %v433_v52, %v506_v62  ;;  %v510_v5 = vsel %vm2718_vm3, %v434_v53, %v509_v63  ;;  %v367_v7 = vld [vmem:[#allocation2 + $0x2c] sm:$0x1]  ;;  %v512_v12 = vld [vmem:[#allocation2 + $0x18] sm:$0xf] }
  0x19   : > { %v396_v44 = vsel %vm2768_vm7, %v389_v34, %v395_v36  ;;  %v399_v50 = vsel %vm2718_vm3, %v390_v35, %v398_v45  ;;  %502 = vst [vmem:[#allocation2 + $0x8] sm:$0xf] %v501_v46  ;;  %505 = vst [vmem:[#allocation2 + $0xc] sm:$0x1] %v504_v51  ;;  %v336_v6 = vsel %vm2718_vm3, 0, %v335_v61  ;;  %v2801_v8 = vrot.slane %v444_v59, 7 }
  0x1a   : > { %397 = vst [vmem:[#allocation2] sm:$0xf] %v396_v44  ;;  %400 = vst [vmem:[#allocation2 + $0x4] sm:$0x1] %v399_v50  ;;  %vm565_vm8 = vsmask.f32 3328  ;;  %v513_v18 = vsel %vm2768_vm7, %v441_v0, %v512_v12 }
  0x1b   : > { %vm566_vm9 = vsmask.f32 7440  ;;  %508 = vst [vmem:[#allocation2 + $0x10] sm:$0xf] %v507_v2  ;;  %511 = vst [vmem:[#allocation2 + $0x14] sm:$0x1] %v510_v5 }
  0x1c   : > { %337 = vst [vmem:[#allocation2 + $0x28] sm:$0x1] %v336_v6  ;;  %v368_v9 = vsel %vm2730_vm5, 0, %v367_v7  ;;  %v442_v11 = vrot.slane %v438_v56, 4  ;;  %v447_v14 = vshll.u32 %v312_v54, 16  ;;  %v452_v15 = vshrl.u32 %v2793_v1, 16  ;;  %vm2839_vm11 = vmor %vm565_vm8, %vm566_vm9 }
  0x1d   : > { %369 = vst [vmem:[#allocation2 + $0x2c] sm:$0x1] %v368_v9  ;;  %v450_v19 = vrot.slane %v2801_v8, 4  ;;  %v455_v21 = vshll.u32 %v2793_v1, 16  ;;  %514 = vst [vmem:[#allocation2 + $0x18] sm:$0xf] %v513_v18 }
  0x1e   : > { %v515_v35 = vld [vmem:[#allocation2 + $0x1c] sm:$0x1]  ;;  %v2831_v36 = vor.u32 %v447_v14, %v2801_v8  ;;  %v2845_v52 = vld [vmem:[%s2737_s8 + $0x14] sm:$0xf]  ;;  %v2852_v62 = vrot.slane %v452_v15, 7  ;;  %vm900_vm12 = vcmask 1042432  }
  0x1f   : > { %v516_v46 = vsel %vm2718_vm3, %v442_v11, %v515_v35  ;;  %v460_v6 = vshrl.u32 %v2845_v52, 16  ;;  %vm901_vm13 = vcmask 1046532   ;;  %v338_v1 = vld [vmem:[#allocation2 + $0x30] sm:$0x1]  ;;  %s2265_s10 = sshll.u32 %s2696_s22, 3  ;;  %s2267_s22 = sshll.u32 %s2715_s27, 3 }
  0x20   : > { %v2812_v17 = vld [vmem:[#allocation2 + $0x8] sm:$0xf]  ;;  %v2820_v23 = vld [vmem:[#allocation2 + $0xc] sm:$0x1]  ;;  %517 = vst [vmem:[#allocation2 + $0x1c] sm:$0x1] %v516_v46  ;;  %vm2919_vm14 = vmor %vm900_vm12, %vm901_vm13  ;;  %s303_s17 = scalar_lea.vmem %s3301_s5, %s2267_s22  ;;  %s307_s20 = scalar_lea.vmem %s3302_s6, %s2267_s22 }
  0x21   : > { %v2810_v16 = vld [vmem:[#allocation2] sm:$0xf]  ;;  %v2818_v22 = vld [vmem:[#allocation2 + $0x4] sm:$0x1]  ;;  %v583_v26 = vshrl.u32 %v2812_v17, 16  ;;  %v586_v27 = vshll.u32 %v2812_v17, 16 }
  0x22   : > { %v569_v20 = vshrl.u32 %v2810_v16, 16  ;;  %v572_v24 = vshll.u32 %v2810_v16, 16  ;;  %v578_v25 = vshll.u32 %v2818_v22, 16  ;;  %v592_v30 = vshll.u32 %v2820_v23, 16  ;;  %v1155_v31 = vld [vmem:[#allocation2 + $0x8] sm:$0xf] }
  0x23   : > { %v2828_v34 = vld [vmem:[#allocation2 + $0xc] sm:$0x1]  ;;  %v585_v38 = vrot.slane %v583_v26, 4  ;;  %v588_v39 = vrot.slane %v586_v27, 5  ;;  %v1157_v42 = vld [vmem:[#allocation2 + $0x10] sm:$0xf] }
  0x24   : > { %v571_v32 = vrot.slane %v569_v20, 4  ;;  %v574_v33 = vrot.slane %v572_v24, 5  ;;  %v580_v37 = vrot.slane %v578_v25, 5  ;;  %v594_v40 = vrot.slane %v592_v30, 5  ;;  %v2833_v43 = vld [vmem:[#allocation2 + $0x14] sm:$0x1] }
  0x25   : > { %v1172_v44 = vshrl.u32 %v1155_v31, 16  ;;  %v1175_v45 = vshll.u32 %v1155_v31, 16  ;;  %v589_v48 = vor.u32 %v588_v39, %v585_v38  ;;  %v1181_v49 = vshll.u32 %v2828_v34, 16  ;;  %v2848_v57 = vld [vmem:[#allocation2 + $0x10] sm:$0xf]  ;;  %p295_p4 = scmp.lt.s32.totalorder %s2265_s10, 15 }
  0x26   : > { %v575_v41 = vor.u32 %v574_v33, %v571_v32  ;;  %v1186_v50 = vshrl.u32 %v1157_v42, 16  ;;  %v1189_v51 = vshll.u32 %v1157_v42, 16  ;;  %v1195_v56 = vshll.u32 %v2833_v43, 16  ;;  %v2850_v61 = vld [vmem:[#allocation2 + $0x14] sm:$0x1] }
  0x27   : > { %v1174_v54 = vrot.slane %v1172_v44, 4  ;;  %v1177_v55 = vrot.slane %v1175_v45, 5  ;;  %v590_v58 = vrot.slane %v589_v48, 4  ;;  %v1183_v2 = vrot.slane %v1181_v49, 5  ;;  %v2856_v5 = vld [vmem:[#allocation2 + $0x18] sm:$0xf] }
  0x28   : > { %v576_v53 = vrot.slane %v575_v41, 4  ;;  %v1188_v59 = vrot.slane %v1186_v50, 4  ;;  %v1191_v60 = vrot.slane %v1189_v51, 5  ;;  %v1197_v11 = vrot.slane %v1195_v56, 5  ;;  %v518_v24 = vld [vmem:[#allocation2 + $0x20] sm:$0xf] }
  0x29   : > { %v1178_v0 = vor.u32 %v1177_v55, %v1174_v54  ;;  %v595_v7 = vsel %vm2839_vm11, %v590_v58, %v594_v40  ;;  %v597_v12 = vshrl.u32 %v2848_v57, 16  ;;  %v600_v15 = vshll.u32 %v2848_v57, 16  ;;  %v521_v31 = vld [vmem:[#allocation2 + $0x24] sm:$0x1]  ;;  %v2870_v35 = vld [vmem:[#allocation2 + $0x1c] sm:$0x1] }
  0x2a   : > { %v581_v63 = vsel %vm2839_vm11, %v576_v53, %v580_v37  ;;  %v1192_v9 = vor.u32 %v1191_v60, %v1188_v59  ;;  %v606_v20 = vshll.u32 %v2850_v61, 16  ;;  %v611_v27 = vshrl.u32 %v2856_v5, 16  ;;  %v1159_v38 = vld [vmem:[#allocation2 + $0x18] sm:$0xf]  ;;  %v2878_v45 = vld [vmem:[#allocation2 + $0x1c] sm:$0x1] }
  0x2b   : > { %v2270_v14 = vcombine.low %v581_v63, %v595_v7  ;;  %v1179_v18 = vrot.slane %v1178_v0, 4  ;;  %v599_v26 = vrot.slane %v597_v12, 4  ;;  %v614_v30 = vshll.u32 %v2856_v5, 16  ;;  %v524_v51 = vld [vmem:[#allocation2 + $0x28] sm:$0xf]  ;;  %s3318_s10 = smov (!%p295_p4, %s2265_s10), 15 }
  0x2c   : > { %v1193_v25 = vrot.slane %v1192_v9, 4  ;;  %v1411_v33 = vrot.slane %v2828_v34, 5  ;;  %v602_v37 = vrot.slane %v600_v15, 5  ;;  %v457_v39 = vor.u32 %v455_v21, %v2852_v62  ;;  %v527_v56 = vld [vmem:[#allocation2 + $0x2c] sm:$0x1]  ;;  %s2266_s11 = sshll.u32 %s3318_s10, 2 }
  0x2d   : > { %2462 = vmatprep.mubr.msk.bf16.mxu1 %vm694_vm10, %v2270_v14  ;;  %v1184_v32 = vsel %vm2839_vm11, %v1179_v18, %v1183_v2  ;;  %v613_v41 = vrot.slane %v611_v27, 4  ;;  %v616_v42 = vrot.slane %v614_v30, 5  ;;  %v620_v44 = vshll.u32 %v2870_v35, 16  ;;  %v341_v58 = vld [vmem:[#allocation2 + $0x38] sm:$0x1]  ;;  %s3280_s14 = scalar_lea.vmem %s3300_s4, %s2266_s11 }
  0x2e   : > { %v1198_v40 = vsel %vm2839_vm11, %v1193_v25, %v1197_v11  ;;  %v603_v48 = vor.u32 %v602_v37, %v599_v26  ;;  %v608_v49 = vrot.slane %v606_v20, 5  ;;  %v519_v50 = vsel %vm2768_vm7, %v2831_v36, %v518_v24  ;;  %v2891_v0 = vld [vmem:[%s2737_s8 + $0x18] sm:$0xf]  ;;  %v370_v2 = vld [vmem:[#allocation2 + $0x34] sm:$0x1] }
  0x2f   : > { %v2313_v46 = vcombine.low %v1184_v32, %v1198_v40  ;;  %v617_v21 = vor.u32 %v616_v42, %v613_v41  ;;  %v622_v53 = vrot.slane %v620_v44, 5  ;;  %520 = vst [vmem:[#allocation2 + $0x20] sm:$0xf] %v519_v50  ;;  %v522_v54 = vsel %vm2718_vm3, %v450_v19, %v521_v31  ;;  %v373_v11 = vld [vmem:[#allocation2 + $0x3c] sm:$0x1] }
  0x30   : > { %v1200_v55 = vshrl.u32 %v1159_v38, 16  ;;  %v1415_v59 = vrot.slane %v2833_v43, 5  ;;  %v604_v60 = vrot.slane %v603_v48, 4  ;;  %523 = vst [vmem:[#allocation2 + $0x24] sm:$0x1] %v522_v54  ;;  %v1203_v36 = vshll.u32 %v1159_v38, 16 }
  0x31   : > { %2502 = vmatprep.mubr.msk.bf16.mxu0 %vm694_vm10, %v2313_v46  ;;  %v1209_v63 = vshll.u32 %v2878_v45, 16  ;;  %v618_v7 = vrot.slane %v617_v21, 4  ;;  %v458_v9 = vrot.slane %v2852_v62, 4  ;;  %v525_v19 = vsel %vm2768_vm7, %v457_v39, %v524_v51  ;;  %v1385_v20 = vld [vmem:[#allocation2 + $0x8] sm:$0xe] }
  0x32   : > { %v1202_v8 = vrot.slane %v1200_v55, 4  ;;  %v609_v12 = vsel %vm2839_vm11, %v604_v60, %v608_v49  ;;  %v1205_v14 = vrot.slane %v1203_v36, 5  ;;  %526 = vst [vmem:[#allocation2 + $0x28] sm:$0xf] %v525_v19  ;;  %v339_v15 = vsel %vm2718_vm3, 0, %v338_v1 }
  0x33   : > { %v2898_v18 = vrot.slane %v1209_v63, 5  ;;  %v623_v24 = vsel %vm2839_vm11, %v618_v7, %v622_v53  ;;  %v528_v62 = vsel %vm2718_vm3, %v458_v9, %v527_v56  ;;  %340 = vst [vmem:[#allocation2 + $0x30] sm:$0x1] %v339_v15  ;;  %v342_v25 = vsel %vm2718_vm3, 0, %v341_v58  ;;  %v2926_v42 = vld [vmem:[%s3299_s3 + $0x4] sm:$0x3] }
  0x34   : > { %v371_v26 = vsel %vm2730_vm5, 0, %v370_v2  ;;  %v2271_v27 = vcombine.low %v609_v12, %v623_v24  ;;  %v1206_v30 = vor.u32 %v1205_v14, %v1202_v8  ;;  %529 = vst [vmem:[#allocation2 + $0x2c] sm:$0x1] %v528_v62  ;;  %343 = vst [vmem:[#allocation2 + $0x38] sm:$0x1] %v342_v25  ;;  %v374_v31 = vsel %vm2730_vm5, 0, %v373_v11 }
  0x35   : > { %372 = vst [vmem:[#allocation2 + $0x34] sm:$0x1] %v371_v26  ;;  %v462_v32 = vrot.slane %v460_v6, 7  ;;  %375 = vst [vmem:[#allocation2 + $0x3c] sm:$0x1] %v374_v31  ;;  %v463_v37 = vshll.u32 %v2845_v52, 16 }
  0x36   : > { %v468_v38 = vshrl.u32 %v2891_v0, 16  ;;  %v471_v39 = vshll.u32 %v2891_v0, 16  ;;  %v2321_v41 = vrot.slane %v1385_v20, 9  ;;  %2463 = vmatmul.mubr.msk.bf16.vlgmr.msra.gmra.mrb[0].mxu1 %vm694_vm10, %v2271_v27  ;;  %v1161_v6 = vld [vmem:[#allocation2 + $0x20] sm:$0xf]  ;;  %v1207_v52 = vrot.slane %v1206_v30, 4 }
  0x37   : > { %v2929_v44 = vld [vmem:[#allocation2 + $0x20] sm:$0xf]  ;;  %v466_v46 = vrot.slane %v462_v32, 4  ;;  %2471 = vmatpush3.bf16.msra.mxu1 %v2807_v13  ;;  %v2932_v48 = vld [vmem:[#allocation2 + $0x24] sm:$0x1]  ;;  %v1214_v49 = vshrl.u32 %v1161_v6, 16  ;;  %v465_v1 = vor.u32 %v463_v37, %v462_v32 }
  0x38   : > { %v1217_v50 = vshll.u32 %v1161_v6, 16  ;;  %v2934_v51 = vld [vmem:[#allocation2 + $0x24] sm:$0x1]  ;;  %v1212_v21 = vsel %vm2839_vm11, %v1207_v52, %v2898_v18  ;;  %v1223_v53 = vshll.u32 %v2932_v48, 16  ;;  %v625_v54 = vshrl.u32 %v2929_v44, 16  ;;  %2618 = vmatprep.subr.msk.bf16.mxu1 %vm707_vm0, %v2926_v42 }
  0x39   : > { %v2945_v13 = vsel %vm2919_vm14, %v2321_v41, %v1411_v33  ;;  %v1216_v55 = vrot.slane %v1214_v49, 4  ;;  %v2949_v58 = vld [vmem:[#allocation2 + $0x28] sm:$0xf]  ;;  %v628_v60 = vshll.u32 %v2929_v44, 16  ;;  %v634_v36 = vshll.u32 %v2934_v51, 16 }
  0x3a   : > { %v1219_v56 = vrot.slane %v1217_v50, 5  ;;  %v1386_v63 = vld [vmem:[#allocation2 + $0x10] sm:$0xe]  ;;  %v1225_v0 = vrot.slane %v1223_v53, 5  ;;  %v627_v2 = vrot.slane %v625_v54, 4  ;;  %v639_v34 = vshrl.u32 %v2949_v58, 16 }
  0x3b   : > { %v642_v7 = vshll.u32 %v2949_v58, 16  ;;  %v530_v33 = vld [vmem:[#allocation2 + $0x30] sm:$0xf]  ;;  %v2955_v9 = vld [vmem:[#allocation2 + $0x2c] sm:$0x1]  ;;  %v630_v19 = vrot.slane %v628_v60, 5 }
  0x3c   : > { %v1220_v8 = vor.u32 %v1219_v56, %v1216_v55  ;;  %v636_v11 = vrot.slane %v634_v36, 5  ;;  %v470_v12 = vrot.slane %v468_v38, 7  ;;  %v641_v14 = vrot.slane %v639_v34, 4  ;;  %v533_v24 = vld [vmem:[#allocation2 + $0x34] sm:$0x1] }
  0x3d   : > { %v644_v18 = vrot.slane %v642_v7, 5  ;;  %v648_v15 = vshll.u32 %v2955_v9, 16  ;;  %v531_v20 = vsel %vm2768_vm7, %v465_v1, %v530_v33  ;;  %v631_v25 = vor.u32 %v630_v19, %v627_v2  ;;  %v536_v30 = vld [vmem:[#allocation2 + $0x38] sm:$0xf]  ;;  %v539_v31 = vld [vmem:[#allocation2 + $0x3c] sm:$0x1] }
  0x3e   : > { %v1221_v62 = vrot.slane %v1220_v8, 4  ;;  %v473_v26 = vor.u32 %v471_v39, %v470_v12  ;;  %v474_v27 = vrot.slane %v470_v12, 4  ;;  %532 = vst [vmem:[#allocation2 + $0x30] sm:$0xf] %v531_v20  ;;  %v1387_v32 = vld [vmem:[#allocation2 + $0x18] sm:$0xe]  ;;  %v534_v38 = vsel %vm2718_vm3, %v466_v46, %v533_v24 }
  0x3f   : > { %v645_v37 = vor.u32 %v644_v18, %v641_v14  ;;  %v650_v41 = vrot.slane %v648_v15, 5  ;;  %v2322_v6 = vrot.slane %v1386_v63, 9  ;;  %v1388_v52 = vld [vmem:[#allocation2 + $0x20] sm:$0xe]  ;;  %v344_v49 = vld [vmem:[#allocation2 + $0x40] sm:$0x1] }
  0x40   : > { %v1226_v50 = vsel %vm2839_vm11, %v1221_v62, %v1225_v0  ;;  %v632_v1 = vrot.slane %v631_v25, 4  ;;  %535 = vst [vmem:[#allocation2 + $0x34] sm:$0x1] %v534_v38  ;;  %v537_v39 = vsel %vm2768_vm7, %v473_v26, %v536_v30  ;;  %v540_v53 = vsel %vm2718_vm3, %v474_v27, %v539_v31  ;;  %v2338_v54 = vld [vmem:[%s3299_s3 + $0xc] sm:$0x3] }
  0x41   : > { %v2971_v46 = vld [vmem:[#allocation2 + $0x2c] sm:$0x1]  ;;  %v2314_v55 = vcombine.low %v1212_v21, %v1226_v50  ;;  %v1468_v56 = vsel %vm707_vm0, %v2764_v28, 0  ;;  %v646_v60 = vrot.slane %v645_v37, 4  ;;  %538 = vst [vmem:[#allocation2 + $0x38] sm:$0xf] %v537_v39  ;;  %v1416_v36 = vsel %vm2919_vm14, %v2322_v6, %v1415_v59 }
  0x42   : > { %541 = vst [vmem:[#allocation2 + $0x3c] sm:$0x1] %v540_v53  ;;  %v1389_v63 = vld [vmem:[#allocation2 + $0x28] sm:$0xe]  ;;  %v1419_v0 = vrot.slane %v2878_v45, 5  ;;  %v637_v2 = vsel %vm2839_vm11, %v632_v1, %v636_v11  ;;  %v2330_v34 = vcombine.low %v2945_v13, %v1416_v36  ;;  %v1423_v28 = vrot.slane %v2932_v48, 5 }
  0x43   : > { %v316_v21 = vld [vmem:[%s2737_s8 + $0x1c] sm:$0xf]  ;;  %v376_v7 = vld [vmem:[#allocation2 + $0x44] sm:$0x1]  ;;  %2503 = vmatmul.mubr.msk.bf16.vlgmr.msra.gmra.mrb[0].mxu0 %vm694_vm10, %v2314_v55  ;;  %v651_v43 = vsel %vm2839_vm11, %v646_v60, %v650_v41  ;;  %v2323_v33 = vrot.slane %v1387_v32, 9  ;;  %v2324_v8 = vrot.slane %v1388_v52, 9 }
  0x44   : > { %2511 = vmatpush3.bf16.msra.mxu0 %v1468_v56  ;;  %v2272_v59 = vcombine.low %v637_v2, %v651_v43  ;;  %2512 = vmatprep.mubr.msk.bf16.mxu0 %vm694_vm10, %v2330_v34  ;;  %v2325_v45 = vrot.slane %v1389_v63, 9  ;;  %v1427_v19 = vrot.slane %v2971_v46, 5  ;;  %v345_v13 = vsel %vm2718_vm3, 0, %v344_v49 }
  0x45   : > { %v2992_v11 = vld [vmem:[#allocation2 + $0x30] sm:$0xf]  ;;  %2623 = vmatprep.subr.msk.bf16.mxu0 %vm707_vm0, %v2338_v54  ;;  %346 = vst [vmem:[#allocation2 + $0x40] sm:$0x1] %v345_v13  ;;  %v377_v12 = vsel %vm2730_vm5, 0, %v376_v7  ;;  %v476_v14 = vshrl.u32 %v316_v21, 16  ;;  %v1420_v62 = vsel %vm2919_vm14, %v2323_v33, %v1419_v0  ;;  %v1424_v41 = vsel %vm2919_vm14, %v2324_v8, %v1423_v28 }
  0x46   : > { %v1390_v48 = vld [vmem:[#allocation2 + $0x30] sm:$0xe]  ;;  %2466 = vmatprep.mubr.msk.bf16.mxu1 %vm694_vm10, %v2272_v59  ;;  %v653_v18 = vshrl.u32 %v2992_v11, 16  ;;  %v656_v15 = vshll.u32 %v2992_v11, 16  ;;  %378 = vst [vmem:[#allocation2 + $0x44] sm:$0x1] %v377_v12  ;;  %v1428_v38 = vsel %vm2919_vm14, %v2325_v45, %v1427_v19  ;;  %v2331_v63 = vcombine.low %v1420_v62, %v1424_v41 }
  0x47   : > { %v2326_v20 = vrot.slane %v1390_v48, 9  ;;  %v3000_v24 = vld [vmem:[#allocation2 + $0x34] sm:$0x1]  ;;  %v478_v26 = vrot.slane %v476_v14, 7  ;;  %v479_v27 = vshll.u32 %v316_v21, 16  ;;  %v1587_v2 = vsel %vm707_vm0, %v2338_v54, 0 }
  0x48   : > { %v3004_v25 = vld [vmem:[#allocation2 + $0x34] sm:$0x1]  ;;  %v3006_v30 = vld [vmem:[#allocation2 + $0x38] sm:$0xf]  ;;  %v655_v32 = vrot.slane %v653_v18, 4  ;;  %v658_v37 = vrot.slane %v656_v15, 5 }
  0x49   : > { %v3008_v31 = vld [vmem:[#allocation2 + $0x3c] sm:$0x1]  ;;  %v662_v6 = vshll.u32 %v3000_v24, 16  ;;  %v667_v52 = vshrl.u32 %v3006_v30, 16  ;;  %v670_v49 = vshll.u32 %v3006_v30, 16  ;;  %v1431_v39 = vrot.slane %v3004_v25, 5 }
  0x4a   : > { %v676_v50 = vshll.u32 %v3008_v31, 16  ;;  %v659_v1 = vor.u32 %v658_v37, %v655_v32  ;;  %v481_v53 = vor.u32 %v479_v27, %v478_v26  ;;  %v482_v55 = vrot.slane %v478_v26, 4  ;;  %v2347_v7 = vld [vmem:[%s3299_s3 + $0xe] sm:$0x3]  ;;  %v876_v45 = vld [vmem:[#allocation2] sm:$0xe] }
  0x4b   : > { %v664_v56 = vrot.slane %v662_v6, 5  ;;  %v669_v60 = vrot.slane %v667_v52, 4  ;;  %v672_v36 = vrot.slane %v670_v49, 5  ;;  %v1432_v34 = vsel %vm2919_vm14, %v2326_v20, %v1431_v39  ;;  %v877_v19 = vld [vmem:[#allocation2 + $0x8] sm:$0xe] }
  0x4c   : > { %v660_v0 = vrot.slane %v659_v1, 4  ;;  %v542_v21 = vld [vmem:[#allocation2 + $0x40] sm:$0xf]  ;;  %v678_v43 = vrot.slane %v676_v50, 5  ;;  %v2332_v33 = vcombine.low %v1428_v38, %v1432_v34  ;;  %v347_v13 = vld [vmem:[#allocation2 + $0x48] sm:$0x1]  ;;  %v2278_v20 = vcombine.low %v2810_v16, %v2812_v17 }
  0x4d   : > { %v673_v28 = vor.u32 %v672_v36, %v669_v60  ;;  %v543_v8 = vsel %vm2768_vm7, %v481_v53, %v542_v21  ;;  %v545_v59 = vld [vmem:[#allocation2 + $0x44] sm:$0x1]  ;;  %v401_v48 = vld [vmem:[%s293_s24] sm:$0xf]  ;;  %v905_v12 = vrot.slane %v2818_v22, 5  ;;  %v909_v15 = vrot.slane %v2820_v23, 5 }
  0x4e   : > { %544 = vst [vmem:[#allocation2 + $0x40] sm:$0xf] %v543_v8  ;;  %v546_v54 = vsel %vm2718_vm3, %v482_v55, %v545_v59  ;;  %v665_v14 = vsel %vm2839_vm11, %v660_v0, %v664_v56  ;;  %v3042_v62 = vld [vmem:[#allocation2 + $0x3c] sm:$0x1]  ;;  %v1391_v26 = vld [vmem:[#allocation2 + $0x38] sm:$0xe]  ;;  %v2279_v60 = vcombine.low %v2848_v57, %v2856_v5  ;;  %v2280_v21 = vcombine.low %v2929_v44, %v2949_v58 }
  0x4f   : > { %v674_v18 = vrot.slane %v673_v28, 4  ;;  %2513 = vmatmul.mubr.msk.bf16.vlgmr.msra.gmra.mrb[0].mxu0 %vm694_vm10, %v2331_v63  ;;  %547 = vst [vmem:[#allocation2 + $0x44] sm:$0x1] %v546_v54  ;;  %v2286_v27 = vrot.slane %v876_v45, 9  ;;  %v2287_v32 = vrot.slane %v877_v19, 9  ;;  %v348_v37 = vsel %vm2718_vm3, 0, %v347_v13 }
  0x50   : > { %2521 = vmatpush3.bf16.msra.mxu0 %v1587_v2  ;;  %2516 = vmatprep.mubr.msk.bf16.mxu0 %vm694_vm10, %v2332_v33  ;;  %v403_v23 = vshrl.u32 %v401_v48, 16  ;;  %v913_v41 = vrot.slane %v2850_v61, 5  ;;  %v917_v16 = vrot.slane %v2870_v35, 5  ;;  %v3051_v38 = vld [vmem:[#allocation2 + $0x10] sm:$0xe]  ;;  %v2327_v6 = vrot.slane %v1391_v26, 9 }
  0x51   : > { %v679_v22 = vsel %vm2839_vm11, %v674_v18, %v678_v43  ;;  %2624 = vmatprep.subr.msk.bf16.mxu0 %vm707_vm0, %v2347_v7  ;;  %349 = vst [vmem:[#allocation2 + $0x48] sm:$0x1] %v348_v37  ;;  %v1435_v52 = vrot.slane %v3042_v62, 5  ;;  %v3054_v49 = vld [vmem:[#allocation2 + $0x18] sm:$0xe]  ;;  %v406_v1 = vshll.u32 %v401_v48, 16  ;;  %v3073_v63 = vsel %vm2919_vm14, %v2286_v27, %v905_v12 }
  0x52   : > { %v2273_v17 = vcombine.low %v665_v14, %v679_v22  ;;  %v3056_v50 = vrot.slane %v403_v23, 7  ;;  %v962_v39 = vsel %vm707_vm0, %v2926_v42, 0  ;;  %v3062_v53 = vsel %vm707_vm0, %v2347_v7, 0  ;;  %v3064_v55 = vld [vmem:[#allocation2 + $0x20] sm:$0xe] }
  0x53   : > { %v3066_v56 = vld [vmem:[#allocation2 + $0x28] sm:$0xe]  ;;  %v3077_v42 = vsel %vm2919_vm14, %v2287_v32, %v909_v15  ;;  %v1662_v0 = vld [vmem:[#allocation2 + $0x10] sm:$0xf]  ;;  %v2288_v7 = vrot.slane %v3051_v38, 9  ;;  %v1436_v33 = vsel %vm2919_vm14, %v2327_v6, %v1435_v52  ;;  %v2281_v59 = vcombine.low %v2992_v11, %v3006_v30 }
  0x54   : > { %2467 = vmatmul.mubr.msk.bf16.gmra.mrb[4].mxu1 %vm694_vm10, %v2273_v17  ;;  %v408_v57 = vor.u32 %v406_v1, %v3056_v50  ;;  %v3085_v5 = vld [vmem:[#allocation2 + $0x30] sm:$0xe]  ;;  %v3087_v28 = vld [vmem:[#allocation2 + $0x14] sm:$0x1]  ;;  %v1664_v43 = vld [vmem:[#allocation2 + $0x18] sm:$0xf]  ;;  %v3314_v11 = vcombine.low %v3073_v63, %v3077_v42 }
  0x55   : > { %2472 = vmatprep.mubr.msk.bf16.mxu1 %vm694_vm10, %v2278_v20  ;;  %v1392_v36 = vld [vmem:[#allocation2 + $0x40] sm:$0xe]  ;;  %v2289_v45 = vrot.slane %v3054_v49, 9  ;;  %v3095_v44 = vld [vmem:[#allocation2 + $0x1c] sm:$0x1]  ;;  %v2290_v13 = vrot.slane %v3064_v55, 9 }
  0x56   : > { %v3079_v2 = vld [vmem:[#allocation2 + $0x44] sm:$0x1]  ;;  %v2328_v34 = vrot.slane %v1392_v36, 9  ;;  %v1666_v58 = vld [vmem:[#allocation2 + $0x20] sm:$0xf]  ;;  %v1679_v48 = vshrl.u32 %v1662_v0, 16 }
  0x57   : > { %v1439_v8 = vrot.slane %v3079_v2, 5  ;;  %v2638_v54 = vld [vmem:[#allocation2 + $0x10] ss:$8 sps:$4 sm:$0xff]   ;;  %v1682_v12 = vshll.u32 %v1662_v0, 16  ;;  %v3105_v18 = vld [vmem:[%s3299_s3 + $0x6] sm:$0x3] }
  0x58   : > { %v413_v15 = vld [vmem:[#allocation2 + $0x48] sm:$0xf]  ;;  %v921_v20 = vrot.slane %v2934_v51, 5  ;;  %v3109_v27 = vld [vmem:[#allocation2 + $0x38] sm:$0xe]  ;;  %v1693_v22 = vshrl.u32 %v1664_v43, 16 }
  0x59   : > { %v1440_v14 = vsel %vm2919_vm14, %v2328_v34, %v1439_v8  ;;  %v414_v37 = vsel %vm2768_vm7, %v408_v57, %v413_v15  ;;  %v925_v23 = vrot.slane %v2955_v9, 5  ;;  %v1681_v17 = vrot.slane %v1679_v48, 4  ;;  %v1668_v6 = vld [vmem:[#allocation2 + $0x28] sm:$0xf]  ;;  %v3121_v48 = vld [vmem:[#allocation2 + $0x24] sm:$0x1] }
  0x5a   : > { %v2333_v32 = vcombine.low %v1436_v33, %v1440_v14  ;;  %415 = vst [vmem:[#allocation2 + $0x48] sm:$0xf] %v414_v37  ;;  %v1684_v1 = vrot.slane %v1682_v12, 5  ;;  %v1688_v36 = vshll.u32 %v3087_v28, 16  ;;  %v1695_v0 = vrot.slane %v1693_v22, 4 }
  0x5b   : > { %v1696_v34 = vshll.u32 %v1664_v43, 16  ;;  %v1702_v33 = vshll.u32 %v3095_v44, 16  ;;  %v1707_v29 = vshrl.u32 %v1666_v58, 16  ;;  %v1710_v57 = vshll.u32 %v1666_v58, 16  ;;  %v1670_v22 = vld [vmem:[#allocation2 + $0x30] sm:$0xf] }
  0x5c   : > { %2473 = vmatmul.mubr.msk.bf16.vlgmr.msra.gmra.mrb[0].mxu1 %vm694_vm10, %v2279_v60  ;;  %2517 = vmatmul.mubr.msk.bf16.gmra.mrb[4].mxu0 %vm694_vm10, %v2333_v32  ;;  %v1685_v8 = vor.u32 %v1684_v1, %v1681_v17  ;;  %v1721_v12 = vshrl.u32 %v1668_v6, 16  ;;  %v1724_v14 = vshll.u32 %v1668_v6, 16  ;;  %v2639_v60 = vld [vmem:[#allocation2 + $0x20] ss:$8 sps:$4 sm:$0xff]   ;;  %v2293_v43 = vrot.slane %v3109_v27, 9 }
  0x5d   : > { %2481 = vmatpush3.bf16.msra.mxu1 %v962_v39  ;;  %2476 = vmatprep.mubr.msk.bf16.mxu1 %vm694_vm10, %v2280_v21  ;;  %v1698_v15 = vrot.slane %v1696_v34, 5  ;;  %v1709_v58 = vrot.slane %v1707_v29, 4  ;;  %v1712_v39 = vrot.slane %v1710_v57, 5  ;;  %v933_v21 = vrot.slane %v3008_v31, 5  ;;  %v3128_v37 = vld [vmem:[#allocation2 + $0x2c] sm:$0x1] }
  0x5e   : > { %2522 = vmatprep.mubr.msk.bf16.mxu0 %vm694_vm10, %v2638_v54  ;;  %2619 = vmatprep.subr.msk.bf16.mxu1 %vm707_vm0, %v3105_v18  ;;  %v1690_v32 = vrot.slane %v1688_v36, 5  ;;  %v1723_v17 = vrot.slane %v1721_v12, 4  ;;  %v1726_v1 = vrot.slane %v1724_v14, 5  ;;  %v2640_v6 = vld [vmem:[#allocation2 + $0x30] ss:$8 sps:$4 sm:$0xff]   ;;  %v1686_v52 = vrot.slane %v1685_v8, 4 }
  0x5f   : > { %v1699_v54 = vor.u32 %v1698_v15, %v1695_v0  ;;  %v1704_v9 = vrot.slane %v1702_v33, 5  ;;  %v1716_v19 = vshll.u32 %v3121_v48, 16  ;;  %v3134_v27 = vld [vmem:[%s3299_s3 + $0x10] sm:$0x3]  ;;  %v1713_v34 = vor.u32 %v1712_v39, %v1709_v58  ;;  %v1672_v57 = vld [vmem:[#allocation2 + $0x38] sm:$0xf] }
  0x60   : > { %v1727_v29 = vor.u32 %v1726_v1, %v1723_v17  ;;  %v1735_v31 = vshrl.u32 %v1670_v22, 16  ;;  %v1738_v36 = vshll.u32 %v1670_v22, 16  ;;  %v1730_v12 = vshll.u32 %v3128_v37, 16  ;;  %v3137_v14 = vld [vmem:[#allocation2 + $0x34] sm:$0x1] }
  0x61   : > { %v1700_v26 = vrot.slane %v1699_v54, 4  ;;  %v914_v0 = vsel %vm2919_vm14, %v2288_v7, %v913_v41  ;;  %v918_v33 = vsel %vm2919_vm14, %v2289_v45, %v917_v16  ;;  %v3151_v8 = vld [vmem:[#allocation2 + $0x3c] sm:$0x1]  ;;  %v379_v39 = vld [vmem:[#allocation2 + $0x4c] sm:$0x1]  ;;  %v922_v61 = vsel %vm2919_vm14, %v2290_v13, %v921_v20 }
  0x62   : > { %v1737_v15 = vrot.slane %v1735_v31, 4  ;;  %v1740_v58 = vrot.slane %v1738_v36, 5  ;;  %v3313_v35 = vrot.slane %v3066_v56, 9  ;;  %v1718_v16 = vrot.slane %v1716_v19, 5  ;;  %v1674_v13 = vld [vmem:[#allocation2 + $0x40] sm:$0xf] }
  0x63   : > { %v1749_v38 = vshrl.u32 %v1672_v57, 16  ;;  %v1691_v51 = vsel %vm2839_vm11, %v1686_v52, %v1690_v32  ;;  %v1714_v30 = vrot.slane %v1713_v34, 4  ;;  %v1728_v49 = vrot.slane %v1727_v29, 4  ;;  %v1676_v32 = vld [vmem:[#allocation2 + $0x48] sm:$0xf] }
  0x64   : > { %2477 = vmatmul.mubr.msk.bf16.gmra.mrb[4].mxu1 %vm694_vm10, %v2281_v59  ;;  %2523 = vmatmul.mubr.msk.bf16.vlgmr.msra.gmra.mrb[0].mxu0 %vm694_vm10, %v2639_v60  ;;  %v926_v41 = vsel %vm2919_vm14, %v3313_v35, %v925_v23  ;;  %v1752_v55 = vshll.u32 %v1672_v57, 16  ;;  %v1705_v56 = vsel %vm2839_vm11, %v1700_v26, %v1704_v9  ;;  %v1744_v7 = vshll.u32 %v3137_v14, 16  ;;  %v2641_v26 = vld [vmem:[#allocation2 + $0x40] ss:$8 sps:$4 sm:$0xff]   ;;  %v3196_v34 = vld [vmem:[#allocation2 + $0x44] sm:$0x1] }
  0x65   : > { %2531 = vmatpush3.bf16.msra.mxu0 %v3062_v53  ;;  %2482 = vmatprep.mubr.msk.bf16.mxu1 %vm694_vm10, %v3314_v11  ;;  %v1741_v53 = vor.u32 %v1740_v58, %v1737_v15  ;;  %v1751_v63 = vrot.slane %v1749_v38, 4  ;;  %v1732_v42 = vrot.slane %v1730_v12, 5  ;;  %v1758_v45 = vshll.u32 %v3151_v8, 16  ;;  %v1892_v12 = vld [vmem:[#allocation2 + $0x10] sm:$0xe] }
  0x66   : > { %2526 = vmatprep.mubr.msk.bf16.mxu0 %vm694_vm10, %v2640_v6  ;;  %2625 = vmatprep.subr.msk.bf16.mxu0 %vm707_vm0, %v3134_v27  ;;  %v1754_v59 = vrot.slane %v1752_v55, 5  ;;  %v380_v19 = vsel %vm2730_vm5, 0, %v379_v39  ;;  %v2296_v20 = vcombine.low %v914_v0, %v918_v33  ;;  %v1080_v23 = vsel %vm707_vm0, %v3105_v18, 0  ;;  %v1163_v0 = vld [vmem:[#allocation2 + $0x28] sm:$0xf] }
  0x67   : > { %v2297_v52 = vcombine.low %v922_v61, %v926_v41  ;;  %v3315_v9 = vrot.slane %v3000_v24, 5  ;;  %v3316_v60 = vrot.slane %v3085_v5, 9  ;;  %381 = vst [vmem:[#allocation2 + $0x4c] sm:$0x1] %v380_v19  ;;  %v934_v10 = vsel %vm2919_vm14, %v2293_v43, %v933_v21  ;;  %v2646_v39 = vld [vmem:[%s3299_s3 + $0x8] sm:$0x3] }
  0x68   : > { %v2348_v17 = vcombine.low %v1691_v51, %v1705_v56  ;;  %v1719_v1 = vsel %vm2839_vm11, %v1714_v30, %v1718_v16  ;;  %v1755_v6 = vor.u32 %v1754_v59, %v1751_v63  ;;  %v1742_v18 = vrot.slane %v1741_v53, 4  ;;  %v1893_v41 = vld [vmem:[#allocation2 + $0x18] sm:$0xe]  ;;  %v1165_v16 = vld [vmem:[#allocation2 + $0x30] sm:$0xf] }
  0x69   : > { %v930_v22 = vsel %vm2919_vm14, %v3316_v60, %v3315_v9  ;;  %v1746_v54 = vrot.slane %v1744_v7, 5  ;;  %v1763_v24 = vshrl.u32 %v1674_v13, 16  ;;  %v1766_v29 = vshll.u32 %v1674_v13, 16  ;;  %v2642_v63 = vld [vmem:[#allocation2 + $0x8] ss:$8 sps:$4 sm:$0xff]  }
  0x6a   : > { %v1733_v5 = vsel %vm2839_vm11, %v1728_v49, %v1732_v42  ;;  %v1756_v57 = vrot.slane %v1755_v6, 4  ;;  %v1760_v31 = vrot.slane %v1758_v45, 5  ;;  %v1777_v36 = vshrl.u32 %v1676_v32, 16  ;;  %v1894_v60 = vld [vmem:[#allocation2 + $0x20] sm:$0xe] }
  0x6b   : > { %v409_v43 = vrot.slane %v3056_v50, 4  ;;  %v1780_v21 = vshll.u32 %v1676_v32, 16  ;;  %v2298_v33 = vcombine.low %v930_v22, %v934_v10  ;;  %v1772_v15 = vshll.u32 %v3196_v34, 16  ;;  %v1895_v22 = vld [vmem:[#allocation2 + $0x28] sm:$0xe] }
  0x6c   : > { %2483 = vmatmul.mubr.msk.bf16.vlgmr.msra.gmra.mrb[0].mxu1 %vm694_vm10, %v2296_v20  ;;  %2527 = vmatmul.mubr.msk.bf16.gmra.mrb[4].mxu0 %vm694_vm10, %v2641_v26  ;;  %v2349_v58 = vcombine.low %v1719_v1, %v1733_v5  ;;  %v1747_v50 = vsel %vm2839_vm11, %v1742_v18, %v1746_v54  ;;  %v1765_v61 = vrot.slane %v1763_v24, 4  ;;  %v1768_v35 = vrot.slane %v1766_v29, 5  ;;  %v1167_v10 = vld [vmem:[#allocation2 + $0x38] sm:$0xf]  ;;  %v1169_v24 = vld [vmem:[#allocation2 + $0x40] sm:$0xf] }
  0x6d   : > { %2491 = vmatpush3.bf16.msra.mxu1 %v1080_v23  ;;  %2486 = vmatprep.mubr.msk.bf16.mxu1 %vm694_vm10, %v2297_v52  ;;  %v1761_v38 = vsel %vm2839_vm11, %v1756_v57, %v1760_v31  ;;  %v1779_v51 = vrot.slane %v1777_v36, 4  ;;  %v2356_v30 = vrot.slane %v1892_v12, 9  ;;  %v1228_v49 = vshrl.u32 %v1163_v0, 16  ;;  %v2644_v5 = vld [vmem:[#allocation2 + $0x28] ss:$8 sps:$4 sm:$0xff]  }
  0x6e   : > { %2532 = vmatprep.mubr.msk.bf16.mxu0 %vm694_vm10, %v2348_v17  ;;  %2621 = vmatprep.subr.msk.bf16.mxu1 %vm707_vm0, %v2646_v39  ;;  %v416_v11 = vld [vmem:[#allocation2 + $0x4c] sm:$0x1]  ;;  %v1782_v56 = vrot.slane %v1780_v21, 5  ;;  %v1918_v53 = vrot.slane %v3087_v28, 5  ;;  %v1231_v7 = vshll.u32 %v1163_v0, 16  ;;  %v2357_v42 = vrot.slane %v1893_v41, 9 }
  0x6f   : > { %v417_v55 = vsel %vm2718_vm3, %v409_v43, %v416_v11  ;;  %v1922_v59 = vrot.slane %v3095_v44, 5  ;;  %v1242_v45 = vshrl.u32 %v1165_v16, 16  ;;  %v1245_v19 = vshll.u32 %v1165_v16, 16  ;;  %v2643_v17 = vld [vmem:[#allocation2 + $0x18] ss:$8 sps:$4 sm:$0xff]  }
  0x70   : > { %418 = vst [vmem:[#allocation2 + $0x4c] sm:$0x1] %v417_v55  ;;  %v1975_v13 = vsel %vm707_vm0, %v3134_v27, 0  ;;  %v2350_v20 = vcombine.low %v1747_v50, %v1761_v38  ;;  %v1230_v23 = vrot.slane %v1228_v49, 4  ;;  %v1233_v26 = vrot.slane %v1231_v7, 5 }
  0x71   : > { %v1769_v52 = vor.u32 %v1768_v35, %v1765_v61  ;;  %v1244_v4 = vrot.slane %v1242_v45, 4  ;;  %v1247_v9 = vrot.slane %v1245_v19, 5  ;;  %v1783_v28 = vor.u32 %v1782_v56, %v1779_v51  ;;  %v1896_v0 = vld [vmem:[#allocation2 + $0x30] sm:$0xe] }
  0x72   : > { %v1774_v44 = vrot.slane %v1772_v15, 5  ;;  %v1919_v27 = vsel %vm2919_vm14, %v2356_v30, %v1918_v53  ;;  %v1923_v32 = vsel %vm2919_vm14, %v2357_v42, %v1922_v59  ;;  %v1234_v1 = vor.u32 %v1233_v26, %v1230_v23  ;;  %v1898_v26 = vld [vmem:[#allocation2 + $0x40] sm:$0xe] }
  0x73   : > { %v1237_v6 = vshll.u32 %v2971_v46, 16  ;;  %v1248_v18 = vor.u32 %v1247_v9, %v1244_v4  ;;  %v1251_v54 = vshll.u32 %v3004_v25, 16  ;;  %v1770_v29 = vrot.slane %v1769_v52, 4  ;;  %v1899_v52 = vld [vmem:[#allocation2 + $0x48] sm:$0xe] }
  0x74   : > { %2487 = vmatmul.mubr.msk.bf16.gmra.mrb[4].mxu1 %vm694_vm10, %v2298_v33  ;;  %2533 = vmatmul.mubr.msk.bf16.vlgmr.msra.gmra.mrb[0].mxu0 %vm694_vm10, %v2349_v58  ;;  %v2358_v57 = vrot.slane %v1894_v60, 9  ;;  %v1926_v31 = vrot.slane %v3121_v48, 5  ;;  %v2359_v36 = vrot.slane %v1895_v22, 9  ;;  %v1784_v21 = vrot.slane %v1783_v28, 4  ;;  %v1897_v58 = vld [vmem:[#allocation2 + $0x38] sm:$0xe] }
  0x75   : > { %2541 = vmatpush3.bf16.msra.mxu0 %v1975_v13  ;;  %2492 = vmatprep.mubr.msk.bf16.mxu1 %vm694_vm10, %v2642_v63  ;;  %v2365_v12 = vcombine.low %v1919_v27, %v1923_v32  ;;  %v1256_v33 = vshrl.u32 %v1167_v10, 16  ;;  %v1259_v46 = vshll.u32 %v1167_v10, 16  ;;  %v1270_v39 = vshrl.u32 %v1169_v24, 16 }
  0x76   : > { %2536 = vmatprep.mubr.msk.bf16.mxu0 %vm694_vm10, %v2350_v20  ;;  %v1273_v50 = vshll.u32 %v1169_v24, 16  ;;  %v1235_v25 = vrot.slane %v1234_v1, 4  ;;  %v1239_v61 = vrot.slane %v1237_v6, 5  ;;  %v1249_v35 = vrot.slane %v1248_v18, 4 }
  0x77   : > { %v3231_v43 = vld [vmem:[#allocation2 + $0x4c] sm:$0x1]  ;;  %v1253_v41 = vrot.slane %v1251_v54, 5  ;;  %v1775_v48 = vsel %vm2839_vm11, %v1770_v29, %v1774_v44  ;;  %v1930_v38 = vrot.slane %v3128_v37, 5  ;;  %v2360_v11 = vrot.slane %v1896_v0, 9 }
  0x78   : > { %v1786_v15 = vshll.u32 %v3231_v43, 16  ;;  %v1934_v51 = vrot.slane %v3137_v14, 5  ;;  %v2361_v30 = vrot.slane %v1897_v58, 9  ;;  %v1938_v49 = vrot.slane %v3151_v8, 5 }
  0x79   : > { %v1258_v55 = vrot.slane %v1256_v33, 4  ;;  %v1261_v53 = vrot.slane %v1259_v46, 5  ;;  %v1272_v7 = vrot.slane %v1270_v39, 4  ;;  %v1275_v63 = vrot.slane %v1273_v50, 5 }
  0x7a   : > { %v1788_v16 = vrot.slane %v1786_v15, 5  ;;  %v1240_v42 = vsel %vm2839_vm11, %v1235_v25, %v1239_v61  ;;  %v1254_v14 = vsel %vm2839_vm11, %v1249_v35, %v1253_v41  ;;  %v1265_v8 = vshll.u32 %v3042_v62, 16 }
  0x7b   : > { %v1279_v59 = vshll.u32 %v3079_v2, 16  ;;  %v1927_v45 = vsel %vm2919_vm14, %v2358_v57, %v1926_v31  ;;  %v1931_v19 = vsel %vm2919_vm14, %v2359_v36, %v1930_v38  ;;  %v1935_v13 = vsel %vm2919_vm14, %v2360_v11, %v1934_v51 }
  0x7c   : > { %2493 = vmatmul.mubr.msk.bf16.vlgmr.msra.gmra.mrb[0].mxu1 %vm694_vm10, %v2643_v17  ;;  %v1789_v56 = vsel %vm2839_vm11, %v1784_v21, %v1788_v16  ;;  %v2315_v20 = vcombine.low %v1240_v42, %v1254_v14  ;;  %v1939_v62 = vsel %vm2919_vm14, %v2361_v30, %v1938_v49  ;;  %v1262_v23 = vor.u32 %v1261_v53, %v1258_v55 }
  0x7d   : > { %2551 = vmatpush3.bf16.msra.mxu1 %v2711_v3  ;;  %2496 = vmatprep.mubr.msk.bf16.mxu1 %vm694_vm10, %v2644_v5  ;;  %v2351_v37 = vcombine.low %v1775_v48, %v1789_v56  ;;  %v2645_v3 = vld [vmem:[#allocation2 + $0x38] ss:$8 sps:$4 sm:$0xff]   ;;  %v1276_v2 = vor.u32 %v1275_v63, %v1272_v7  ;;  %v1267_v4 = vrot.slane %v1265_v8, 5  ;;  %v1281_v9 = vrot.slane %v1279_v59, 5 }
  0x7e   : > { %v2366_v28 = vcombine.low %v1927_v45, %v1931_v19  ;;  %v2367_v60 = vcombine.low %v1935_v13, %v1939_v62  ;;  %v2362_v22 = vrot.slane %v1898_v26, 9  ;;  %v1942_v44 = vrot.slane %v3196_v34, 5 }
  0x7f   : > { %2537 = vmatmul.mubr.msk.bf16.gmra.mrb[4].mxu0 %vm694_vm10, %v2351_v37  ;;  %v1263_v27 = vrot.slane %v1262_v23, 4  ;;  %v1277_v32 = vrot.slane %v1276_v2, 4  ;;  %v2363_v10 = vrot.slane %v1899_v52, 9  ;;  %v1946_v17 = vrot.slane %v3231_v43, 5 }
  0x80   : > { %2542 = vmatprep.mubr.msk.bf16.mxu0 %vm694_vm10, %v2365_v12  ;;  %v1943_v34 = vsel %vm2919_vm14, %v2362_v22, %v1942_v44 }
  0x81   : > { %v1268_v1 = vsel %vm2839_vm11, %v1263_v27, %v1267_v4  ;;  %v1282_v6 = vsel %vm2839_vm11, %v1277_v32, %v1281_v9  ;;  %v1947_v18 = vsel %vm2919_vm14, %v2363_v10, %v1946_v17 }
  0x82   : > { %v2316_v54 = vcombine.low %v1268_v1, %v1282_v6  ;;  %v2368_v24 = vcombine.low %v1943_v34, %v1947_v18 }
  0x84   : > { %2497 = vmatmul.mubr.msk.bf16.gmra.mrb[4].mxu1 %vm694_vm10, %v2645_v3 }
  0x85   : > { %2506 = vmatprep.mubr.msk.bf16.mxu1 %vm694_vm10, %v2315_v20 }
  0x87   : > { %2543 = vmatmul.mubr.msk.bf16.vlgmr.msra.gmra.mrb[0].mxu0 %vm694_vm10, %v2366_v28 }
  0x88   : > { %2546 = vmatprep.mubr.msk.bf16.mxu0 %vm694_vm10, %v2367_v60 }
  0x8f   : > { %2547 = vmatmul.mubr.msk.bf16.gmra.mrb[4].mxu0 %vm694_vm10, %v2368_v24 }
  0x90   : > { %2507 = vmatmul.mubr.msk.bf16.vlgmr.msra.gmra.mrb[4].mxu1 %vm694_vm10, %v2316_v54 }
 0x14f   : > { %v2494_v29 = vpop.f32.mrb[0].mxu1 }
 0x150   : > { %v1116_v5 = vpop.f32.mrb[1].mxu1 }
 0x151   : > { %v2495_v57 = vpop.f32.mrb[2].mxu1 }
 0x152   : > { %v1119_v31 = vpop.f32.mrb[3].mxu1 }
 0x15a   : > { %v2544_v47 = vpop.f32.mrb[0].mxu0 }
 0x15b   : > { %v2552_v36 = vadd.f32 %v2544_v47, %v2494_v29  ;;  %v2011_v43 = vpop.f32.mrb[1].mxu0 }
 0x15c   : > { %v2553_v21 = vadd.f32 %v2011_v43, %v1116_v5  ;;  %v2545_v40 = vpop.f32.mrb[2].mxu0 }
 0x15d   : > { %v2554_v12 = vadd.f32 %v2545_v40, %v2495_v57  ;;  %v2014_v0 = vpop.f32.mrb[3].mxu0  ;;  %v2100_v25 = vmul.f32 %v2552_v36, %v2552_v36 }
 0x15e   : > { %v2555_v33 = vadd.f32 %v2014_v0, %v1119_v31  ;;  %v2098_v58 = vmul.f32 %v2553_v21, %v2553_v21 }
 0x15f   : > { %v2400_v15 = vpack.c.bf16 %v2554_v12, %v2552_v36  ;;  %v2101_v51 = vmul.f32 %v2554_v12, %v2554_v12 }
 0x160   : > { %v2395_v46 = vpack.c.bf16 %v2555_v33, %v2553_v21  ;;  %v2090_v39 = vadd.f32 %v2555_v33, %v2553_v21  ;;  %v2099_v50 = vmul.f32 %v2555_v33, %v2555_v33 }
 0x161   : > { %2412 = vst [vmem:[%s3280_s14 + $0x8] sm:$0xff] %v2400_v15  }
 0x162   : > { %2396 = vst [vmem:[%s3280_s14] sm:$0xff] %v2395_v46   ;;  %v2091_v61 = vadd.f32 %v2552_v36, %v2090_v39  ;;  %v2106_v35 = vadd.f32 %v2099_v50, %v2098_v58  ;;  %v2548_v48 = vpop.f32.mrb[4].mxu0 }
 0x163   : > { %v2508_v41 = vpop.f32.mrb[4].mxu1  ;;  %v2027_v11 = vpop.f32.mrb[5].mxu0 }
 0x164   : > { %v2556_v16 = vadd.f32 %v2548_v48, %v2508_v41  ;;  %v1362_v38 = vpop.f32.mrb[5].mxu1  ;;  %v2107_v30 = vadd.f32 %v2106_v35, %v2100_v25  ;;  %v2092_v55 = vadd.f32 %v2554_v12, %v2091_v61  ;;  %v2549_v53 = vpop.f32.mrb[6].mxu0 }
 0x165   : > { %v2557_v49 = vadd.f32 %v2027_v11, %v1362_v38  ;;  %v2509_v56 = vpop.f32.mrb[6].mxu1  ;;  %v2030_v37 = vpop.f32.mrb[7].mxu0 }
 0x166   : > { %v2558_v7 = vadd.f32 %v2549_v53, %v2509_v56  ;;  %v1365_v63 = vpop.f32.mrb[7].mxu1  ;;  %v2108_v8 = vadd.f32 %v2107_v30, %v2101_v51  ;;  %v2104_v62 = vmul.f32 %v2556_v16, %v2556_v16 }
 0x167   : > { %v2093_v42 = vadd.f32 %v2557_v49, %v2092_v55  ;;  %v2102_v14 = vmul.f32 %v2557_v49, %v2557_v49  ;;  %v2559_v59 = vadd.f32 %v2030_v37, %v1365_v63 }
 0x168   : > { %v2410_v3 = vpack.c.bf16 %v2558_v7, %v2556_v16  ;;  %v2105_v26 = vmul.f32 %v2558_v7, %v2558_v7 }
 0x169   : > { %v2109_v45 = vadd.f32 %v2108_v8, %v2102_v14  ;;  %v2405_v19 = vpack.c.bf16 %v2559_v59, %v2557_v49  ;;  %v2094_v13 = vadd.f32 %v2559_v59, %v2093_v42  ;;  %v2103_v20 = vmul.f32 %v2559_v59, %v2559_v59 }
 0x16a   : > { %2414 = vst [vmem:[%s3280_s14 + $0x18] sm:$0xff] %v2410_v3  }
 0x16b   : > { %2413 = vst [vmem:[%s3280_s14 + $0x10] sm:$0xff] %v2405_v19   ;;  %v2095_v23 = vadd.f32 %v2556_v16, %v2094_v13  ;;  %v2110_v2 = vadd.f32 %v2109_v45, %v2103_v20 }
 0x16d   : > { %v2096_v52 = vadd.f32 %v2558_v7, %v2095_v23  ;;  %v2111_v4 = vadd.f32 %v2110_v2, %v2104_v62 }
 0x16f   : > { %2097 = vst [vmem:[%s303_s17] sm:$0xff] %v2096_v52  ;;  %v2112_v9 = vadd.f32 %v2111_v4, %v2105_v26 }
 0x171   : > { %2113 = vst [vmem:[%s307_s20] sm:$0xff] %v2112_v9 }
 0x172 PF: > { %s17_s21 = sadd.s32 1, %s2653_s21  }
 0x173   : > { %p14_p5 = scmp.ge.s32.totalorder %s17_s21, 4  }
 0x175   :  { %16 = sbr.rel (!%p14_p5) target bundleno = 1 (0x1), region = 107 }

// kernel: down_forward.6
= control target key start
LH: loop header
LB: loop body
LE: loop exit
PB: predicated region body
PF: predicated region fallthrough
CT: control target
= control target key end

     0   :  { %s3017_s27 = smov 0   ;;  %s3611_s0 = inlined_call_operand.vmem [shape: bf16[2,8,8,128], index: 0, kind: input, shape index: {}]   ;;  %s3612_s1 = inlined_call_operand.vmem [shape: bf16[2,1,8,128], index: 1, kind: input, shape index: {}, may-alias: {1,2}]   ;;  %s3613_s2 = inlined_call_operand.vmem [shape: bf16[2,1,8,128], index: 2, kind: input, shape index: {}, may-alias: {1,2}]   ;;  %s3614_s3 = inlined_call_operand.vmem [shape: bf16[9,128,128], index: 3, kind: input, shape index: {}]   ;;  %s3615_s4 = inlined_call_operand.vmem [shape: f32[1,128], index: 4, kind: input, shape index: {}]   ;;  %s3616_s5 = inlined_call_operand.vmem [shape: f32[1,128], index: 5, kind: input, shape index: {}]   ;;  %s3617_s6 = inlined_call_operand.vmem [shape: bf16[128,128], index: 6, kind: output, shape index: {0}]   ;;  %s3618_s7 = inlined_call_operand.vmem [shape: f32[2,8,128], index: 7, kind: output, shape index: {1}]   ;;  %s3619_s8 = inlined_call_operand.vmem [shape: f32[2,8,128], index: 8, kind: output, shape index: {2}]  }
   0x1 LB: > { %s3023_s28 = sadd.s32 4294967295, %s2970_s27   ;;  %p2368_p0 = scmp.ge.s32.totalorder %s2970_s27, 1  ;;  %s2970_s27 = sphi %s3017_s27, %s19_s27  }
   0x2   : > { %p285_p1 = scmp.lt.s32.totalorder %s2970_s27, 3 }
   0x4   : > { %p286_p2 = pnand %p2368_p0, %p285_p1 }
   0x5   : > { %v2832_v0 = vld [vmem:[%s3614_s3 + $0xc0] sm:$0xff] (!%p286_p2)   ;;  %v2835_v3 = vld [vmem:[%s3614_s3 + $0xc8] sm:$0xff] (!%p286_p2)   ;;  %v2839_v7 = vld [vmem:[%s3614_s3 + $0xd0] sm:$0xff] (!%p286_p2)   ;;  %p335_p3 = scmp.lt.s32.totalorder (!%p286_p2), %s3023_s28, 1  ;;  %vm425_vm0 = vcmask (!%p286_p2), 1040384   ;;  %vm501_vm5 = vcmask (!%p286_p2), 1043456  }
   0x6   : > { %289 = sbr.rel (%p286_p2) target bundleno = 378 (0x17a), region = 44  ;;  %v2833_v1 = vld [vmem:[%s3614_s3 + $0x80] sm:$0xff] (!%p286_p2)   ;;  %2652 = vmatprep.subr.bf16.mxu1 (!%p286_p2), %v2832_v0  ;;  %v2837_v5 = vld [vmem:[%s3614_s3 + $0x88] sm:$0xff] (!%p286_p2)   ;;  %v2841_v9 = vld [vmem:[%s3614_s3 + $0x90] sm:$0xff] (!%p286_p2)   ;;  %vm426_vm1 = vsmask.f32 (!%p286_p2), 256 }
   0x7   : > { %v2834_v2 = vld [vmem:[%s3614_s3 + $0x40] sm:$0xff] (!%p286_p2)   ;;  %2653 = vmatpush3.bf16.msra.mxu1 (!%p286_p2), %v2833_v1  ;;  %v2838_v6 = vld [vmem:[%s3614_s3 + $0x48] sm:$0xff] (!%p286_p2)   ;;  %v2842_v10 = vld [vmem:[%s3614_s3 + $0x50] sm:$0xff] (!%p286_p2)   ;;  %vm458_vm3 = vsmask.f32 (!%p286_p2), 7938  ;;  %s2373_s19 = sshll.u32 (!%p286_p2), %s3023_s28, 3 }
   0x8   : > { %2612 = vmatprep.subr.bf16.mxu0 (!%p286_p2), %v2834_v2  ;;  %v2836_v4 = vld [vmem:[%s3614_s3] sm:$0xff] (!%p286_p2)   ;;  %2654 = vmatprep.subr.bf16.mxu1 (!%p286_p2), %v2835_v3  ;;  %v2840_v8 = vld [vmem:[%s3614_s3 + $0x8] sm:$0xff] (!%p286_p2)   ;;  %v2843_v11 = vld [vmem:[%s3614_s3 + $0xd8] sm:$0xff] (!%p286_p2)   ;;  %p349_p4 = scmp.lt.s32.totalorder (!%p286_p2), %s2373_s19, 15 }
   0x9   : > { %2613 = vmatpush3.bf16.msra.mxu0 (!%p286_p2), %v2836_v4  ;;  %v2844_v12 = vld [vmem:[%s3614_s3 + $0x10] sm:$0xff] (!%p286_p2)   ;;  %v2845_v13 = vld [vmem:[%s3614_s3 + $0x98] sm:$0xff] (!%p286_p2)   ;;  %v2847_v15 = vld [vmem:[%s3614_s3 + $0xe0] sm:$0xff] (!%p286_p2)  }
   0xa   : > { %2614 = vmatprep.subr.bf16.mxu0 (!%p286_p2), %v2838_v6  ;;  %v2846_v14 = vld [vmem:[%s3614_s3 + $0x58] sm:$0xff] (!%p286_p2)   ;;  %v2849_v17 = vld [vmem:[%s3614_s3 + $0xa0] sm:$0xff] (!%p286_p2)   ;;  %v2851_v19 = vld [vmem:[%s3614_s3 + $0xe8] sm:$0xff] (!%p286_p2)  }
   0xb   : > { %2655 = vmatpush3.bf16.msra.mxu1 (!%p286_p2), %v2837_v5  ;;  %v2848_v16 = vld [vmem:[%s3614_s3 + $0x18] sm:$0xff] (!%p286_p2)   ;;  %v2850_v18 = vld [vmem:[%s3614_s3 + $0x60] sm:$0xff] (!%p286_p2)   ;;  %v2853_v21 = vld [vmem:[%s3614_s3 + $0xa8] sm:$0xff] (!%p286_p2)  }
   0xc   : > { %2656 = vmatprep.subr.bf16.mxu1 (!%p286_p2), %v2839_v7  ;;  %v2852_v20 = vld [vmem:[%s3614_s3 + $0x20] sm:$0xff] (!%p286_p2)   ;;  %v2854_v22 = vld [vmem:[%s3614_s3 + $0x68] sm:$0xff] (!%p286_p2)   ;;  %v2855_v23 = vld [vmem:[%s3614_s3 + $0xf0] sm:$0xff] (!%p286_p2)  }
   0xd   : > { %2615 = vmatpush3.bf16.msra.mxu0 %v2840_v8  ;;  %s3092_s9 = scalar_select %p335_p3, %s3023_s28, 1  ;;  %v2856_v24 = vld [vmem:[%s3614_s3 + $0x28] sm:$0xff]   ;;  %v2857_v25 = vld [vmem:[%s3614_s3 + $0xb0] sm:$0xff]   ;;  %v2859_v27 = vld [vmem:[%s3614_s3 + $0xf8] sm:$0xff]  }
   0xe   : > { %2616 = vmatprep.subr.bf16.mxu0 %v2842_v10  ;;  %v2858_v26 = vld [vmem:[%s3614_s3 + $0x70] sm:$0xff]   ;;  %v2861_v29 = vld [vmem:[%s3614_s3 + $0xb8] sm:$0xff]   ;;  %v3132_v31 = vld [vmem:[%s3615_s4] ss:$0 sm:$0xff]  ;;  %s3627_s19 = smov (!%p349_p4, %s2373_s19), 15 }
   0xf   : > { %2657 = vmatpush3.bf16.msra.mxu1 %v2841_v9  ;;  %s2553_s18 = sshll.u32 %s3092_s9, 5  ;;  %v2860_v28 = vld [vmem:[%s3614_s3 + $0x30] sm:$0xff]   ;;  %s2371_s13 = sshll.u32 %s3092_s9, 2  ;;  %v3137_v32 = vld [vmem:[%s3616_s5] ss:$0 sm:$0xff]  ;;  %vm3140_vm2 = vmand %vm425_vm0, %vm426_vm1 }
  0x10   : > { %2658 = vmatprep.subr.bf16.mxu1 %v2843_v11  ;;  %s3119_s29 = scalar_lea.vmem %s3611_s0, %s2553_s18  ;;  %v431_v35 = vld [vmem:[#allocation2 + $0x8] sm:$0x1]  ;;  %v434_v36 = vld [vmem:[#allocation2 + $0x10] sm:$0x1]  ;;  %v463_v38 = vld [vmem:[#allocation2 + $0xc] sm:$0x1]  ;;  %s343_s20 = scalar_lea.vmem %s3612_s1, %s2371_s13 }
  0x11   : > { %2617 = vmatpush3.bf16.msra.mxu0 %v2844_v12  ;;  %v2571_v30 = vld [vmem:[%s3119_s29] sm:$0xff]   ;;  %v466_v39 = vld [vmem:[#allocation2 + $0x14] sm:$0x1]  ;;  %v432_v42 = vsel %vm3140_vm2, 0, %v431_v35  ;;  %v435_v43 = vsel %vm3140_vm2, 0, %v434_v36  ;;  %vm3157_vm4 = vmand %vm425_vm0, %vm458_vm3  ;;  %s347_s23 = scalar_lea.vmem %s3613_s2, %s2371_s13  ;;  %s2374_s28 = sshll.u32 %s3627_s19, 2 }
  0x12   : > { %2618 = vmatprep.subr.bf16.mxu0 %v2846_v14  ;;  %v2572_v33 = vunpack.c.l.bf16 %v2571_v30  ;;  %v2573_v34 = vunpack.c.h.bf16 %v2571_v30  ;;  %433 = vst [vmem:[#allocation2 + $0x8] sm:$0x1] %v432_v42  ;;  %436 = vst [vmem:[#allocation2 + $0x10] sm:$0x1] %v435_v43  ;;  %v464_v45 = vsel %vm3157_vm4, 0, %v463_v38  ;;  %v467_v46 = vsel %vm3157_vm4, 0, %v466_v39  ;;  %s352_s22 = scalar_lea.vmem %s3617_s6, %s2374_s28 }
  0x13   : > { %2659 = vmatpush3.bf16.msra.mxu1 %v2845_v13  ;;  %v2867_v47 = vld [vmem:[%s3614_s3 + $0x78] sm:$0xff]   ;;  %v428_v48 = vld [vmem:[#allocation2] sm:$0x1]  ;;  %465 = vst [vmem:[#allocation2 + $0xc] sm:$0x1] %v464_v45  ;;  %vm3184_vm6 = vmand %vm501_vm5, %vm458_vm3 }
  0x14   : > { %2660 = vmatprep.subr.bf16.mxu1 %v2847_v15  ;;  %v387_v40 = vmul.f32 %v2572_v33, %v3132_v31  ;;  %v388_v41 = vmul.f32 %v2573_v34, %v3132_v31  ;;  %468 = vst [vmem:[#allocation2 + $0x14] sm:$0x1] %v467_v46  ;;  %v429_v51 = vsel %vm3140_vm2, 0, %v428_v48  ;;  %v460_v52 = vld [vmem:[#allocation2 + $0x4] sm:$0x1]  ;;  %v2871_v58 = vld [vmem:[%s3614_s3 + $0x38] sm:$0xff]  }
  0x15   : > { %2619 = vmatpush3.bf16.msra.mxu0 %v2848_v16  ;;  %v490_v53 = vld [vmem:[%s343_s20] sm:$0xf]  ;;  %430 = vst [vmem:[#allocation2] sm:$0x1] %v429_v51  ;;  %v461_v55 = vsel %vm3157_vm4, 0, %v460_v52  ;;  %v2934_v44 = vld [vmem:[%s3614_s3 + $0x208] sm:$0xff]  }
  0x16   : > { %2620 = vmatprep.subr.bf16.mxu0 %v2850_v18  ;;  %v401_v49 = vadd.f32 %v3137_v32, %v387_v40  ;;  %v402_v50 = vadd.f32 %v3137_v32, %v388_v41  ;;  %v2870_v54 = vld [vmem:[%s3614_s3 + $0x1c0] sm:$0xff]   ;;  %v492_v56 = vshrl.u32 %v490_v53, 16  ;;  %v495_v57 = vshll.u32 %v490_v53, 16  ;;  %462 = vst [vmem:[#allocation2 + $0x4] sm:$0x1] %v461_v55  ;;  %v2943_v3 = vld [vmem:[%s3614_s3 + $0x218] sm:$0xff]  }
  0x17   : > { %2661 = vmatpush3.bf16.msra.mxu1 %v2849_v17  ;;  %v2875_v2 = vld [vmem:[%s3614_s3 + $0x140] sm:$0xff]  }
  0x18   : > { %2662 = vmatprep.subr.bf16.mxu1 %v2851_v19  ;;  %v409_v59 = vmax.f32 %v401_v49, 0.0  ;;  %v410_v60 = vmax.f32 %v402_v50, 0.0  ;;  %v494_v61 = vrot.slane %v492_v56, 7  ;;  %v472_v36 = vld [vmem:[#allocation2 + $0x24] sm:$0x1] }
  0x19   : > { %2621 = vmatpush3.bf16.msra.mxu0 %v2852_v20  ;;  %v632_v8 = vld [vmem:[#allocation2 + $0x8] sm:$0xf]  ;;  %v638_v10 = vld [vmem:[#allocation2 + $0x10] sm:$0xf]  ;;  %v473_v39 = vsel %vm3157_vm4, 0, %v472_v36 }
  0x1a   : > { %2622 = vmatprep.subr.bf16.mxu0 %v2854_v22  ;;  %v2554_v62 = vpack.c.bf16 %v409_v59, %v409_v59  ;;  %v2555_v63 = vpack.c.bf16 %v410_v60, %v410_v60  ;;  %v497_v0 = vor.u32 %v495_v57, %v494_v61  ;;  %v498_v1 = vrot.slane %v494_v61, 4  ;;  %v635_v9 = vld [vmem:[#allocation2 + $0xc] sm:$0x1]  ;;  %474 = vst [vmem:[#allocation2 + $0x24] sm:$0x1] %v473_v39 }
  0x1b   : > { %2663 = vmatpush3.bf16.msra.mxu1 %v2853_v21  ;;  %v641_v14 = vld [vmem:[#allocation2 + $0x14] sm:$0x1]  ;;  %v2606_v22 = vld [vmem:[%s3119_s29 + $0x8] sm:$0xff]  }
  0x1c   : > { %2664 = vmatprep.subr.bf16.mxu1 %v2855_v23  ;;  %v552_v4 = vshrl.u32 %v2554_v62, 16  ;;  %v555_v5 = vshll.u32 %v2554_v62, 16  ;;  %v560_v6 = vshrl.u32 %v2555_v63, 16  ;;  %v563_v7 = vshll.u32 %v2555_v63, 16  ;;  %v503_v13 = vld [vmem:[#allocation2] sm:$0xf] }
  0x1d   : > { %2623 = vmatpush3.bf16.msra.mxu0 %v2856_v24  ;;  %v504_v15 = vsel %vm3184_vm6, %v497_v0, %v503_v13  ;;  %v506_v16 = vld [vmem:[#allocation2 + $0x4] sm:$0x1]  ;;  %v2576_v30 = vunpack.c.l.bf16 %v2606_v22  ;;  %v2577_v33 = vunpack.c.h.bf16 %v2606_v22 }
  0x1e   : > { %2624 = vmatprep.subr.bf16.mxu0 %v2858_v26  ;;  %v554_v11 = vrot.slane %v552_v4, 7  ;;  %v562_v12 = vrot.slane %v560_v6, 7  ;;  %505 = vst [vmem:[#allocation2] sm:$0xf] %v504_v15  ;;  %v507_v21 = vsel %vm3140_vm2, %v498_v1, %v506_v16  ;;  %v2872_v13 = vld [vmem:[%s3614_s3 + $0x180] sm:$0xff]  }
  0x1f   : > { %2665 = vmatpush3.bf16.msra.mxu1 %v2857_v25  ;;  %508 = vst [vmem:[#allocation2 + $0x4] sm:$0x1] %v507_v21  ;;  %v389_v40 = vmul.f32 %v2576_v30, %v3132_v31  ;;  %v390_v41 = vmul.f32 %v2577_v33, %v3132_v31  ;;  %v2879_v33 = vld [vmem:[%s3614_s3 + $0x188] sm:$0xff]  }
  0x20   : > { %2666 = vmatprep.subr.bf16.mxu1 %v2859_v27  ;;  %v557_v17 = vor.u32 %v555_v5, %v554_v11  ;;  %v558_v18 = vrot.slane %v554_v11, 4  ;;  %v565_v19 = vor.u32 %v563_v7, %v562_v12  ;;  %v566_v20 = vrot.slane %v562_v12, 4  ;;  %v437_v27 = vld [vmem:[#allocation2 + $0x18] sm:$0x1] }
  0x21   : > { %2625 = vmatpush3.bf16.msra.mxu0 %v2860_v28  ;;  %v440_v28 = vld [vmem:[#allocation2 + $0x20] sm:$0x1]  ;;  %v438_v34 = vsel %vm3140_vm2, 0, %v437_v27  ;;  %v403_v43 = vadd.f32 %v3137_v32, %v389_v40  ;;  %v404_v45 = vadd.f32 %v3137_v32, %v390_v41 }
  0x22   : > { %2626 = vmatprep.subr.bf16.mxu0 %v2867_v47  ;;  %v633_v23 = vsel %vm3184_vm6, %v557_v17, %v632_v8  ;;  %v636_v24 = vsel %vm3140_vm2, %v558_v18, %v635_v9  ;;  %v639_v25 = vsel %vm3184_vm6, %v565_v19, %v638_v10  ;;  %v642_v26 = vsel %vm3140_vm2, %v566_v20, %v641_v14  ;;  %v2876_v14 = vld [vmem:[%s3614_s3 + $0x1c8] sm:$0xff]   ;;  %v2607_v17 = vld [vmem:[%s3119_s29 + $0x10] sm:$0xff]  }
  0x23   : > { %2667 = vmatpush3.bf16.msra.mxu1 %v2861_v29  ;;  %v469_v29 = vld [vmem:[#allocation2 + $0x1c] sm:$0x1]  ;;  %634 = vst [vmem:[#allocation2 + $0x8] sm:$0xf] %v633_v23  ;;  %637 = vst [vmem:[#allocation2 + $0xc] sm:$0x1] %v636_v24  ;;  %v2580_v36 = vunpack.c.l.bf16 %v2607_v17 }
  0x24   : > { %2732 = vmatprep.subr.bf16.mxu1 %v2870_v54  ;;  %640 = vst [vmem:[#allocation2 + $0x10] sm:$0xf] %v639_v25  ;;  %643 = vst [vmem:[#allocation2 + $0x14] sm:$0x1] %v642_v26  ;;  %v441_v35 = vsel %vm3140_vm2, 0, %v440_v28  ;;  %v470_v38 = vsel %vm3157_vm4, 0, %v469_v29 }
  0x25   : > { %2627 = vmatpush3.bf16.msra.mxu0 %v2871_v58  ;;  %439 = vst [vmem:[#allocation2 + $0x18] sm:$0x1] %v438_v34  ;;  %442 = vst [vmem:[#allocation2 + $0x20] sm:$0x1] %v441_v35  ;;  %v696_v42 = vld [vmem:[#allocation2] sm:$0xe] }
  0x26   : > { %2692 = vmatprep.subr.bf16.mxu0 %v2875_v2  ;;  %471 = vst [vmem:[#allocation2 + $0x1c] sm:$0x1] %v470_v38  ;;  %v3213_v46 = vld [vmem:[#allocation2] sm:$0xf]  ;;  %v688_v47 = vld [vmem:[#allocation2 + $0x4] sm:$0x1] }
  0x27   : > { %v411_v48 = vmax.f32 %v403_v43, 0.0  ;;  %v412_v49 = vmax.f32 %v404_v45, 0.0  ;;  %v2395_v53 = vcombine.low %v696_v42, %v688_v47  ;;  %v2387_v57 = vcombine.low %v3213_v46, %v688_v47  ;;  %v653_v45 = vld [vmem:[#allocation2 + $0x24] sm:$0x1] }
  0x29   : > { %v2556_v61 = vpack.c.bf16 %v411_v48, %v411_v48  ;;  %v873_v1 = vrot.slane %v2395_v53, 1  ;;  %v794_v6 = vshrl.u32 %v2387_v57, 16  ;;  %v2557_v7 = vpack.c.bf16 %v412_v49, %v412_v49  ;;  %v2888_v48 = vld [vmem:[%s3614_s3 + $0x1d0] sm:$0xff]  }
  0x2a   : > { %v704_v50 = vld [vmem:[#allocation2 + $0x8] sm:$0xf]  ;;  %v3215_v52 = vld [vmem:[#allocation2 + $0xc] sm:$0x1]  ;;  %v796_v11 = vshll.u32 %v2387_v57, 16 }
  0x2b   : > { %v705_v51 = vld [vmem:[#allocation2 + $0x10] sm:$0xf]  ;;  %v3217_v54 = vld [vmem:[#allocation2 + $0x14] sm:$0x1]  ;;  %v2403_v55 = vcombine.low %v704_v50, %v3215_v52  ;;  %v689_v59 = vld [vmem:[#allocation2 + $0xc] sm:$0x1] }
  0x2c   : > { %v2438_v56 = vcombine.low %v704_v50, %v705_v51  ;;  %v2404_v58 = vcombine.low %v705_v51, %v3217_v54  ;;  %v697_v60 = vld [vmem:[#allocation2 + $0x8] sm:$0xe]  ;;  %v568_v15 = vshrl.u32 %v2556_v61, 16  ;;  %v571_v16 = vshll.u32 %v2556_v61, 16  ;;  %v644_v22 = vld [vmem:[#allocation2 + $0x18] sm:$0xf] }
  0x2d   : > { %v922_v62 = vshrl.u32 %v2403_v55, 16  ;;  %v924_v63 = vshll.u32 %v2403_v55, 16  ;;  %v2396_v0 = vcombine.low %v697_v60, %v689_v59  ;;  %v3222_v2 = vld [vmem:[#allocation2 + $0x8] sm:$0xf]  ;;  %v798_v20 = vrot.slane %v796_v11, 1  ;;  %v2878_v50 = vld [vmem:[%s3614_s3 + $0x100] sm:$0xff]  }
  0x2e   : > { %1930 = vmatprep.mubr.bf16.mxu1 %v2438_v56  ;;  %v929_v4 = vshrl.u32 %v2404_v58, 16  ;;  %v931_v5 = vshll.u32 %v2404_v58, 16  ;;  %v2388_v10 = vcombine.low %v3222_v2, %v689_v59  ;;  %v647_v23 = vld [vmem:[#allocation2 + $0x1c] sm:$0x1]  ;;  %v3234_v24 = vld [vmem:[#allocation2 + $0x10] sm:$0xf]  ;;  %v2581_v55 = vunpack.c.h.bf16 %v2607_v17 }
  0x2f   : > { %v926_v8 = vrot.slane %v924_v63, 1  ;;  %v874_v9 = vrot.slane %v2396_v0, 1  ;;  %v570_v27 = vrot.slane %v568_v15, 7  ;;  %v576_v28 = vshrl.u32 %v2557_v7, 16  ;;  %v3238_v29 = vld [vmem:[#allocation2 + $0x14] sm:$0x1] }
  0x30   : > { %v933_v12 = vrot.slane %v931_v5, 1  ;;  %v801_v21 = vshrl.u32 %v2388_v10, 16  ;;  %v803_v26 = vshll.u32 %v2388_v10, 16  ;;  %v799_v30 = vor.u32 %v798_v20, %v794_v6  ;;  %v3243_v35 = vld [vmem:[#allocation2 + $0x10] sm:$0xe]  ;;  %v2887_v61 = vld [vmem:[%s3614_s3 + $0x148] sm:$0xff]  }
  0x31   : > { %v3232_v18 = vor.u32 %v926_v8, %v922_v62  ;;  %v2437_v19 = vcombine.low %v873_v1, %v874_v9  ;;  %v579_v34 = vshll.u32 %v2557_v7, 16  ;;  %v573_v40 = vor.u32 %v571_v16, %v570_v27  ;;  %v650_v42 = vld [vmem:[#allocation2 + $0x20] sm:$0xf]  ;;  %v443_v56 = vld [vmem:[#allocation2 + $0x28] sm:$0x1]  ;;  %v2890_v62 = vld [vmem:[%s3614_s3 + $0x190] sm:$0xff]  }
  0x32   : > { %v3236_v25 = vor.u32 %v933_v12, %v929_v4  ;;  %v805_v39 = vrot.slane %v803_v26, 1  ;;  %v574_v41 = vrot.slane %v570_v27, 4  ;;  %v578_v43 = vrot.slane %v576_v28, 7  ;;  %v446_v63 = vld [vmem:[#allocation2 + $0x30] sm:$0x1]  ;;  %v2889_v11 = vld [vmem:[%s3614_s3 + $0x108] sm:$0xff]  }
  0x33   : > { %1931 = vmatmul.mubr.bf16.vlgmr.msra.gmra.mrb[0].mxu1 %v2437_v19  ;;  %v3249_v47 = vcombine.low %v3234_v24, %v3238_v29  ;;  %v645_v51 = vsel %vm3184_vm6, %v573_v40, %v644_v22  ;;  %v2435_v57 = vcombine.low %v3213_v46, %v3222_v2  ;;  %v2397_v60 = vcombine.low %v3243_v35, %v3238_v29  ;;  %v2892_v46 = vld [vmem:[%s3614_s3 + $0x1d8] sm:$0xff]   ;;  %v475_v5 = vld [vmem:[#allocation2 + $0x2c] sm:$0x1]  ;;  %v478_v6 = vld [vmem:[#allocation2 + $0x34] sm:$0x1] }
  0x34   : > { %v2439_v38 = vcombine.low %v3232_v18, %v3236_v25  ;;  %2733 = vmatpush3.bf16.msra.mxu1 %v2872_v13  ;;  %v806_v49 = vor.u32 %v805_v39, %v801_v21  ;;  %v648_v53 = vsel %vm3140_vm2, %v574_v41, %v647_v23  ;;  %v581_v58 = vor.u32 %v579_v34, %v578_v43  ;;  %v2895_v12 = vld [vmem:[%s3614_s3 + $0x198] sm:$0xff]   ;;  %v2891_v17 = vld [vmem:[%s3614_s3 + $0x150] sm:$0xff]   ;;  %v2904_v19 = vld [vmem:[%s3614_s3 + $0x1e0] sm:$0xff]  }
  0x35   : > { %2734 = vmatprep.subr.bf16.mxu1 %v2876_v14  ;;  %v582_v59 = vrot.slane %v578_v43, 4  ;;  %646 = vst [vmem:[#allocation2 + $0x18] sm:$0xf] %v645_v51  ;;  %649 = vst [vmem:[#allocation2 + $0x1c] sm:$0x1] %v648_v53  ;;  %v391_v1 = vmul.f32 %v2580_v36, %v3132_v31  ;;  %v392_v2 = vmul.f32 %v2581_v55, %v3132_v31  ;;  %v444_v4 = vsel %vm3140_vm2, 0, %v443_v56 }
  0x36   : > { %v2436_v0 = vcombine.low %v799_v30, %v806_v49  ;;  %v651_v7 = vsel %vm3184_vm6, %v581_v58, %v650_v42  ;;  %v810_v9 = vshll.u32 %v3249_v47, 16  ;;  %445 = vst [vmem:[#allocation2 + $0x28] sm:$0x1] %v444_v4  ;;  %v447_v10 = vsel %vm3140_vm2, 0, %v446_v63  ;;  %v2894_v39 = vld [vmem:[%s3614_s3 + $0x110] sm:$0xff]   ;;  %v2903_v41 = vld [vmem:[%s3614_s3 + $0x158] sm:$0xff]  }
  0x37   : > { %v654_v8 = vsel %vm3140_vm2, %v582_v59, %v653_v45  ;;  %652 = vst [vmem:[#allocation2 + $0x20] sm:$0xf] %v651_v7  ;;  %v405_v13 = vadd.f32 %v3137_v32, %v391_v1  ;;  %v406_v14 = vadd.f32 %v3137_v32, %v392_v2  ;;  %448 = vst [vmem:[#allocation2 + $0x30] sm:$0x1] %v447_v10  ;;  %v476_v15 = vsel %vm3157_vm4, 0, %v475_v5  ;;  %v2905_v56 = vld [vmem:[%s3614_s3 + $0x118] sm:$0xff]  }
  0x38   : > { %2735 = vmatpush3.bf16.msra.mxu1 %v2879_v33  ;;  %1865 = vmatprep.mubr.bf16.mxu0 %v2436_v0  ;;  %655 = vst [vmem:[#allocation2 + $0x24] sm:$0x1] %v654_v8  ;;  %v479_v16 = vsel %vm3157_vm4, 0, %v478_v6  ;;  %477 = vst [vmem:[#allocation2 + $0x2c] sm:$0x1] %v476_v15  ;;  %v875_v26 = vrot.slane %v2397_v60, 1 }
  0x39   : > { %2736 = vmatprep.subr.bf16.mxu1 %v2888_v48  ;;  %1866 = vmatmul.mubr.bf16.vlgmr.msra.gmra.mrb[0].mxu0 %v2435_v57  ;;  %480 = vst [vmem:[#allocation2 + $0x34] sm:$0x1] %v479_v16  ;;  %v413_v20 = vmax.f32 %v405_v13, 0.0  ;;  %v414_v21 = vmax.f32 %v406_v14, 0.0  ;;  %v808_v27 = vshrl.u32 %v3249_v47, 16  ;;  %v812_v36 = vrot.slane %v810_v9, 1 }
  0x3a   : > { %2693 = vmatpush3.bf16.msra.mxu0 %v2878_v50  ;;  %v2906_v47 = vld [vmem:[%s3614_s3 + $0x1a0] sm:$0xff]   ;;  %v2908_v48 = vld [vmem:[%s3614_s3 + $0x1e8] sm:$0xff]   ;;  %v2608_v10 = vld [vmem:[%s3119_s29 + $0x18] sm:$0xff]  }
  0x3b   : > { %2694 = vmatprep.subr.bf16.mxu0 %v2887_v61  ;;  %v2558_v28 = vpack.c.bf16 %v413_v20, %v413_v20  ;;  %v2559_v29 = vpack.c.bf16 %v414_v21, %v414_v21  ;;  %v813_v63 = vor.u32 %v812_v36, %v808_v27  ;;  %v2907_v7 = vld [vmem:[%s3614_s3 + $0x160] sm:$0xff]   ;;  %v2911_v8 = vld [vmem:[%s3614_s3 + $0x1a8] sm:$0xff]  }
  0x3c   : > { %2737 = vmatpush3.bf16.msra.mxu1 %v2890_v62  ;;  %v3303_v22 = vld [vmem:[#allocation2 + $0x18] sm:$0xf]  ;;  %v691_v30 = vld [vmem:[#allocation2 + $0x1c] sm:$0x1]  ;;  %v452_v16 = vld [vmem:[#allocation2 + $0x40] sm:$0x1] }
  0x3d   : > { %2738 = vmatprep.subr.bf16.mxu1 %v2892_v46  ;;  %v3305_v23 = vld [vmem:[#allocation2 + $0x18] sm:$0xf]  ;;  %v584_v40 = vshrl.u32 %v2558_v28, 16  ;;  %v587_v43 = vshll.u32 %v2558_v28, 16  ;;  %v592_v45 = vshrl.u32 %v2559_v29, 16  ;;  %v595_v60 = vshll.u32 %v2559_v29, 16 }
  0x3e   : > { %v699_v33 = vld [vmem:[#allocation2 + $0x18] sm:$0xe]  ;;  %v2390_v34 = vcombine.low %v3305_v23, %v691_v30  ;;  %2695 = vmatpush3.bf16.msra.mxu0 %v2889_v11  ;;  %v3315_v42 = vld [vmem:[#allocation2 + $0x20] sm:$0xf]  ;;  %v656_v53 = vld [vmem:[#allocation2 + $0x28] sm:$0xf]  ;;  %v2444_v20 = vcombine.low %v3234_v24, %v3305_v23  ;;  %v2584_v24 = vunpack.c.l.bf16 %v2608_v10  ;;  %v2585_v23 = vunpack.c.h.bf16 %v2608_v10 }
  0x3f   : > { %v2398_v35 = vcombine.low %v699_v33, %v691_v30  ;;  %2696 = vmatprep.subr.bf16.mxu0 %v2891_v17  ;;  %v2447_v49 = vcombine.low %v3303_v22, %v3315_v42  ;;  %v659_v55 = vld [vmem:[#allocation2 + $0x2c] sm:$0x1]  ;;  %v586_v58 = vrot.slane %v584_v40, 7  ;;  %v594_v59 = vrot.slane %v592_v45, 7  ;;  %v662_v61 = vld [vmem:[#allocation2 + $0x30] sm:$0xf] }
  0x40   : > { %2739 = vmatpush3.bf16.msra.mxu1 %v2895_v12  ;;  %v815_v51 = vshrl.u32 %v2390_v34, 16  ;;  %v817_v57 = vshll.u32 %v2390_v34, 16  ;;  %v665_v0 = vld [vmem:[#allocation2 + $0x34] sm:$0x1]  ;;  %v3328_v46 = vld [vmem:[#allocation2 + $0x20] sm:$0xf]  ;;  %v393_v40 = vmul.f32 %v2584_v24, %v3132_v31 }
  0x41   : > { %2740 = vmatprep.subr.bf16.mxu1 %v2904_v19  ;;  %v876_v50 = vrot.slane %v2398_v35, 1  ;;  %1938 = vmatprep.mubr.bf16.mxu1 %v2447_v49  ;;  %v3330_v1 = vld [vmem:[#allocation2 + $0x24] sm:$0x1]  ;;  %v589_v4 = vor.u32 %v587_v43, %v586_v58  ;;  %v590_v5 = vrot.slane %v586_v58, 4  ;;  %v597_v6 = vor.u32 %v595_v60, %v594_v59  ;;  %v449_v11 = vld [vmem:[#allocation2 + $0x38] sm:$0x1] }
  0x42   : > { %2697 = vmatpush3.bf16.msra.mxu0 %v2894_v39  ;;  %v819_v2 = vrot.slane %v817_v57, 1  ;;  %v598_v9 = vrot.slane %v594_v59, 4  ;;  %v481_v17 = vld [vmem:[#allocation2 + $0x3c] sm:$0x1]  ;;  %v484_v19 = vld [vmem:[#allocation2 + $0x44] sm:$0x1] }
  0x43   : > { %v2446_v62 = vcombine.low %v875_v26, %v876_v50  ;;  %2698 = vmatprep.subr.bf16.mxu0 %v2903_v41  ;;  %v657_v13 = vsel %vm3184_vm6, %v589_v4, %v656_v53  ;;  %v660_v14 = vsel %vm3140_vm2, %v590_v5, %v659_v55  ;;  %v663_v15 = vsel %vm3184_vm6, %v597_v6, %v662_v61  ;;  %v2910_v27 = vld [vmem:[%s3614_s3 + $0x120] sm:$0xff]   ;;  %v2920_v33 = vld [vmem:[%s3614_s3 + $0x1f0] sm:$0xff]   ;;  %v2919_v39 = vld [vmem:[%s3614_s3 + $0x168] sm:$0xff]  }
  0x44   : > { %2741 = vmatpush3.bf16.msra.mxu1 %v2906_v47  ;;  %v820_v12 = vor.u32 %v819_v2, %v815_v51  ;;  %658 = vst [vmem:[#allocation2 + $0x28] sm:$0xf] %v657_v13  ;;  %661 = vst [vmem:[#allocation2 + $0x2c] sm:$0x1] %v660_v14  ;;  %v666_v21 = vsel %vm3140_vm2, %v598_v9, %v665_v0  ;;  %v2391_v26 = vcombine.low %v3328_v46, %v3330_v1  ;;  %v700_v29 = vld [vmem:[#allocation2 + $0x20] sm:$0xe] }
  0x45   : > { %1939 = vmatmul.mubr.bf16.gmra.mrb[4].mxu1 %v2446_v62  ;;  %2742 = vmatprep.subr.bf16.mxu1 %v2908_v48  ;;  %664 = vst [vmem:[#allocation2 + $0x30] sm:$0xf] %v663_v15  ;;  %667 = vst [vmem:[#allocation2 + $0x34] sm:$0x1] %v666_v21  ;;  %v450_v30 = vsel %vm3140_vm2, 0, %v449_v11  ;;  %v453_v34 = vsel %vm3140_vm2, 0, %v452_v16  ;;  %v394_v41 = vmul.f32 %v2585_v23, %v3132_v31 }
  0x46   : > { %2699 = vmatpush3.bf16.msra.mxu0 %v2905_v56  ;;  %v2445_v28 = vcombine.low %v813_v63, %v820_v12  ;;  %451 = vst [vmem:[#allocation2 + $0x38] sm:$0x1] %v450_v30  ;;  %v482_v35 = vsel %vm3157_vm4, 0, %v481_v17  ;;  %v485_v36 = vsel %vm3157_vm4, 0, %v484_v19  ;;  %454 = vst [vmem:[#allocation2 + $0x40] sm:$0x1] %v453_v34  ;;  %v407_v48 = vadd.f32 %v3137_v32, %v393_v40 }
  0x47   : > { %2700 = vmatprep.subr.bf16.mxu0 %v2907_v7  ;;  %483 = vst [vmem:[#allocation2 + $0x3c] sm:$0x1] %v482_v35  ;;  %486 = vst [vmem:[#allocation2 + $0x44] sm:$0x1] %v485_v36  ;;  %v2921_v43 = vld [vmem:[%s3614_s3 + $0x128] sm:$0xff]   ;;  %v2922_v45 = vld [vmem:[%s3614_s3 + $0x1b0] sm:$0xff]   ;;  %v2399_v49 = vcombine.low %v700_v29, %v3330_v1  ;;  %v408_v50 = vadd.f32 %v3137_v32, %v394_v41 }
  0x48   : > { %2743 = vmatpush3.bf16.msra.mxu1 %v2911_v8  ;;  %1873 = vmatprep.mubr.bf16.mxu0 %v2445_v28  ;;  %v824_v47 = vshll.u32 %v2391_v26, 16  ;;  %v2923_v31 = vld [vmem:[%s3614_s3 + $0x170] sm:$0xff]   ;;  %v2924_v51 = vld [vmem:[%s3614_s3 + $0x1f8] sm:$0xff]   ;;  %v822_v61 = vshrl.u32 %v2391_v26, 16  ;;  %v415_v62 = vmax.f32 %v407_v48, 0.0  ;;  %v3403_v15 = vld [vmem:[%s3614_s3 + $0x200] sm:$0xff]  }
  0x49   : > { %2744 = vmatprep.subr.bf16.mxu1 %v2920_v33  ;;  %1874 = vmatmul.mubr.bf16.gmra.mrb[4].mxu0 %v2444_v20  ;;  %v2926_v63 = vld [vmem:[%s3614_s3 + $0x130] sm:$0xff]   ;;  %v877_v1 = vrot.slane %v2399_v49, 1  ;;  %v416_v2 = vmax.f32 %v408_v50, 0.0  ;;  %v2927_v7 = vld [vmem:[%s3614_s3 + $0x1b8] sm:$0xff]  }
  0x4a   : > { %2701 = vmatpush3.bf16.msra.mxu0 %v2910_v27  ;;  %v826_v32 = vrot.slane %v824_v47, 1  ;;  %v2560_v6 = vpack.c.bf16 %v415_v62, %v415_v62  ;;  %v2930_v10 = vld [vmem:[%s3614_s3 + $0x178] sm:$0xff]   ;;  %v3414_v35 = vld [vmem:[#allocation2 + $0x10] sm:$0xf] }
  0x4b   : > { %2702 = vmatprep.subr.bf16.mxu0 %v2919_v39  ;;  %v3385_v53 = vld [vmem:[#allocation2 + $0x28] sm:$0xf]  ;;  %v693_v58 = vld [vmem:[#allocation2 + $0x2c] sm:$0x1]  ;;  %v2561_v9 = vpack.c.bf16 %v416_v2, %v416_v2  ;;  %v2933_v30 = vld [vmem:[%s3614_s3 + $0x138] sm:$0xff]  }
  0x4c   : > { %2745 = vmatpush3.bf16.msra.mxu1 %v2922_v45  ;;  %v3387_v55 = vld [vmem:[#allocation2 + $0x30] sm:$0xf]  ;;  %v685_v57 = vld [vmem:[#allocation2 + $0x28] sm:$0xf]  ;;  %v827_v11 = vor.u32 %v826_v32, %v822_v61  ;;  %v600_v13 = vshrl.u32 %v2560_v6, 16  ;;  %v603_v14 = vshll.u32 %v2560_v6, 16 }
  0x4d   : > { %v2456_v56 = vcombine.low %v3385_v53, %v3387_v55  ;;  %2746 = vmatprep.subr.bf16.mxu1 %v2924_v51  ;;  %v701_v59 = vld [vmem:[#allocation2 + $0x28] sm:$0xe]  ;;  %v2392_v60 = vcombine.low %v685_v57, %v693_v58  ;;  %v608_v17 = vshrl.u32 %v2561_v9, 16  ;;  %v611_v19 = vshll.u32 %v2561_v9, 16  ;;  %v668_v20 = vld [vmem:[#allocation2 + $0x38] sm:$0xf] }
  0x4e   : > { %2703 = vmatpush3.bf16.msra.mxu0 %v2921_v43  ;;  %v2400_v0 = vcombine.low %v701_v59, %v693_v58  ;;  %v671_v21 = vld [vmem:[#allocation2 + $0x3c] sm:$0x1]  ;;  %v602_v27 = vrot.slane %v600_v13, 7  ;;  %v674_v28 = vld [vmem:[#allocation2 + $0x40] sm:$0xf]  ;;  %v2453_v33 = vcombine.low %v3328_v46, %v685_v57 }
  0x4f   : > { %1946 = vmatprep.mubr.bf16.mxu1 %v2456_v56  ;;  %2704 = vmatprep.subr.bf16.mxu0 %v2923_v31  ;;  %v829_v4 = vshrl.u32 %v2392_v60, 16  ;;  %v831_v5 = vshll.u32 %v2392_v60, 16  ;;  %v677_v29 = vld [vmem:[#allocation2 + $0x44] sm:$0x1]  ;;  %v3405_v24 = vld [vmem:[#allocation2 + $0x30] sm:$0xf] }
  0x50   : > { %v878_v8 = vrot.slane %v2400_v0, 1  ;;  %2747 = vmatpush3.bf16.msra.mxu1 %v2927_v7  ;;  %v3407_v23 = vld [vmem:[#allocation2 + $0x34] sm:$0x1]  ;;  %v610_v34 = vrot.slane %v608_v17, 7  ;;  %v605_v39 = vor.u32 %v603_v14, %v602_v27  ;;  %v606_v40 = vrot.slane %v602_v27, 4 }
  0x51   : > { %v833_v12 = vrot.slane %v831_v5, 1  ;;  %2808 = vmatprep.subr.bf16.mxu1 %v3403_v15  ;;  %v3416_v41 = vld [vmem:[#allocation2 + $0x18] sm:$0xf]  ;;  %v3418_v43 = vld [vmem:[#allocation2 + $0x14] sm:$0x1]  ;;  %v2393_v57 = vcombine.low %v3405_v24, %v3407_v23 }
  0x52   : > { %2705 = vmatpush3.bf16.msra.mxu0 %v2926_v63  ;;  %v2455_v16 = vcombine.low %v877_v1, %v878_v8  ;;  %v613_v45 = vor.u32 %v611_v19, %v610_v34  ;;  %v614_v47 = vrot.slane %v610_v34, 4  ;;  %v3420_v48 = vld [vmem:[#allocation2 + $0x1c] sm:$0x1]  ;;  %v2419_v31 = vcombine.low %v3414_v35, %v3418_v43  ;;  %v720_v59 = vld [vmem:[#allocation2 + $0x8] sm:$0xe] }
  0x53   : > { %2706 = vmatprep.subr.bf16.mxu0 %v2930_v10  ;;  %v834_v26 = vor.u32 %v833_v12, %v829_v4  ;;  %v669_v46 = vsel %vm3184_vm6, %v605_v39, %v668_v20  ;;  %v672_v49 = vsel %vm3140_vm2, %v606_v40, %v671_v21  ;;  %v2420_v50 = vcombine.low %v3416_v41, %v3420_v48  ;;  %v721_v61 = vld [vmem:[#allocation2 + $0x10] sm:$0xe]  ;;  %v3437_v32 = vld [vmem:[#allocation2 + $0x20] sm:$0xf]  ;;  %v3439_v62 = vld [vmem:[#allocation2 + $0x28] sm:$0xf] }
  0x54   : > { %1947 = vmatmul.mubr.bf16.gmra.mrb[8].mxu1 %v2455_v16  ;;  %670 = vst [vmem:[#allocation2 + $0x38] sm:$0xf] %v669_v46  ;;  %673 = vst [vmem:[#allocation2 + $0x3c] sm:$0x1] %v672_v49  ;;  %v675_v51 = vsel %vm3184_vm6, %v613_v45, %v674_v28  ;;  %v678_v56 = vsel %vm3140_vm2, %v614_v47, %v677_v29  ;;  %v1052_v58 = vshll.u32 %v2419_v31, 16  ;;  %v838_v2 = vshll.u32 %v2393_v57, 16 }
  0x55   : > { %v2454_v36 = vcombine.low %v827_v11, %v834_v26  ;;  %676 = vst [vmem:[#allocation2 + $0x40] sm:$0xf] %v675_v51  ;;  %679 = vst [vmem:[#allocation2 + $0x44] sm:$0x1] %v678_v56  ;;  %v1059_v60 = vshll.u32 %v2420_v50, 16  ;;  %v1050_v4 = vshrl.u32 %v2419_v31, 16  ;;  %v2411_v10 = vcombine.low %v720_v59, %v3215_v52 }
  0x56   : > { %2707 = vmatpush3.bf16.msra.mxu0 %v2933_v30  ;;  %v702_v63 = vld [vmem:[#allocation2 + $0x30] sm:$0xe]  ;;  %v3441_v0 = vld [vmem:[#allocation2 + $0x24] sm:$0x1]  ;;  %v3443_v1 = vld [vmem:[#allocation2 + $0x2c] sm:$0x1]  ;;  %v2412_v11 = vcombine.low %v721_v61, %v3217_v54 }
  0x57   : > { %2784 = vmatprep.subr.bf16.mxu0 %v3403_v15  ;;  %1881 = vmatprep.mubr.bf16.mxu0 %v2454_v36  ;;  %v1054_v5 = vrot.slane %v1052_v58, 1  ;;  %v2421_v6 = vcombine.low %v3437_v32, %v3441_v0  ;;  %v1057_v7 = vshrl.u32 %v2420_v50, 16  ;;  %v1061_v8 = vrot.slane %v1059_v60, 1  ;;  %v3457_v13 = vld [vmem:[#allocation2 + $0x1c] sm:$0x1] }
  0x58   : > { %1882 = vmatmul.mubr.bf16.gmra.mrb[8].mxu0 %v2453_v33  ;;  %v2422_v9 = vcombine.low %v3439_v62, %v3443_v1  ;;  %v2401_v12 = vcombine.low %v702_v63, %v3407_v23  ;;  %v836_v17 = vshrl.u32 %v2393_v57, 16  ;;  %v840_v21 = vrot.slane %v838_v2, 1  ;;  %v3465_v34 = vld [vmem:[%s347_s23] sm:$0xf]  ;;  %v715_v40 = vld [vmem:[#allocation2 + $0x24] sm:$0x1] }
  0x59   : > { %v1055_v52 = vor.u32 %v1054_v5, %v1050_v4  ;;  %v1066_v26 = vshll.u32 %v2421_v6, 16  ;;  %v1062_v29 = vor.u32 %v1061_v8, %v1057_v7  ;;  %v1001_v30 = vrot.slane %v2411_v10, 1  ;;  %v3467_v49 = vld [vmem:[#allocation2 + $0x30] sm:$0xf]  ;;  %v3475_v58 = vld [vmem:[#allocation2 + $0x34] sm:$0x1] }
  0x5a   : > { %v1073_v23 = vshll.u32 %v2422_v9, 16  ;;  %v1002_v33 = vrot.slane %v2412_v11, 1  ;;  %v879_v39 = vrot.slane %v2401_v12, 1  ;;  %v1064_v31 = vshrl.u32 %v2421_v6, 16  ;;  %v722_v5 = vld [vmem:[#allocation2 + $0x18] sm:$0xe] }
  0x5b   : > { %v3459_v14 = vld [vmem:[#allocation2 + $0x38] sm:$0xf]  ;;  %v695_v20 = vld [vmem:[#allocation2 + $0x3c] sm:$0x1]  ;;  %v1071_v46 = vshrl.u32 %v2422_v9, 16  ;;  %v3471_v50 = vcombine.low %v3303_v22, %v3457_v13  ;;  %v1068_v56 = vrot.slane %v1066_v26, 1  ;;  %v841_v59 = vor.u32 %v840_v21, %v836_v17 }
  0x5c   : > { %v687_v16 = vld [vmem:[#allocation2 + $0x38] sm:$0xf]  ;;  %v3461_v19 = vld [vmem:[#allocation2 + $0x40] sm:$0xf]  ;;  %v2442_v61 = vcombine.low %v1055_v52, %v1062_v29  ;;  %v1075_v63 = vrot.slane %v1073_v23, 1  ;;  %v511_v6 = vshrl.u32 %v3465_v34, 16  ;;  %v2423_v22 = vcombine.low %v3467_v49, %v3475_v58 }
  0x5d   : > { %v2465_v54 = vcombine.low %v3459_v14, %v3461_v19  ;;  %v703_v27 = vld [vmem:[#allocation2 + $0x38] sm:$0xe]  ;;  %v2394_v28 = vcombine.low %v687_v16, %v695_v20  ;;  %v3477_v2 = vld [vmem:[#allocation2 + $0x3c] sm:$0x1]  ;;  %v723_v8 = vld [vmem:[#allocation2 + $0x20] sm:$0xe]  ;;  %v3485_v10 = vcombine.low %v3315_v42, %v715_v40  ;;  %v2462_v11 = vcombine.low %v3405_v24, %v687_v16 }
  0x5e   : > { %v2402_v36 = vcombine.low %v703_v27, %v695_v20  ;;  %v3473_v57 = vld [vmem:[#allocation2 + $0x38] sm:$0xf]  ;;  %v2440_v12 = vcombine.low %v1001_v30, %v1002_v33  ;;  %v455_v17 = vld [vmem:[#allocation2 + $0x48] sm:$0x1]  ;;  %v938_v20 = vshll.u32 %v3471_v50, 16  ;;  %v1069_v52 = vor.u32 %v1068_v56, %v1064_v31  ;;  %s2375_s23 = sshll.u32 %s3092_s9, 3 }
  0x5f   : > { %1954 = vmatprep.mubr.bf16.mxu1 %v2465_v54  ;;  %v843_v45 = vshrl.u32 %v2394_v28, 16  ;;  %v845_v47 = vshll.u32 %v2394_v28, 16  ;;  %v2424_v9 = vcombine.low %v3473_v57, %v3477_v2  ;;  %v1076_v26 = vor.u32 %v1075_v63, %v1071_v46  ;;  %v487_v54 = vld [vmem:[#allocation2 + $0x4c] sm:$0x1]  ;;  %v3491_v28 = vld [vmem:[#allocation2 + $0x34] sm:$0x1]  ;;  %s357_s25 = scalar_lea.vmem %s3618_s7, %s2375_s23  ;;  %s361_s10 = scalar_lea.vmem %s3619_s8, %s2375_s23 }
  0x60   : > { %v880_v51 = vrot.slane %v2402_v36, 1  ;;  %v3489_v27 = vld [vmem:[#allocation2 + $0x2c] sm:$0x1]  ;;  %v2413_v29 = vcombine.low %v722_v5, %v3457_v13  ;;  %v2414_v42 = vcombine.low %v723_v8, %v715_v40  ;;  %v1080_v23 = vshll.u32 %v2423_v22, 16 }
  0x61   : > { %v847_v60 = vrot.slane %v845_v47, 1  ;;  %v1087_v36 = vshll.u32 %v2424_v9, 16  ;;  %v456_v24 = vsel %vm3140_vm2, 0, %v455_v17  ;;  %v513_v16 = vrot.slane %v511_v6, 7  ;;  %v3518_v6 = vld [vmem:[#allocation2 + $0x3c] sm:$0x1] }
  0x62   : > { %v2464_v4 = vcombine.low %v879_v39, %v880_v51  ;;  %v945_v30 = vshll.u32 %v3485_v10, 16  ;;  %v2441_v33 = vcombine.low %v3414_v35, %v3416_v41  ;;  %457 = vst [vmem:[#allocation2 + $0x48] sm:$0x1] %v456_v24  ;;  %v488_v39 = vsel %vm3157_vm4, 0, %v487_v54  ;;  %v3525_v17 = vld [vmem:[#allocation2 + $0x40] sm:$0xf] }
  0x63   : > { %v848_v7 = vor.u32 %v847_v60, %v843_v45  ;;  %v514_v13 = vshll.u32 %v3465_v34, 16  ;;  %v2451_v40 = vcombine.low %v1069_v52, %v1076_v26  ;;  %v936_v45 = vshrl.u32 %v3471_v50, 16  ;;  %489 = vst [vmem:[#allocation2 + $0x4c] sm:$0x1] %v488_v39 }
  0x64   : > { %1955 = vmatmul.mubr.bf16.gmra.mrb[12].mxu1 %v2464_v4  ;;  %v940_v47 = vrot.slane %v938_v20, 1  ;;  %v3505_v31 = vcombine.low %v3385_v53, %v3489_v27  ;;  %v3509_v46 = vcombine.low %v3387_v55, %v3491_v28  ;;  %v1003_v35 = vrot.slane %v2413_v29, 1  ;;  %v724_v53 = vld [vmem:[#allocation2 + $0x28] sm:$0xe]  ;;  %v3527_v20 = vld [vmem:[#allocation2 + $0x44] sm:$0x1] }
  0x65   : > { %v2463_v21 = vcombine.low %v841_v59, %v848_v7  ;;  %2060 = vmatprep.mubr.bf16.mxu1 %v2442_v61  ;;  %v1004_v41 = vrot.slane %v2414_v42, 1  ;;  %v1078_v34 = vshrl.u32 %v2423_v22, 16  ;;  %v1082_v51 = vrot.slane %v1080_v23, 1  ;;  %v725_v61 = vld [vmem:[#allocation2 + $0x30] sm:$0xe] }
  0x66   : > { %v1085_v56 = vshrl.u32 %v2424_v9, 16  ;;  %v1089_v50 = vrot.slane %v1087_v36, 1  ;;  %v943_v59 = vshrl.u32 %v3485_v10, 16  ;;  %v947_v60 = vrot.slane %v945_v30, 1  ;;  %v2940_v7 = vld [vmem:[%s3614_s3 + $0x210] sm:$0xff]  }
  0x67   : > { %1889 = vmatprep.mubr.bf16.mxu0 %v2463_v21  ;;  %v516_v63 = vor.u32 %v514_v13, %v513_v16  ;;  %v517_v55 = vrot.slane %v513_v16, 4  ;;  %v952_v4 = vshll.u32 %v3505_v31, 16  ;;  %v959_v5 = vshll.u32 %v3509_v46, 16  ;;  %v3529_v21 = vld [vmem:[#allocation2 + $0x44] sm:$0x1] }
  0x68   : > { %1890 = vmatmul.mubr.bf16.gmra.mrb[12].mxu0 %v2462_v11  ;;  %v2449_v8 = vcombine.low %v1003_v35, %v1004_v41  ;;  %v1083_v22 = vor.u32 %v1082_v51, %v1078_v34  ;;  %v1090_v9 = vor.u32 %v1089_v50, %v1085_v56  ;;  %v2415_v10 = vcombine.low %v724_v53, %v3489_v27  ;;  %v727_v16 = vld [vmem:[#allocation2 + $0x40] sm:$0xe]  ;;  %v749_v35 = vld [vmem:[#allocation2 + $0x30] sm:$0xe]  ;;  %v750_v41 = vld [vmem:[#allocation2 + $0x38] sm:$0xe] }
  0x69   : > { %1995 = vmatprep.mubr.bf16.mxu0 %v2440_v12  ;;  %v2416_v11 = vcombine.low %v725_v61, %v3491_v28  ;;  %v521_v12 = vld [vmem:[#allocation2 + $0x48] sm:$0xf]  ;;  %v2450_v52 = vcombine.low %v3437_v32, %v3439_v62  ;;  %v941_v26 = vor.u32 %v940_v47, %v936_v45  ;;  %v948_v54 = vor.u32 %v947_v60, %v943_v59  ;;  %v726_v62 = vld [vmem:[#allocation2 + $0x38] sm:$0xe] }
  0x6a   : > { %v522_v27 = vsel %vm3184_vm6, %v516_v63, %v521_v12  ;;  %v524_v28 = vld [vmem:[#allocation2 + $0x4c] sm:$0x1]  ;;  %v3540_v29 = vcombine.low %v3459_v14, %v3518_v6  ;;  %v950_v42 = vshrl.u32 %v3505_v31, 16  ;;  %v954_v25 = vrot.slane %v952_v4, 1  ;;  %v746_v61 = vld [vmem:[#allocation2 + $0x18] sm:$0xe] }
  0x6b   : > { %523 = vst [vmem:[#allocation2 + $0x48] sm:$0xf] %v522_v27  ;;  %v525_v18 = vsel %vm3140_vm2, %v517_v55, %v524_v28  ;;  %v961_v32 = vrot.slane %v959_v5, 1  ;;  %v3554_v14 = vcombine.low %v3461_v19, %v3529_v21  ;;  %v2460_v37 = vcombine.low %v1083_v22, %v1090_v9  ;;  %v2950_v34 = vld [vmem:[%s3614_s3 + $0x228] sm:$0xff]   ;;  %v751_v9 = vld [vmem:[#allocation2 + $0x40] sm:$0xe] }
  0x6c   : > { %2061 = vmatmul.mubr.bf16.vlgmr.msra.gmra.mrb[16].mxu1 %v2441_v33  ;;  %526 = vst [vmem:[#allocation2 + $0x4c] sm:$0x1] %v525_v18  ;;  %v1005_v23 = vrot.slane %v2415_v10, 1  ;;  %v1006_v36 = vrot.slane %v2416_v11, 1  ;;  %v2448_v24 = vcombine.low %v941_v26, %v948_v54  ;;  %v2417_v30 = vcombine.low %v726_v62, %v3518_v6  ;;  %v2947_v33 = vld [vmem:[%s3614_s3 + $0x220] sm:$0xff]  }
  0x6d   : > { %2816 = vmatpush3.bf16.msra.mxu1 %v3403_v15  ;;  %2068 = vmatprep.mubr.bf16.mxu1 %v2451_v40  ;;  %v955_v39 = vor.u32 %v954_v25, %v950_v42  ;;  %v966_v40 = vshll.u32 %v3540_v29, 16  ;;  %v973_v45 = vshll.u32 %v3554_v14, 16  ;;  %v2418_v31 = vcombine.low %v727_v16, %v3529_v21  ;;  %v747_v42 = vld [vmem:[#allocation2 + $0x20] sm:$0xe] }
  0x6e   : > { %2809 = vmatprep.subr.bf16.mxu1 %v2934_v44  ;;  %v2458_v47 = vcombine.low %v1005_v23, %v1006_v36  ;;  %v1007_v50 = vrot.slane %v2417_v30, 1  ;;  %v2431_v4 = vcombine.low %v749_v35, %v3475_v58  ;;  %v2432_v5 = vcombine.low %v750_v41, %v3477_v2  ;;  %v2956_v2 = vld [vmem:[%s3614_s3 + $0x230] sm:$0xff]  }
  0x6f   : > { %v1008_v63 = vrot.slane %v2418_v31, 1  ;;  %v968_v55 = vrot.slane %v966_v40, 1  ;;  %v975_v22 = vrot.slane %v973_v45, 1  ;;  %v2428_v11 = vcombine.low %v746_v61, %v3420_v48  ;;  %v748_v48 = vld [vmem:[#allocation2 + $0x28] sm:$0xe] }
  0x70   : > { %1996 = vmatmul.mubr.bf16.vlgmr.msra.gmra.mrb[16].mxu0 %v2439_v38  ;;  %v957_v38 = vshrl.u32 %v3509_v46, 16  ;;  %v2459_v46 = vcombine.low %v3467_v49, %v3473_v57  ;;  %v964_v49 = vshrl.u32 %v3540_v29, 16  ;;  %v745_v57 = vld [vmem:[#allocation2 + $0x10] sm:$0xe]  ;;  %v1133_v26 = vrot.slane %v2431_v4, 1 }
  0x71   : > { %2785 = vmatpush3.bf16.msra.mxu0 %v3403_v15  ;;  %2817 = vmatpush3.bf16.msra.mxu1 %v2934_v44  ;;  %v2425_v15 = vcombine.low %v3525_v17, %v3527_v20  ;;  %v2427_v10 = vcombine.low %v745_v57, %v3418_v43  ;;  %v1134_v54 = vrot.slane %v2432_v5, 1  ;;  %v2433_v28 = vcombine.low %v751_v9, %v3527_v20  ;;  %v2959_v20 = vld [vmem:[%s3614_s3 + $0x238] sm:$0xff]  }
  0x72   : > { %2786 = vmatprep.subr.bf16.mxu0 %v2934_v44  ;;  %2810 = vmatprep.subr.bf16.mxu1 %v2940_v7  ;;  %v962_v19 = vor.u32 %v961_v32, %v957_v38  ;;  %v752_v12 = vld [vmem:[#allocation2 + $0x48] sm:$0xe]  ;;  %v969_v29 = vor.u32 %v968_v55, %v964_v49  ;;  %v1130_v38 = vrot.slane %v2428_v11, 1  ;;  %v2429_v62 = vcombine.low %v747_v42, %v3441_v0 }
  0x73   : > { %2003 = vmatprep.mubr.bf16.mxu0 %v2449_v8  ;;  %v1094_v13 = vshll.u32 %v2425_v15, 16  ;;  %v744_v51 = vld [vmem:[#allocation2 + $0x4c] sm:$0x1]  ;;  %v1092_v56 = vshrl.u32 %v2425_v15, 16  ;;  %v971_v8 = vshrl.u32 %v3554_v14, 16  ;;  %v1129_v25 = vrot.slane %v2427_v10, 1 }
  0x74   : > { %2069 = vmatmul.mubr.bf16.gmra.mrb[20].mxu1 %v2450_v52  ;;  %v2457_v59 = vcombine.low %v955_v39, %v962_v19  ;;  %v2467_v52 = vcombine.low %v1007_v50, %v1008_v63  ;;  %v2434_v18 = vcombine.low %v752_v12, %v744_v51  ;;  %v2461_v15 = vcombine.low %v1133_v26, %v1134_v54 }
  0x75   : > { %2787 = vmatpush3.bf16.msra.mxu0 %v2934_v44  ;;  %2818 = vmatpush3.bf16.msra.mxu1 %v2940_v7  ;;  %v3565_v44 = vld [vmem:[#allocation2 + $0x48] sm:$0xf]  ;;  %v1096_v53 = vrot.slane %v1094_v13, 1  ;;  %v976_v43 = vor.u32 %v975_v22, %v971_v8  ;;  %v2430_v14 = vcombine.low %v748_v48, %v3443_v1  ;;  %v1135_v23 = vrot.slane %v2433_v28, 1 }
  0x76   : > { %2788 = vmatprep.subr.bf16.mxu0 %v2940_v7  ;;  %2811 = vmatprep.subr.bf16.mxu1 %v2943_v3  ;;  %v2426_v60 = vcombine.low %v3565_v44, %v744_v51  ;;  %v1136_v36 = vrot.slane %v2434_v18, 1 }
  0x77   : > { %2076 = vmatprep.mubr.bf16.mxu1 %v2460_v37  ;;  %v1097_v21 = vor.u32 %v1096_v53, %v1092_v56  ;;  %v2466_v37 = vcombine.low %v969_v29, %v976_v43  ;;  %v1132_v16 = vrot.slane %v2430_v14, 1 }
  0x78   : > { %2004 = vmatmul.mubr.bf16.gmra.mrb[20].mxu0 %v2448_v24  ;;  %v1099_v6 = vshrl.u32 %v2426_v60, 16  ;;  %v1131_v24 = vrot.slane %v2429_v62, 1  ;;  %v2470_v30 = vcombine.low %v1135_v23, %v1136_v36 }
  0x79   : > { %2789 = vmatpush3.bf16.msra.mxu0 %v2940_v7  ;;  %2819 = vmatpush3.bf16.msra.mxu1 %v2943_v3  ;;  %v1101_v7 = vshll.u32 %v2426_v60, 16 }
  0x7a   : > { %2790 = vmatprep.subr.bf16.mxu0 %v2943_v3  ;;  %2812 = vmatprep.subr.bf16.mxu1 %v2947_v33  ;;  %v2452_v0 = vcombine.low %v1131_v24, %v1132_v16 }
  0x7b   : > { %2011 = vmatprep.mubr.bf16.mxu0 %v2458_v47  ;;  %v1103_v58 = vrot.slane %v1101_v7, 1 }
  0x7c   : > { %2077 = vmatmul.mubr.bf16.gmra.mrb[24].mxu1 %v2459_v46 }
  0x7d   : > { %2791 = vmatpush3.bf16.msra.mxu0 %v2943_v3  ;;  %2820 = vmatpush3.bf16.msra.mxu1 %v2947_v33  ;;  %v1104_v27 = vor.u32 %v1103_v58, %v1099_v6  ;;  %v2468_v3 = vcombine.low %v3525_v17, %v3565_v44  ;;  %v2443_v17 = vcombine.low %v1129_v25, %v1130_v38 }
  0x7e   : > { %2792 = vmatprep.subr.bf16.mxu0 %v2947_v33  ;;  %2813 = vmatprep.subr.bf16.mxu1 %v2950_v34 }
  0x7f   : > { %v2469_v32 = vcombine.low %v1097_v21, %v1104_v27 }
  0x80   : > { %2012 = vmatmul.mubr.bf16.gmra.mrb[24].mxu0 %v2457_v59 }
  0x81   : > { %2793 = vmatpush3.bf16.msra.mxu0 %v2947_v33  ;;  %2821 = vmatpush3.bf16.msra.mxu1 %v2950_v34 }
  0x82   : > { %2794 = vmatprep.subr.bf16.mxu0 %v2950_v34  ;;  %2814 = vmatprep.subr.bf16.mxu1 %v2956_v2 }
  0x83   : > { %2019 = vmatprep.mubr.bf16.mxu0 %v2467_v52  ;;  %2084 = vmatprep.mubr.bf16.mxu1 %v2469_v32 }
  0x84   : > { %2085 = vmatmul.mubr.bf16.gmra.mrb[28].mxu1 %v2468_v3 }
  0x85   : > { %2795 = vmatpush3.bf16.msra.mxu0 %v2950_v34  ;;  %2822 = vmatpush3.bf16.msra.mxu1 %v2956_v2 }
  0x86   : > { %2796 = vmatprep.subr.bf16.mxu0 %v2956_v2  ;;  %2815 = vmatprep.subr.bf16.mxu1 %v2959_v20 }
  0x87   : > { %2804 = vmatprep.mubr.bf16.mxu1 %v2461_v15 }
  0x88   : > { %2020 = vmatmul.mubr.bf16.gmra.mrb[28].mxu0 %v2466_v37 }
  0x89   : > { %2797 = vmatpush3.bf16.msra.mxu0 %v2956_v2  ;;  %2800 = vmatprep.mubr.bf16.mxu0 %v2443_v17 }
  0x8a   : > { %2823 = vmatpush3.bf16.msra.mxu1 %v2959_v20  ;;  %2798 = vmatprep.subr.bf16.mxu0 %v2959_v20 }
  0x8d   : > { %2805 = vmatmul.mubr.bf16.vlgmr.msra.gmra.mrb[32].mxu1 %v2470_v30  ;;  %2799 = vmatpush3.bf16.msra.mxu0 %v2959_v20 }
  0x90   : > { %2801 = vmatmul.mubr.bf16.vlgmr.msra.gmra.mrb[32].mxu0 %v2452_v0 }
 0x106   : > { %v2668_v1 = vpop.f32.mrb[0].mxu1 }
 0x107   : > { %v2669_v33 = vpop.f32.mrb[1].mxu1 }
 0x108   : > { %v2670_v39 = vadd.f32 %v2669_v33, %v2668_v1  ;;  %v2671_v19 = vpop.f32.mrb[2].mxu1 }
 0x109   : > { %v2672_v13 = vpop.f32.mrb[3].mxu1 }
 0x10a   : > { %v2673_v40 = vadd.f32 %v2672_v13, %v2671_v19 }
 0x10c   : > { %v2628_v45 = vpop.f32.mrb[0].mxu0 }
 0x10d   : > { %v2629_v47 = vpop.f32.mrb[1].mxu0 }
 0x10e   : > { %v2630_v31 = vadd.f32 %v2629_v47, %v2628_v45  ;;  %v2631_v46 = vpop.f32.mrb[2].mxu0 }
 0x10f   : > { %v2632_v44 = vpop.f32.mrb[3].mxu0 }
 0x110   : > { %v1933_v35 = vadd.f32 %v2670_v39, %v2630_v31  ;;  %v2633_v41 = vadd.f32 %v2632_v44, %v2631_v46 }
 0x112   : > { %v1936_v34 = vadd.f32 %v2673_v40, %v2633_v41 }
 0x118   : > { %v2674_v51 = vpop.f32.mrb[4].mxu1 }
 0x119   : > { %v2675_v56 = vpop.f32.mrb[5].mxu1 }
 0x11a   : > { %v2676_v50 = vadd.f32 %v2675_v56, %v2674_v51  ;;  %v2677_v59 = vpop.f32.mrb[6].mxu1 }
 0x11b   : > { %v2678_v60 = vpop.f32.mrb[7].mxu1 }
 0x11c   : > { %v2679_v53 = vadd.f32 %v2678_v60, %v2677_v59  ;;  %v2634_v49 = vpop.f32.mrb[4].mxu0 }
 0x11d   : > { %v2635_v57 = vpop.f32.mrb[5].mxu0 }
 0x11e   : > { %v2636_v61 = vadd.f32 %v2635_v57, %v2634_v49  ;;  %v2637_v63 = vpop.f32.mrb[6].mxu0 }
 0x11f   : > { %v2638_v55 = vpop.f32.mrb[7].mxu0 }
 0x120   : > { %v1941_v4 = vadd.f32 %v2676_v50, %v2636_v61  ;;  %v2639_v5 = vadd.f32 %v2638_v55, %v2637_v63 }
 0x122   : > { %v1944_v6 = vadd.f32 %v2679_v53, %v2639_v5 }
 0x127   : > { %v2680_v7 = vpop.f32.mrb[8].mxu1 }
 0x128   : > { %v2681_v8 = vpop.f32.mrb[9].mxu1 }
 0x129   : > { %v2682_v22 = vadd.f32 %v2681_v8, %v2680_v7  ;;  %v2683_v9 = vpop.f32.mrb[10].mxu1 }
 0x12a   : > { %v2684_v10 = vpop.f32.mrb[11].mxu1 }
 0x12b   : > { %v2640_v11 = vpop.f32.mrb[8].mxu0  ;;  %v2685_v12 = vadd.f32 %v2684_v10, %v2683_v9 }
 0x12c   : > { %v2641_v21 = vpop.f32.mrb[9].mxu0 }
 0x12d   : > { %v2642_v58 = vadd.f32 %v2641_v21, %v2640_v11  ;;  %v2643_v2 = vpop.f32.mrb[10].mxu0 }
 0x12e   : > { %v2644_v52 = vpop.f32.mrb[11].mxu0 }
 0x12f   : > { %v1949_v26 = vadd.f32 %v2682_v22, %v2642_v58  ;;  %v2645_v54 = vadd.f32 %v2644_v52, %v2643_v2 }
 0x131   : > { %v1952_v27 = vadd.f32 %v2685_v12, %v2645_v54 }
 0x137   : > { %v2686_v28 = vpop.f32.mrb[12].mxu1 }
 0x138   : > { %v2687_v29 = vpop.f32.mrb[13].mxu1 }
 0x139   : > { %v2688_v43 = vadd.f32 %v2687_v29, %v2686_v28  ;;  %v2689_v42 = vpop.f32.mrb[14].mxu1 }
 0x13a   : > { %v2690_v48 = vpop.f32.mrb[15].mxu1 }
 0x13b   : > { %v2646_v18 = vpop.f32.mrb[12].mxu0  ;;  %v2691_v3 = vadd.f32 %v2690_v48, %v2689_v42 }
 0x13c   : > { %v2647_v25 = vpop.f32.mrb[13].mxu0 }
 0x13d   : > { %v2648_v38 = vadd.f32 %v2647_v25, %v2646_v18  ;;  %v2649_v32 = vpop.f32.mrb[14].mxu0 }
 0x13e   : > { %v2650_v20 = vpop.f32.mrb[15].mxu0 }
 0x13f   : > { %v3588_v15 = vadd.f32 %v2688_v43, %v2648_v38  ;;  %v2651_v62 = vadd.f32 %v2650_v20, %v2649_v32  ;;  %v2748_v14 = vpop.f32.mrb[16].mxu1 }
 0x140   : > { %v2749_v37 = vpop.f32.mrb[17].mxu1 }
 0x141   : > { %v3590_v23 = vadd.f32 %v2691_v3, %v2651_v62  ;;  %v2750_v36 = vadd.f32 %v2749_v37, %v2748_v14  ;;  %v2751_v17 = vpop.f32.mrb[18].mxu1 }
 0x142   : > { %v2752_v24 = vpop.f32.mrb[19].mxu1 }
 0x143   : > { %v2708_v16 = vpop.f32.mrb[16].mxu0  ;;  %v2753_v30 = vadd.f32 %v2752_v24, %v2751_v17 }
 0x144   : > { %v2709_v0 = vpop.f32.mrb[17].mxu0 }
 0x145   : > { %v2710_v1 = vadd.f32 %v2709_v0, %v2708_v16  ;;  %v2711_v33 = vpop.f32.mrb[18].mxu0 }
 0x146   : > { %v2712_v39 = vpop.f32.mrb[19].mxu0 }
 0x147   : > { %v1998_v19 = vadd.f32 %v2710_v1, %v1933_v35  ;;  %v2713_v13 = vadd.f32 %v2712_v39, %v2711_v33  ;;  %v2754_v40 = vpop.f32.mrb[20].mxu1 }
 0x148   : > { %v2755_v45 = vpop.f32.mrb[21].mxu1 }
 0x149   : > { %v2001_v47 = vadd.f32 %v2713_v13, %v1936_v34  ;;  %v2756_v31 = vadd.f32 %v2755_v45, %v2754_v40  ;;  %v2757_v46 = vpop.f32.mrb[22].mxu1  ;;  %v2063_v44 = vadd.f32 %v2750_v36, %v1998_v19 }
 0x14a   : > { %v2758_v41 = vpop.f32.mrb[23].mxu1 }
 0x14b   : > { %v2714_v51 = vpop.f32.mrb[20].mxu0  ;;  %v2759_v56 = vadd.f32 %v2758_v41, %v2757_v46  ;;  %v3592_v50 = vadd.f32 %v2753_v30, %v2001_v47 }
 0x14c   : > { %v2715_v59 = vpop.f32.mrb[21].mxu0 }
 0x14d   : > { %v2716_v60 = vadd.f32 %v2715_v59, %v2714_v51  ;;  %v2717_v53 = vpop.f32.mrb[22].mxu0 }
 0x14e   : > { %v2718_v49 = vpop.f32.mrb[23].mxu0 }
 0x14f   : > { %v2006_v57 = vadd.f32 %v2716_v60, %v1941_v4  ;;  %v2719_v61 = vadd.f32 %v2718_v49, %v2717_v53  ;;  %v2760_v63 = vpop.f32.mrb[24].mxu1 }
 0x150   : > { %v2761_v35 = vpop.f32.mrb[25].mxu1 }
 0x151   : > { %v2009_v55 = vadd.f32 %v2719_v61, %v1944_v6  ;;  %v2762_v5 = vadd.f32 %v2761_v35, %v2760_v63  ;;  %v2763_v34 = vpop.f32.mrb[26].mxu1  ;;  %v2071_v7 = vadd.f32 %v2756_v31, %v2006_v57 }
 0x152   : > { %v2764_v8 = vpop.f32.mrb[27].mxu1 }
 0x153   : > { %v2720_v22 = vpop.f32.mrb[24].mxu0  ;;  %v2765_v9 = vadd.f32 %v2764_v8, %v2763_v34  ;;  %v2074_v10 = vadd.f32 %v2759_v56, %v2009_v55 }
 0x154   : > { %v2721_v11 = vpop.f32.mrb[25].mxu0 }
 0x155   : > { %v2722_v12 = vadd.f32 %v2721_v11, %v2720_v22  ;;  %v2723_v21 = vpop.f32.mrb[26].mxu0 }
 0x156   : > { %v2724_v58 = vpop.f32.mrb[27].mxu0 }
 0x157   : > { %v2014_v2 = vadd.f32 %v2722_v12, %v1949_v26  ;;  %v2725_v52 = vadd.f32 %v2724_v58, %v2723_v21  ;;  %v2766_v4 = vpop.f32.mrb[28].mxu1 }
 0x158   : > { %v2767_v28 = vpop.f32.mrb[29].mxu1 }
 0x159   : > { %v2017_v54 = vadd.f32 %v2725_v52, %v1952_v27  ;;  %v2079_v29 = vadd.f32 %v2762_v5, %v2014_v2  ;;  %v2768_v43 = vadd.f32 %v2767_v28, %v2766_v4  ;;  %v2769_v6 = vpop.f32.mrb[30].mxu1 }
 0x15a   : > { %v2770_v48 = vpop.f32.mrb[31].mxu1 }
 0x15b   : > { %v2726_v42 = vpop.f32.mrb[28].mxu0  ;;  %v2082_v18 = vadd.f32 %v2765_v9, %v2017_v54  ;;  %v2771_v25 = vadd.f32 %v2770_v48, %v2769_v6 }
 0x15c   : > { %v2727_v3 = vpop.f32.mrb[29].mxu0 }
 0x15d   : > { %v2728_v38 = vadd.f32 %v2727_v3, %v2726_v42  ;;  %v2729_v32 = vpop.f32.mrb[30].mxu0 }
 0x15e   : > { %v2730_v20 = vpop.f32.mrb[31].mxu0 }
 0x15f   : > { %v2022_v26 = vadd.f32 %v2728_v38, %v3588_v15  ;;  %v2731_v62 = vadd.f32 %v2730_v20, %v2729_v32 }
 0x160   : > { %v2806_v14 = vpop.f32.mrb[32].mxu1 }
 0x161   : > { %v2025_v27 = vadd.f32 %v2731_v62, %v3590_v23  ;;  %v2087_v37 = vadd.f32 %v2768_v43, %v2022_v26  ;;  %v2143_v36 = vpop.f32.mrb[33].mxu1 }
 0x162   : > { %v2144_v17 = vadd.f32 %v2143_v36, %v2079_v29  ;;  %v2807_v24 = vpop.f32.mrb[34].mxu1 }
 0x163   : > { %v2152_v16 = vadd.f32 %v2806_v14, %v2087_v37  ;;  %v2090_v30 = vadd.f32 %v2771_v25, %v2025_v27  ;;  %v2146_v0 = vpop.f32.mrb[35].mxu1  ;;  %v2802_v1 = vpop.f32.mrb[32].mxu0 }
 0x164   : > { %v2147_v33 = vadd.f32 %v2146_v0, %v2082_v18  ;;  %v2136_v39 = vadd.f32 %v2802_v1, %v2071_v7  ;;  %v2127_v19 = vpop.f32.mrb[33].mxu0  ;;  %v2210_v35 = vmul.f32 %v2144_v17, %v2144_v17 }
 0x165   : > { %v2155_v15 = vadd.f32 %v2807_v24, %v2090_v30  ;;  %v2128_v13 = vadd.f32 %v2127_v19, %v2063_v44  ;;  %v2803_v40 = vpop.f32.mrb[34].mxu0  ;;  %v2212_v8 = vmul.f32 %v2152_v16, %v2152_v16 }
 0x166   : > { %v2599_v23 = vpack.c.bf16 %v2147_v33, %v2144_v17  ;;  %v2139_v45 = vadd.f32 %v2803_v40, %v2074_v10  ;;  %v2130_v47 = vpop.f32.mrb[35].mxu0  ;;  %v2208_v53 = vmul.f32 %v2136_v39, %v2136_v39 }
 0x167   : > { %v2604_v31 = vpack.c.bf16 %v2155_v15, %v2152_v16  ;;  %v2131_v46 = vadd.f32 %v2130_v47, %v3592_v50  ;;  %v2206_v51 = vmul.f32 %v2128_v13, %v2128_v13  ;;  %v2211_v50 = vmul.f32 %v2147_v33, %v2147_v33 }
 0x168   : > { %2610 = vst [vmem:[%s352_s22 + $0x10] sm:$0xff] %v2599_v23   ;;  %v2594_v41 = vpack.c.bf16 %v2139_v45, %v2136_v39  ;;  %v2209_v57 = vmul.f32 %v2139_v45, %v2139_v45  ;;  %v2213_v10 = vmul.f32 %v2155_v15, %v2155_v15 }
 0x169   : > { %2611 = vst [vmem:[%s352_s22 + $0x18] sm:$0xff] %v2604_v31   ;;  %v2589_v56 = vpack.c.bf16 %v2131_v46, %v2128_v13  ;;  %v2198_v59 = vadd.f32 %v2131_v46, %v2128_v13  ;;  %v2207_v60 = vmul.f32 %v2131_v46, %v2131_v46 }
 0x16a   : > { %2609 = vst [vmem:[%s352_s22 + $0x8] sm:$0xff] %v2594_v41  }
 0x16b   : > { %2590 = vst [vmem:[%s352_s22] sm:$0xff] %v2589_v56   ;;  %v2199_v49 = vadd.f32 %v2198_v59, %v2136_v39  ;;  %v2214_v44 = vadd.f32 %v2207_v60, %v2206_v51 }
 0x16d   : > { %v2200_v61 = vadd.f32 %v2199_v49, %v2139_v45  ;;  %v2215_v63 = vadd.f32 %v2214_v44, %v2208_v53 }
 0x16f   : > { %v2201_v55 = vadd.f32 %v2200_v61, %v2144_v17  ;;  %v2216_v5 = vadd.f32 %v2215_v63, %v2209_v57 }
 0x171   : > { %v2202_v34 = vadd.f32 %v2201_v55, %v2147_v33  ;;  %v2217_v7 = vadd.f32 %v2216_v5, %v2210_v35 }
 0x173   : > { %v2203_v22 = vadd.f32 %v2202_v34, %v2152_v16  ;;  %v2218_v9 = vadd.f32 %v2217_v7, %v2211_v50 }
 0x175   : > { %v2204_v11 = vadd.f32 %v2203_v22, %v2155_v15  ;;  %v2219_v12 = vadd.f32 %v2218_v9, %v2212_v8 }
 0x177   : > { %2205 = vst [vmem:[%s357_s25] sm:$0xff] %v2204_v11  ;;  %v2220_v21 = vadd.f32 %v2219_v12, %v2213_v10 }
 0x179   : > { %2221 = vst [vmem:[%s361_s10] sm:$0xff] %v2220_v21 }
 0x17a PF: > { %s19_s27 = sadd.s32 1, %s2970_s27  }
 0x17b   : > { %p16_p5 = scmp.ge.s32.totalorder %s19_s27, 4  }
 0x17d   :  { %18 = sbr.rel (!%p16_p5) target bundleno = 1 (0x1), region = 107 }

// kernel: down_forward.4
= control target key start
LH: loop header
LB: loop body
LE: loop exit
PB: predicated region body
PF: predicated region fallthrough
CT: control target
= control target key end

     0   :  { %vm3337_vm0 = vcmask 1041409   ;;  %vm3340_vm1 = vcmask 1042434   ;;  %vm3343_vm2 = vcmask 1043459   ;;  %vm3346_vm3 = vcmask 1044484   ;;  %s7284_s0 = inlined_call_operand.vmem [shape: bf16[16,2,8,2,4], index: 0, kind: input, shape index: {}]   ;;  %s7285_s1 = inlined_call_operand.vmem [shape: bf16[16,8,4], index: 1, kind: output, shape index: {}]  }
   0x1   :  { %v8_v0 = vld [vmem:[%s7284_s0] sm:$0x1]  ;;  %v9_v1 = vld [vmem:[%s7284_s0 + $0x1] sm:$0x1]  ;;  %v16_v2 = vld [vmem:[%s7284_s0 + $0x8] sm:$0x1] }
   0x2   :  { %v17_v3 = vld [vmem:[%s7284_s0 + $0x9] sm:$0x1]  ;;  %v10_v4 = vld [vmem:[%s7284_s0 + $0x2] sm:$0x1]  ;;  %v11_v5 = vld [vmem:[%s7284_s0 + $0x3] sm:$0x1]  ;;  %v3900_v44 = vmax.bf16 %v16_v2, %v8_v0 }
   0x3   :  { %v12_v6 = vld [vmem:[%s7284_s0 + $0x4] sm:$0x1]  ;;  %v13_v7 = vld [vmem:[%s7284_s0 + $0x5] sm:$0x1]  ;;  %v18_v8 = vld [vmem:[%s7284_s0 + $0xa] sm:$0x1]  ;;  %v3902_v45 = vmax.bf16 %v17_v3, %v9_v1 }
   0x4   :  { %v19_v9 = vld [vmem:[%s7284_s0 + $0xb] sm:$0x1]  ;;  %v20_v10 = vld [vmem:[%s7284_s0 + $0xc] sm:$0x1]  ;;  %v21_v11 = vld [vmem:[%s7284_s0 + $0xd] sm:$0x1]  ;;  %v3940_v54 = vmax.bf16 %v18_v8, %v10_v4 }
   0x5   :  { %v14_v12 = vld [vmem:[%s7284_s0 + $0x6] sm:$0x1]  ;;  %v15_v13 = vld [vmem:[%s7284_s0 + $0x7] sm:$0x1]  ;;  %v22_v14 = vld [vmem:[%s7284_s0 + $0xe] sm:$0x1]  ;;  %v3942_v55 = vmax.bf16 %v19_v9, %v11_v5  ;;  %v3944_v56 = vmax.bf16 %v20_v10, %v12_v6  ;;  %v3946_v57 = vmax.bf16 %v21_v11, %v13_v7 }
   0x6   :  { %v23_v15 = vld [vmem:[%s7284_s0 + $0xf] sm:$0x1]  ;;  %v24_v16 = vld [vmem:[%s7284_s0 + $0x10] sm:$0x1]  ;;  %v25_v17 = vld [vmem:[%s7284_s0 + $0x11] sm:$0x1]  ;;  %v3980_v2 = vmax.bf16 %v22_v14, %v14_v12 }
   0x7   :  { %v32_v18 = vld [vmem:[%s7284_s0 + $0x18] sm:$0x1]  ;;  %v33_v19 = vld [vmem:[%s7284_s0 + $0x19] sm:$0x1]  ;;  %v26_v20 = vld [vmem:[%s7284_s0 + $0x12] sm:$0x1]  ;;  %v3982_v3 = vmax.bf16 %v23_v15, %v15_v13 }
   0x8   :  { %v27_v21 = vld [vmem:[%s7284_s0 + $0x13] sm:$0x1]  ;;  %v28_v22 = vld [vmem:[%s7284_s0 + $0x14] sm:$0x1]  ;;  %v29_v23 = vld [vmem:[%s7284_s0 + $0x15] sm:$0x1]  ;;  %v3984_v4 = vmax.bf16 %v32_v18, %v24_v16  ;;  %v3986_v5 = vmax.bf16 %v33_v19, %v25_v17 }
   0x9   :  { %v34_v24 = vld [vmem:[%s7284_s0 + $0x1a] sm:$0x1]  ;;  %v35_v25 = vld [vmem:[%s7284_s0 + $0x1b] sm:$0x1]  ;;  %v36_v26 = vld [vmem:[%s7284_s0 + $0x1c] sm:$0x1] }
   0xa   :  { %v37_v27 = vld [vmem:[%s7284_s0 + $0x1d] sm:$0x1]  ;;  %v30_v28 = vld [vmem:[%s7284_s0 + $0x16] sm:$0x1]  ;;  %v31_v29 = vld [vmem:[%s7284_s0 + $0x17] sm:$0x1]  ;;  %v4018_v12 = vmax.bf16 %v34_v24, %v26_v20  ;;  %v4020_v13 = vmax.bf16 %v35_v25, %v27_v21  ;;  %v4022_v14 = vmax.bf16 %v36_v26, %v28_v22 }
   0xb   :  { %v38_v30 = vld [vmem:[%s7284_s0 + $0x1e] sm:$0x1]  ;;  %v39_v31 = vld [vmem:[%s7284_s0 + $0x1f] sm:$0x1]  ;;  %v40_v32 = vld [vmem:[%s7284_s0 + $0x20] sm:$0x1]  ;;  %v4024_v15 = vmax.bf16 %v37_v27, %v29_v23 }
   0xc   :  { %v41_v33 = vld [vmem:[%s7284_s0 + $0x21] sm:$0x1]  ;;  %v48_v34 = vld [vmem:[%s7284_s0 + $0x28] sm:$0x1]  ;;  %v49_v35 = vld [vmem:[%s7284_s0 + $0x29] sm:$0x1]  ;;  %v4066_v24 = vmax.bf16 %v38_v30, %v30_v28  ;;  %v4068_v25 = vmax.bf16 %v39_v31, %v31_v29 }
   0xd   :  { %v3871_v36 = vld [vmem:[%s7284_s0 + $0x22] sm:$0x1]  ;;  %v3876_v37 = vld [vmem:[%s7284_s0 + $0x23] sm:$0x1]  ;;  %v3881_v38 = vld [vmem:[%s7284_s0 + $0x24] sm:$0x1]  ;;  %v4070_v26 = vmax.bf16 %v48_v34, %v40_v32  ;;  %v4072_v27 = vmax.bf16 %v49_v35, %v41_v33 }
   0xe   :  { %v3886_v39 = vld [vmem:[%s7284_s0 + $0x25] sm:$0x1]  ;;  %v50_v40 = vld [vmem:[%s7284_s0 + $0x2a] sm:$0x1]  ;;  %v51_v41 = vld [vmem:[%s7284_s0 + $0x2b] sm:$0x1] }
   0xf   :  { %v52_v42 = vld [vmem:[%s7284_s0 + $0x2c] sm:$0x1]  ;;  %v53_v43 = vld [vmem:[%s7284_s0 + $0x2d] sm:$0x1]  ;;  %v3907_v46 = vld [vmem:[%s7284_s0 + $0x26] sm:$0x1]  ;;  %v4115_v34 = vmax.bf16 %v50_v40, %v3871_v36  ;;  %v4118_v35 = vmax.bf16 %v51_v41, %v3876_v37 }
  0x10   :  { %v3912_v47 = vld [vmem:[%s7284_s0 + $0x27] sm:$0x1]  ;;  %v3917_v48 = vld [vmem:[%s7284_s0 + $0x2e] sm:$0x1]  ;;  %v3922_v49 = vld [vmem:[%s7284_s0 + $0x2f] sm:$0x1] }
  0x11   :  { %v3927_v50 = vld [vmem:[%s7284_s0 + $0x30] sm:$0x1]  ;;  %v3932_v51 = vld [vmem:[%s7284_s0 + $0x31] sm:$0x1]  ;;  %v64_v52 = vld [vmem:[%s7284_s0 + $0x38] sm:$0x1] }
  0x12   :  { %v65_v53 = vld [vmem:[%s7284_s0 + $0x39] sm:$0x1]  ;;  %v3951_v58 = vld [vmem:[%s7284_s0 + $0x32] sm:$0x1]  ;;  %v3956_v59 = vld [vmem:[%s7284_s0 + $0x33] sm:$0x1] }
  0x13   :  { %v3961_v60 = vld [vmem:[%s7284_s0 + $0x34] sm:$0x1]  ;;  %v3966_v61 = vld [vmem:[%s7284_s0 + $0x35] sm:$0x1]  ;;  %v66_v62 = vld [vmem:[%s7284_s0 + $0x3a] sm:$0x1] }
  0x14   :  { %v67_v63 = vld [vmem:[%s7284_s0 + $0x3b] sm:$0x1]  ;;  %v68_v0 = vld [vmem:[%s7284_s0 + $0x3c] sm:$0x1]  ;;  %v69_v1 = vld [vmem:[%s7284_s0 + $0x3d] sm:$0x1] }
  0x15   :  { %v3991_v6 = vld [vmem:[%s7284_s0 + $0x36] sm:$0x1]  ;;  %v3996_v7 = vld [vmem:[%s7284_s0 + $0x37] sm:$0x1]  ;;  %v4001_v8 = vld [vmem:[%s7284_s0 + $0x3e] sm:$0x1] }
  0x16   :  { %v4006_v9 = vld [vmem:[%s7284_s0 + $0x3f] sm:$0x1]  ;;  %v4011_v10 = vld [vmem:[%s7284_s0 + $0x40] sm:$0x1]  ;;  %v4016_v11 = vld [vmem:[%s7284_s0 + $0x48] sm:$0x1] }
  0x17   :  { %7486 = vst [vmem:[#allocation2_spill] sm:$0xff] %v4020_v13  ;;  %7487 = vst [vmem:[#allocation3_spill] sm:$0xff] %v4022_v14  ;;  %v4029_v16 = vld [vmem:[%s7284_s0 + $0x41] sm:$0x1]  ;;  %v4034_v17 = vld [vmem:[%s7284_s0 + $0x42] sm:$0x1] }
  0x18   :  { %7488 = vst [vmem:[#allocation4_spill] sm:$0xff] %v4024_v15  ;;  %v4039_v18 = vld [vmem:[%s7284_s0 + $0x43] sm:$0x1]  ;;  %v4044_v19 = vld [vmem:[%s7284_s0 + $0x44] sm:$0x1]  ;;  %7489 = vst [vmem:[#allocation5_spill] sm:$0xff] %v4066_v24 }
  0x19   :  { %v4049_v20 = vld [vmem:[%s7284_s0 + $0x49] sm:$0x1]  ;;  %v4054_v21 = vld [vmem:[%s7284_s0 + $0x4a] sm:$0x1]  ;;  %v4059_v22 = vld [vmem:[%s7284_s0 + $0x4b] sm:$0x1] }
  0x1a   :  { %v4064_v23 = vld [vmem:[%s7284_s0 + $0x4c] sm:$0x1]  ;;  %7490 = vst [vmem:[#allocation6_spill] sm:$0xff] %v4068_v25  ;;  %7491 = vst [vmem:[#allocation7_spill] sm:$0xff] %v4070_v26  ;;  %v4077_v15 = vld [vmem:[%s7284_s0 + $0x45] sm:$0x1]  ;;  %v4124_v26 = vmax.bf16 %v53_v43, %v3886_v39  ;;  %v4172_v43 = vmax.bf16 %v3922_v49, %v3912_v47 }
  0x1b   :  { %7492 = vst [vmem:[#allocation8_spill] sm:$0xff] %v4072_v27  ;;  %v4082_v14 = vld [vmem:[%s7284_s0 + $0x46] sm:$0x1]  ;;  %v4087_v28 = vld [vmem:[%s7284_s0 + $0x47] sm:$0x1]  ;;  %7493 = vst [vmem:[#allocation9_spill] sm:$0xff] %v4115_v34  ;;  %v4121_v27 = vmax.bf16 %v52_v42, %v3881_v38  ;;  %v4168_v42 = vmax.bf16 %v3917_v48, %v3907_v46 }
  0x1c   :  { %v4092_v29 = vld [vmem:[%s7284_s0 + $0x4d] sm:$0x1]  ;;  %v4097_v30 = vld [vmem:[%s7284_s0 + $0x4e] sm:$0x1]  ;;  %v4102_v31 = vld [vmem:[%s7284_s0 + $0x4f] sm:$0x1] }
  0x1d   :  { %v4107_v32 = vld [vmem:[%s7284_s0 + $0x50] sm:$0x1]  ;;  %v4112_v33 = vld [vmem:[%s7284_s0 + $0x58] sm:$0x1]  ;;  %7494 = vst [vmem:[#allocation10_spill] sm:$0xff] %v4118_v35  ;;  %7495 = vst [vmem:[#allocation11_spill] sm:$0xff] %v4121_v27  ;;  %v4178_v27 = vmax.bf16 %v65_v53, %v3932_v51  ;;  %v4221_v53 = vmax.bf16 %v66_v62, %v3951_v58 }
  0x1e   :  { %7496 = vst [vmem:[#allocation12_spill] sm:$0xff] %v4124_v26  ;;  %v4129_v25 = vld [vmem:[%s7284_s0 + $0x51] sm:$0x1]  ;;  %v4134_v24 = vld [vmem:[%s7284_s0 + $0x52] sm:$0x1]  ;;  %7497 = vst [vmem:[#allocation13_spill] sm:$0xff] %v4168_v42  ;;  %v4175_v26 = vmax.bf16 %v64_v52, %v3927_v50 }
  0x1f   :  { %v4139_v36 = vld [vmem:[%s7284_s0 + $0x53] sm:$0x1]  ;;  %v4144_v37 = vld [vmem:[%s7284_s0 + $0x54] sm:$0x1]  ;;  %v4149_v38 = vld [vmem:[%s7284_s0 + $0x59] sm:$0x1] }
  0x20   :  { %v4154_v39 = vld [vmem:[%s7284_s0 + $0x5a] sm:$0x1]  ;;  %v4159_v40 = vld [vmem:[%s7284_s0 + $0x5b] sm:$0x1]  ;;  %v4164_v41 = vld [vmem:[%s7284_s0 + $0x5c] sm:$0x1] }
  0x21   :  { %7498 = vst [vmem:[#allocation14_spill] sm:$0xff] %v4172_v43  ;;  %7499 = vst [vmem:[#allocation15_spill] sm:$0xff] %v4175_v26  ;;  %v4183_v35 = vld [vmem:[%s7284_s0 + $0x55] sm:$0x1]  ;;  %v4188_v46 = vld [vmem:[%s7284_s0 + $0x56] sm:$0x1]  ;;  %v4227_v26 = vmax.bf16 %v68_v0, %v3961_v60  ;;  %v4230_v43 = vmax.bf16 %v69_v1, %v3966_v61  ;;  %v4274_v0 = vmax.bf16 %v4001_v8, %v3991_v6 }
  0x22   :  { %7500 = vst [vmem:[#allocation16_spill] sm:$0xff] %v4178_v27  ;;  %v4193_v47 = vld [vmem:[%s7284_s0 + $0x57] sm:$0x1]  ;;  %v4198_v48 = vld [vmem:[%s7284_s0 + $0x5d] sm:$0x1]  ;;  %7501 = vst [vmem:[#allocation17_spill] sm:$0xff] %v4221_v53  ;;  %v4224_v27 = vmax.bf16 %v67_v63, %v3956_v59  ;;  %v4278_v1 = vmax.bf16 %v4006_v9, %v3996_v7 }
  0x23   :  { %v4203_v49 = vld [vmem:[%s7284_s0 + $0x5e] sm:$0x1]  ;;  %v4208_v50 = vld [vmem:[%s7284_s0 + $0x5f] sm:$0x1]  ;;  %v4213_v51 = vld [vmem:[%s7284_s0 + $0x60] sm:$0x1] }
  0x24   :  { %v4218_v52 = vld [vmem:[%s7284_s0 + $0x68] sm:$0x1]  ;;  %7502 = vst [vmem:[#allocation18_spill] sm:$0xff] %v4224_v27  ;;  %7503 = vst [vmem:[#allocation19_spill] sm:$0xff] %v4227_v26  ;;  %v4235_v42 = vld [vmem:[%s7284_s0 + $0x61] sm:$0x1]  ;;  %v4326_v26 = vmax.bf16 %v4049_v20, %v4029_v16 }
  0x25   :  { %7504 = vst [vmem:[#allocation20_spill] sm:$0xff] %v4230_v43  ;;  %v4240_v34 = vld [vmem:[%s7284_s0 + $0x62] sm:$0x1]  ;;  %v4245_v58 = vld [vmem:[%s7284_s0 + $0x63] sm:$0x1]  ;;  %7505 = vst [vmem:[#allocation21_spill] sm:$0xff] %v4274_v0  ;;  %v4282_v43 = vmax.bf16 %v4016_v11, %v4011_v10  ;;  %v4338_v0 = vmax.bf16 %v4064_v23, %v4044_v19  ;;  %v4382_v23 = vmax.bf16 %v4092_v29, %v4077_v15 }
  0x26   :  { %v4250_v59 = vld [vmem:[%s7284_s0 + $0x64] sm:$0x1]  ;;  %v4255_v60 = vld [vmem:[%s7284_s0 + $0x69] sm:$0x1]  ;;  %v4260_v61 = vld [vmem:[%s7284_s0 + $0x6a] sm:$0x1] }
  0x27   :  { %v4265_v62 = vld [vmem:[%s7284_s0 + $0x6b] sm:$0x1]  ;;  %v4270_v63 = vld [vmem:[%s7284_s0 + $0x6c] sm:$0x1]  ;;  %7506 = vst [vmem:[#allocation22_spill] sm:$0xff] %v4278_v1  ;;  %7507 = vst [vmem:[#allocation23_spill] sm:$0xff] %v4282_v43  ;;  %v4330_v43 = vmax.bf16 %v4054_v21, %v4034_v17  ;;  %v4334_v1 = vmax.bf16 %v4059_v22, %v4039_v18 }
  0x28   :  { %v4287_v27 = vld [vmem:[%s7284_s0 + $0x65] sm:$0x1]  ;;  %v4292_v53 = vld [vmem:[%s7284_s0 + $0x66] sm:$0x1]  ;;  %v4297_v6 = vld [vmem:[%s7284_s0 + $0x67] sm:$0x1] }
  0x29   :  { %v4302_v7 = vld [vmem:[%s7284_s0 + $0x6d] sm:$0x1]  ;;  %v4307_v8 = vld [vmem:[%s7284_s0 + $0x6e] sm:$0x1]  ;;  %v4312_v9 = vld [vmem:[%s7284_s0 + $0x6f] sm:$0x1] }
  0x2a   :  { %v4317_v10 = vld [vmem:[%s7284_s0 + $0x70] sm:$0x1]  ;;  %v4322_v11 = vld [vmem:[%s7284_s0 + $0x78] sm:$0x1]  ;;  %7508 = vst [vmem:[#allocation24_spill] sm:$0xff] %v4326_v26  ;;  %7509 = vst [vmem:[#allocation25_spill] sm:$0xff] %v4330_v43  ;;  %v4394_v43 = vmax.bf16 %v4112_v33, %v4107_v32  ;;  %v4438_v33 = vmax.bf16 %v4149_v38, %v4129_v25 }
  0x2b   :  { %7510 = vst [vmem:[#allocation26_spill] sm:$0xff] %v4334_v1  ;;  %7511 = vst [vmem:[#allocation27_spill] sm:$0xff] %v4338_v0  ;;  %v4343_v13 = vld [vmem:[%s7284_s0 + $0x71] sm:$0x1]  ;;  %v4348_v16 = vld [vmem:[%s7284_s0 + $0x72] sm:$0x1]  ;;  %v4386_v0 = vmax.bf16 %v4097_v30, %v4082_v14  ;;  %v4390_v1 = vmax.bf16 %v4102_v31, %v4087_v28 }
  0x2c   :  { %v4353_v17 = vld [vmem:[%s7284_s0 + $0x73] sm:$0x1]  ;;  %v4358_v18 = vld [vmem:[%s7284_s0 + $0x74] sm:$0x1]  ;;  %v4363_v19 = vld [vmem:[%s7284_s0 + $0x79] sm:$0x1] }
  0x2d   :  { %v4368_v20 = vld [vmem:[%s7284_s0 + $0x7a] sm:$0x1]  ;;  %v4373_v21 = vld [vmem:[%s7284_s0 + $0x7b] sm:$0x1]  ;;  %v4378_v22 = vld [vmem:[%s7284_s0 + $0x7c] sm:$0x1] }
  0x2e   :  { %7512 = vst [vmem:[#allocation28_spill] sm:$0xff] %v4382_v23  ;;  %7513 = vst [vmem:[#allocation29_spill] sm:$0xff] %v4386_v0  ;;  %v4399_v26 = vld [vmem:[%s7284_s0 + $0x75] sm:$0x1]  ;;  %v4404_v15 = vld [vmem:[%s7284_s0 + $0x76] sm:$0x1]  ;;  %v4450_v0 = vmax.bf16 %v4164_v41, %v4144_v37  ;;  %v4494_v41 = vmax.bf16 %v4198_v48, %v4183_v35 }
  0x2f   :  { %7514 = vst [vmem:[#allocation30_spill] sm:$0xff] %v4390_v1  ;;  %7515 = vst [vmem:[#allocation31_spill] sm:$0xff] %v4394_v43  ;;  %v4409_v14 = vld [vmem:[%s7284_s0 + $0x77] sm:$0x1]  ;;  %v4414_v28 = vld [vmem:[%s7284_s0 + $0x7d] sm:$0x1]  ;;  %v4442_v43 = vmax.bf16 %v4154_v39, %v4134_v24  ;;  %v4446_v1 = vmax.bf16 %v4159_v40, %v4139_v36 }
  0x30   :  { %v4419_v29 = vld [vmem:[%s7284_s0 + $0x7e] sm:$0x1]  ;;  %v4424_v30 = vld [vmem:[%s7284_s0 + $0x7f] sm:$0x1]  ;;  %v4429_v31 = vld [vmem:[%s7284_s0 + $0x80] sm:$0x1] }
  0x31   :  { %v4434_v32 = vld [vmem:[%s7284_s0 + $0x88] sm:$0x1]  ;;  %7516 = vst [vmem:[#allocation32_spill] sm:$0xff] %v4438_v33  ;;  %7517 = vst [vmem:[#allocation33_spill] sm:$0xff] %v4442_v43  ;;  %v4455_v23 = vld [vmem:[%s7284_s0 + $0x81] sm:$0x1]  ;;  %v4506_v43 = vmax.bf16 %v4218_v52, %v4213_v51  ;;  %v4550_v52 = vmax.bf16 %v4255_v60, %v4235_v42 }
  0x32   :  { %7518 = vst [vmem:[#allocation34_spill] sm:$0xff] %v4446_v1  ;;  %7519 = vst [vmem:[#allocation35_spill] sm:$0xff] %v4450_v0  ;;  %v4460_v25 = vld [vmem:[%s7284_s0 + $0x82] sm:$0x1]  ;;  %v4465_v24 = vld [vmem:[%s7284_s0 + $0x83] sm:$0x1]  ;;  %v4498_v0 = vmax.bf16 %v4203_v49, %v4188_v46  ;;  %v4502_v1 = vmax.bf16 %v4208_v50, %v4193_v47 }
  0x33   :  { %v4470_v36 = vld [vmem:[%s7284_s0 + $0x84] sm:$0x1]  ;;  %v4475_v37 = vld [vmem:[%s7284_s0 + $0x89] sm:$0x1]  ;;  %v4480_v38 = vld [vmem:[%s7284_s0 + $0x8a] sm:$0x1] }
  0x34   :  { %v4485_v39 = vld [vmem:[%s7284_s0 + $0x8b] sm:$0x1]  ;;  %v4490_v40 = vld [vmem:[%s7284_s0 + $0x8c] sm:$0x1]  ;;  %7520 = vst [vmem:[#allocation36_spill] sm:$0xff] %v4494_v41  ;;  %7521 = vst [vmem:[#allocation37_spill] sm:$0xff] %v4498_v0  ;;  %v4562_v0 = vmax.bf16 %v4270_v63, %v4250_v59  ;;  %v4606_v63 = vmax.bf16 %v4302_v7, %v4287_v27 }
  0x35   :  { %7522 = vst [vmem:[#allocation38_spill] sm:$0xff] %v4502_v1  ;;  %7523 = vst [vmem:[#allocation39_spill] sm:$0xff] %v4506_v43  ;;  %v4511_v33 = vld [vmem:[%s7284_s0 + $0x85] sm:$0x1]  ;;  %v4516_v35 = vld [vmem:[%s7284_s0 + $0x86] sm:$0x1]  ;;  %v4554_v43 = vmax.bf16 %v4260_v61, %v4240_v34  ;;  %v4558_v1 = vmax.bf16 %v4265_v62, %v4245_v58 }
  0x36   :  { %v4521_v46 = vld [vmem:[%s7284_s0 + $0x87] sm:$0x1]  ;;  %v4526_v47 = vld [vmem:[%s7284_s0 + $0x8d] sm:$0x1]  ;;  %v4531_v48 = vld [vmem:[%s7284_s0 + $0x8e] sm:$0x1] }
  0x37   :  { %v4536_v49 = vld [vmem:[%s7284_s0 + $0x8f] sm:$0x1]  ;;  %v4541_v50 = vld [vmem:[%s7284_s0 + $0x90] sm:$0x1]  ;;  %v4546_v51 = vld [vmem:[%s7284_s0 + $0x98] sm:$0x1] }
  0x38   :  { %7524 = vst [vmem:[#allocation40_spill] sm:$0xff] %v4550_v52  ;;  %7525 = vst [vmem:[#allocation41_spill] sm:$0xff] %v4554_v43  ;;  %v4567_v41 = vld [vmem:[%s7284_s0 + $0x91] sm:$0x1]  ;;  %v4572_v42 = vld [vmem:[%s7284_s0 + $0x92] sm:$0x1]  ;;  %v4618_v43 = vmax.bf16 %v4322_v11, %v4317_v10  ;;  %v4662_v11 = vmax.bf16 %v4363_v19, %v4343_v13 }
  0x39   :  { %7526 = vst [vmem:[#allocation42_spill] sm:$0xff] %v4558_v1  ;;  %7527 = vst [vmem:[#allocation43_spill] sm:$0xff] %v4562_v0  ;;  %v4577_v34 = vld [vmem:[%s7284_s0 + $0x93] sm:$0x1]  ;;  %v4582_v58 = vld [vmem:[%s7284_s0 + $0x94] sm:$0x1]  ;;  %v4610_v0 = vmax.bf16 %v4307_v8, %v4292_v53  ;;  %v4614_v1 = vmax.bf16 %v4312_v9, %v4297_v6 }
  0x3a   :  { %v4587_v59 = vld [vmem:[%s7284_s0 + $0x99] sm:$0x1]  ;;  %v4592_v60 = vld [vmem:[%s7284_s0 + $0x9a] sm:$0x1]  ;;  %v4597_v61 = vld [vmem:[%s7284_s0 + $0x9b] sm:$0x1] }
  0x3b   :  { %v4602_v62 = vld [vmem:[%s7284_s0 + $0x9c] sm:$0x1]  ;;  %7528 = vst [vmem:[#allocation44_spill] sm:$0xff] %v4606_v63  ;;  %7529 = vst [vmem:[#allocation45_spill] sm:$0xff] %v4610_v0  ;;  %v4623_v52 = vld [vmem:[%s7284_s0 + $0x95] sm:$0x1]  ;;  %v4674_v0 = vmax.bf16 %v4378_v22, %v4358_v18  ;;  %v4718_v22 = vmax.bf16 %v4414_v28, %v4399_v26 }
  0x3c   :  { %7530 = vst [vmem:[#allocation46_spill] sm:$0xff] %v4614_v1  ;;  %7531 = vst [vmem:[#allocation47_spill] sm:$0xff] %v4618_v43  ;;  %v4628_v27 = vld [vmem:[%s7284_s0 + $0x96] sm:$0x1]  ;;  %v4633_v53 = vld [vmem:[%s7284_s0 + $0x97] sm:$0x1]  ;;  %v4666_v43 = vmax.bf16 %v4368_v20, %v4348_v16  ;;  %v4670_v1 = vmax.bf16 %v4373_v21, %v4353_v17 }
  0x3d   :  { %v4638_v6 = vld [vmem:[%s7284_s0 + $0x9d] sm:$0x1]  ;;  %v4643_v7 = vld [vmem:[%s7284_s0 + $0x9e] sm:$0x1]  ;;  %v4648_v8 = vld [vmem:[%s7284_s0 + $0x9f] sm:$0x1] }
  0x3e   :  { %v4653_v9 = vld [vmem:[%s7284_s0 + $0xa0] sm:$0x1]  ;;  %v4658_v10 = vld [vmem:[%s7284_s0 + $0xa8] sm:$0x1]  ;;  %7532 = vst [vmem:[#allocation48_spill] sm:$0xff] %v4662_v11  ;;  %7533 = vst [vmem:[#allocation49_spill] sm:$0xff] %v4666_v43  ;;  %v4730_v43 = vmax.bf16 %v4434_v32, %v4429_v31  ;;  %v4774_v32 = vmax.bf16 %v4475_v37, %v4455_v23 }
  0x3f   :  { %7534 = vst [vmem:[#allocation50_spill] sm:$0xff] %v4670_v1  ;;  %7535 = vst [vmem:[#allocation51_spill] sm:$0xff] %v4674_v0  ;;  %v4679_v63 = vld [vmem:[%s7284_s0 + $0xa1] sm:$0x1]  ;;  %v4684_v13 = vld [vmem:[%s7284_s0 + $0xa2] sm:$0x1]  ;;  %v4722_v0 = vmax.bf16 %v4419_v29, %v4404_v15  ;;  %v4726_v1 = vmax.bf16 %v4424_v30, %v4409_v14 }
  0x40   :  { %v4689_v16 = vld [vmem:[%s7284_s0 + $0xa3] sm:$0x1]  ;;  %v4694_v17 = vld [vmem:[%s7284_s0 + $0xa4] sm:$0x1]  ;;  %v4699_v18 = vld [vmem:[%s7284_s0 + $0xa9] sm:$0x1] }
  0x41   :  { %v4704_v19 = vld [vmem:[%s7284_s0 + $0xaa] sm:$0x1]  ;;  %v4709_v20 = vld [vmem:[%s7284_s0 + $0xab] sm:$0x1]  ;;  %v4714_v21 = vld [vmem:[%s7284_s0 + $0xac] sm:$0x1] }
  0x42   :  { %7536 = vst [vmem:[#allocation52_spill] sm:$0xff] %v4718_v22  ;;  %7537 = vst [vmem:[#allocation53_spill] sm:$0xff] %v4722_v0  ;;  %v4735_v11 = vld [vmem:[%s7284_s0 + $0xa5] sm:$0x1]  ;;  %v4740_v26 = vld [vmem:[%s7284_s0 + $0xa6] sm:$0x1]  ;;  %v4786_v0 = vmax.bf16 %v4490_v40, %v4470_v36  ;;  %v4830_v40 = vmax.bf16 %v4526_v47, %v4511_v33 }
  0x43   :  { %7538 = vst [vmem:[#allocation54_spill] sm:$0xff] %v4726_v1  ;;  %7539 = vst [vmem:[#allocation55_spill] sm:$0xff] %v4730_v43  ;;  %v4745_v15 = vld [vmem:[%s7284_s0 + $0xa7] sm:$0x1]  ;;  %v4750_v14 = vld [vmem:[%s7284_s0 + $0xad] sm:$0x1]  ;;  %v4778_v43 = vmax.bf16 %v4480_v38, %v4460_v25  ;;  %v4782_v1 = vmax.bf16 %v4485_v39, %v4465_v24 }
  0x44   :  { %v4755_v28 = vld [vmem:[%s7284_s0 + $0xae] sm:$0x1]  ;;  %v4760_v29 = vld [vmem:[%s7284_s0 + $0xaf] sm:$0x1]  ;;  %v4765_v30 = vld [vmem:[%s7284_s0 + $0xb0] sm:$0x1] }
  0x45   :  { %v4770_v31 = vld [vmem:[%s7284_s0 + $0xb8] sm:$0x1]  ;;  %7540 = vst [vmem:[#allocation56_spill] sm:$0xff] %v4774_v32  ;;  %7541 = vst [vmem:[#allocation57_spill] sm:$0xff] %v4778_v43  ;;  %v4791_v22 = vld [vmem:[%s7284_s0 + $0xb1] sm:$0x1]  ;;  %v4842_v43 = vmax.bf16 %v4546_v51, %v4541_v50  ;;  %v4886_v51 = vmax.bf16 %v4587_v59, %v4567_v41 }
  0x46   :  { %7542 = vst [vmem:[#allocation58_spill] sm:$0xff] %v4782_v1  ;;  %7543 = vst [vmem:[#allocation59_spill] sm:$0xff] %v4786_v0  ;;  %v4796_v23 = vld [vmem:[%s7284_s0 + $0xb2] sm:$0x1]  ;;  %v4801_v25 = vld [vmem:[%s7284_s0 + $0xb3] sm:$0x1]  ;;  %v4834_v0 = vmax.bf16 %v4531_v48, %v4516_v35  ;;  %v4838_v1 = vmax.bf16 %v4536_v49, %v4521_v46 }
  0x47   :  { %v4806_v24 = vld [vmem:[%s7284_s0 + $0xb4] sm:$0x1]  ;;  %v4811_v36 = vld [vmem:[%s7284_s0 + $0xb9] sm:$0x1]  ;;  %v4816_v37 = vld [vmem:[%s7284_s0 + $0xba] sm:$0x1] }
  0x48   :  { %v4821_v38 = vld [vmem:[%s7284_s0 + $0xbb] sm:$0x1]  ;;  %v4826_v39 = vld [vmem:[%s7284_s0 + $0xbc] sm:$0x1]  ;;  %7544 = vst [vmem:[#allocation60_spill] sm:$0xff] %v4830_v40  ;;  %7545 = vst [vmem:[#allocation61_spill] sm:$0xff] %v4834_v0  ;;  %v4898_v0 = vmax.bf16 %v4602_v62, %v4582_v58  ;;  %v4942_v62 = vmax.bf16 %v4638_v6, %v4623_v52 }
  0x49   :  { %7546 = vst [vmem:[#allocation62_spill] sm:$0xff] %v4838_v1  ;;  %7547 = vst [vmem:[#allocation63_spill] sm:$0xff] %v4842_v43  ;;  %v4847_v32 = vld [vmem:[%s7284_s0 + $0xb5] sm:$0x1]  ;;  %v4852_v33 = vld [vmem:[%s7284_s0 + $0xb6] sm:$0x1]  ;;  %v4890_v43 = vmax.bf16 %v4592_v60, %v4572_v42  ;;  %v4894_v1 = vmax.bf16 %v4597_v61, %v4577_v34 }
  0x4a   :  { %v4857_v35 = vld [vmem:[%s7284_s0 + $0xb7] sm:$0x1]  ;;  %v4862_v46 = vld [vmem:[%s7284_s0 + $0xbd] sm:$0x1]  ;;  %v4867_v47 = vld [vmem:[%s7284_s0 + $0xbe] sm:$0x1] }
  0x4b   :  { %v4872_v48 = vld [vmem:[%s7284_s0 + $0xbf] sm:$0x1]  ;;  %v4877_v49 = vld [vmem:[%s7284_s0 + $0xc0] sm:$0x1]  ;;  %v4882_v50 = vld [vmem:[%s7284_s0 + $0xc8] sm:$0x1] }
  0x4c   :  { %7548 = vst [vmem:[#allocation64_spill] sm:$0xff] %v4886_v51  ;;  %7549 = vst [vmem:[#allocation65_spill] sm:$0xff] %v4890_v43  ;;  %v4903_v40 = vld [vmem:[%s7284_s0 + $0xc1] sm:$0x1]  ;;  %v4908_v41 = vld [vmem:[%s7284_s0 + $0xc2] sm:$0x1]  ;;  %v4954_v43 = vmax.bf16 %v4658_v10, %v4653_v9  ;;  %v4988_v10 = vmax.bf16 %v4699_v18, %v4679_v63 }
  0x4d   :  { %7550 = vst [vmem:[#allocation66_spill] sm:$0xff] %v4894_v1  ;;  %7551 = vst [vmem:[#allocation67_spill] sm:$0xff] %v4898_v0  ;;  %v4913_v42 = vld [vmem:[%s7284_s0 + $0xc3] sm:$0x1]  ;;  %v4918_v34 = vld [vmem:[%s7284_s0 + $0xc4] sm:$0x1]  ;;  %v4946_v0 = vmax.bf16 %v4643_v7, %v4628_v27  ;;  %v4950_v1 = vmax.bf16 %v4648_v8, %v4633_v53 }
  0x4e   :  { %v4923_v58 = vld [vmem:[%s7284_s0 + $0xc9] sm:$0x1]  ;;  %v4928_v59 = vld [vmem:[%s7284_s0 + $0xca] sm:$0x1]  ;;  %v4933_v60 = vld [vmem:[%s7284_s0 + $0xcb] sm:$0x1] }
  0x4f   :  { %v4938_v61 = vld [vmem:[%s7284_s0 + $0xcc] sm:$0x1]  ;;  %7552 = vst [vmem:[#allocation68_spill] sm:$0xff] %v4942_v62  ;;  %7553 = vst [vmem:[#allocation69_spill] sm:$0xff] %v4946_v0  ;;  %v4959_v51 = vld [vmem:[%s7284_s0 + $0xc5] sm:$0x1]  ;;  %v5000_v0 = vmax.bf16 %v4714_v21, %v4694_v17  ;;  %v5028_v21 = vmax.bf16 %v4750_v14, %v4735_v11 }
  0x50   :  { %7554 = vst [vmem:[#allocation70_spill] sm:$0xff] %v4950_v1  ;;  %7555 = vst [vmem:[#allocation71_spill] sm:$0xff] %v4954_v43  ;;  %v4964_v52 = vld [vmem:[%s7284_s0 + $0xc6] sm:$0x1]  ;;  %v4969_v27 = vld [vmem:[%s7284_s0 + $0xc7] sm:$0x1]  ;;  %v4992_v43 = vmax.bf16 %v4704_v19, %v4684_v13  ;;  %v4996_v1 = vmax.bf16 %v4709_v20, %v4689_v16 }
  0x51   :  { %v213_v53 = vld [vmem:[%s7284_s0 + $0xcd] sm:$0x1]  ;;  %v214_v6 = vld [vmem:[%s7284_s0 + $0xce] sm:$0x1]  ;;  %v215_v7 = vld [vmem:[%s7284_s0 + $0xcf] sm:$0x1] }
  0x52   :  { %v216_v8 = vld [vmem:[%s7284_s0 + $0xd0] sm:$0x1]  ;;  %v224_v9 = vld [vmem:[%s7284_s0 + $0xd8] sm:$0x1]  ;;  %7556 = vst [vmem:[#allocation72_spill] sm:$0xff] %v4988_v10  ;;  %7557 = vst [vmem:[#allocation73_spill] sm:$0xff] %v4992_v43  ;;  %v5040_v43 = vmax.bf16 %v4770_v31, %v4765_v30  ;;  %v5068_v31 = vmax.bf16 %v4811_v36, %v4791_v22 }
  0x53   :  { %7558 = vst [vmem:[#allocation74_spill] sm:$0xff] %v4996_v1  ;;  %7559 = vst [vmem:[#allocation75_spill] sm:$0xff] %v5000_v0  ;;  %v217_v62 = vld [vmem:[%s7284_s0 + $0xd1] sm:$0x1]  ;;  %v218_v63 = vld [vmem:[%s7284_s0 + $0xd2] sm:$0x1]  ;;  %v5032_v0 = vmax.bf16 %v4755_v28, %v4740_v26  ;;  %v5036_v1 = vmax.bf16 %v4760_v29, %v4745_v15 }
  0x54   :  { %v219_v13 = vld [vmem:[%s7284_s0 + $0xd3] sm:$0x1]  ;;  %v220_v16 = vld [vmem:[%s7284_s0 + $0xd4] sm:$0x1]  ;;  %v225_v17 = vld [vmem:[%s7284_s0 + $0xd9] sm:$0x1] }
  0x55   :  { %v226_v18 = vld [vmem:[%s7284_s0 + $0xda] sm:$0x1]  ;;  %v227_v19 = vld [vmem:[%s7284_s0 + $0xdb] sm:$0x1]  ;;  %v228_v20 = vld [vmem:[%s7284_s0 + $0xdc] sm:$0x1] }
  0x56   :  { %7560 = vst [vmem:[#allocation76_spill] sm:$0xff] %v5028_v21  ;;  %7561 = vst [vmem:[#allocation77_spill] sm:$0xff] %v5032_v0  ;;  %v221_v10 = vld [vmem:[%s7284_s0 + $0xd5] sm:$0x1]  ;;  %v222_v11 = vld [vmem:[%s7284_s0 + $0xd6] sm:$0x1]  ;;  %v5080_v0 = vmax.bf16 %v4826_v39, %v4806_v24  ;;  %v5108_v39 = vmax.bf16 %v4862_v46, %v4847_v32 }
  0x57   :  { %7562 = vst [vmem:[#allocation78_spill] sm:$0xff] %v5036_v1  ;;  %7563 = vst [vmem:[#allocation79_spill] sm:$0xff] %v5040_v43  ;;  %v223_v26 = vld [vmem:[%s7284_s0 + $0xd7] sm:$0x1]  ;;  %v229_v15 = vld [vmem:[%s7284_s0 + $0xdd] sm:$0x1]  ;;  %v5072_v43 = vmax.bf16 %v4816_v37, %v4796_v23  ;;  %v5076_v1 = vmax.bf16 %v4821_v38, %v4801_v25 }
  0x58   :  { %v230_v14 = vld [vmem:[%s7284_s0 + $0xde] sm:$0x1]  ;;  %v231_v28 = vld [vmem:[%s7284_s0 + $0xdf] sm:$0x1]  ;;  %v232_v29 = vld [vmem:[%s7284_s0 + $0xe0] sm:$0x1] }
  0x59   :  { %v240_v30 = vld [vmem:[%s7284_s0 + $0xe8] sm:$0x1]  ;;  %7564 = vst [vmem:[#allocation80_spill] sm:$0xff] %v5068_v31  ;;  %7565 = vst [vmem:[#allocation81_spill] sm:$0xff] %v5072_v43  ;;  %v233_v21 = vld [vmem:[%s7284_s0 + $0xe1] sm:$0x1]  ;;  %v5120_v43 = vmax.bf16 %v4882_v50, %v4877_v49  ;;  %v5145_v49 = vmax.bf16 %v4923_v58, %v4903_v40  ;;  %v5149_v50 = vmax.bf16 %v4928_v59, %v4908_v41 }
  0x5a   :  { %7566 = vst [vmem:[#allocation82_spill] sm:$0xff] %v5076_v1  ;;  %7567 = vst [vmem:[#allocation83_spill] sm:$0xff] %v5080_v0  ;;  %v234_v22 = vld [vmem:[%s7284_s0 + $0xe2] sm:$0x1]  ;;  %v235_v23 = vld [vmem:[%s7284_s0 + $0xe3] sm:$0x1]  ;;  %v5112_v0 = vmax.bf16 %v4867_v47, %v4852_v33  ;;  %v5116_v1 = vmax.bf16 %v4872_v48, %v4857_v35  ;;  %v5172_v58 = vmax.bf16 %v213_v53, %v4959_v51 }
  0x5b   :  { %v236_v25 = vld [vmem:[%s7284_s0 + $0xe4] sm:$0x1]  ;;  %v241_v24 = vld [vmem:[%s7284_s0 + $0xe9] sm:$0x1]  ;;  %v242_v36 = vld [vmem:[%s7284_s0 + $0xea] sm:$0x1]  ;;  %v5178_v59 = vmax.bf16 %v215_v7, %v4969_v27  ;;  %v5197_v53 = vmax.bf16 %v225_v17, %v217_v62  ;;  %v5201_v7 = vmax.bf16 %v227_v19, %v219_v13  ;;  %v5214_v62 = vmax.bf16 %v229_v15, %v221_v10 }
  0x5c   :  { %v243_v37 = vld [vmem:[%s7284_s0 + $0xeb] sm:$0x1]  ;;  %v244_v38 = vld [vmem:[%s7284_s0 + $0xec] sm:$0x1]  ;;  %7568 = vst [vmem:[#allocation84_spill] sm:$0xff] %v5108_v39  ;;  %7569 = vst [vmem:[#allocation85_spill] sm:$0xff] %v5112_v0  ;;  %v5218_v13 = vmax.bf16 %v231_v28, %v223_v26  ;;  %v5231_v10 = vmax.bf16 %v241_v24, %v233_v21 }
  0x5d   :  { %7570 = vst [vmem:[#allocation86_spill] sm:$0xff] %v5116_v1  ;;  %7571 = vst [vmem:[#allocation87_spill] sm:$0xff] %v5120_v43  ;;  %v237_v31 = vld [vmem:[%s7284_s0 + $0xe5] sm:$0x1]  ;;  %v238_v32 = vld [vmem:[%s7284_s0 + $0xe6] sm:$0x1]  ;;  %v5153_v43 = vmax.bf16 %v4933_v60, %v4913_v42  ;;  %v5157_v1 = vmax.bf16 %v4938_v61, %v4918_v34  ;;  %v5175_v34 = vmax.bf16 %v214_v6, %v4964_v52 }
  0x5e   :  { %v239_v33 = vld [vmem:[%s7284_s0 + $0xe7] sm:$0x1]  ;;  %v245_v35 = vld [vmem:[%s7284_s0 + $0xed] sm:$0x1]  ;;  %v246_v46 = vld [vmem:[%s7284_s0 + $0xee] sm:$0x1]  ;;  %v5180_v60 = vmax.bf16 %v224_v9, %v216_v8  ;;  %v5199_v6 = vmax.bf16 %v226_v18, %v218_v63  ;;  %v5203_v8 = vmax.bf16 %v228_v20, %v220_v16  ;;  %v5216_v63 = vmax.bf16 %v230_v14, %v222_v11 }
  0x5f   :  { %v247_v47 = vld [vmem:[%s7284_s0 + $0xef] sm:$0x1]  ;;  %v248_v48 = vld [vmem:[%s7284_s0 + $0xf0] sm:$0x1]  ;;  %7572 = vst [vmem:[#allocation88_spill] sm:$0xff] %v5157_v1  ;;  %7573 = vst [vmem:[#allocation89_spill] sm:$0xff] %v5172_v58  ;;  %v5220_v16 = vmax.bf16 %v240_v30, %v232_v29  ;;  %v5233_v20 = vmax.bf16 %v242_v36, %v234_v22  ;;  %v5235_v11 = vmax.bf16 %v243_v37, %v235_v23 }
  0x60   :  { %v249_v0 = vld [vmem:[%s7284_s0 + $0xf1] sm:$0x1]  ;;  %v250_v40 = vld [vmem:[%s7284_s0 + $0xf2] sm:$0x1]  ;;  %v251_v41 = vld [vmem:[%s7284_s0 + $0xf3] sm:$0x1]  ;;  %v5237_v26 = vmax.bf16 %v244_v38, %v236_v25  ;;  %v5239_v15 = vmax.bf16 %v245_v35, %v237_v31  ;;  %v5241_v14 = vmax.bf16 %v246_v46, %v238_v32  ;;  %v5243_v28 = vmax.bf16 %v247_v47, %v239_v33 }
  0x61   :  { %v252_v42 = vld [vmem:[%s7284_s0 + $0xf4] sm:$0x1]  ;;  %7574 = vst [vmem:[#allocation90_spill] sm:$0xff] %v5178_v59  ;;  %7575 = vst [vmem:[#allocation91_spill] sm:$0xff] %v5180_v60  ;;  %v253_v61 = vld [vmem:[%s7284_s0 + $0xf5] sm:$0x1] }
  0x62   :  { %v254_v1 = vld [vmem:[%s7284_s0 + $0xf6] sm:$0x1]  ;;  %v255_v51 = vld [vmem:[%s7284_s0 + $0xf7] sm:$0x1]  ;;  %v256_v52 = vld [vmem:[%s7284_s0 + $0xf8] sm:$0x1] }
  0x63   :  { %v257_v27 = vld [vmem:[%s7284_s0 + $0xf9] sm:$0x1]  ;;  %v258_v9 = vld [vmem:[%s7284_s0 + $0xfa] sm:$0x1]  ;;  %v259_v60 = vld [vmem:[%s7284_s0 + $0xfb] sm:$0x1]  ;;  %v5245_v29 = vmax.bf16 %v256_v52, %v248_v48 }
  0x64   :  { %v260_v59 = vld [vmem:[%s7284_s0 + $0xfc] sm:$0x1]  ;;  %7576 = vst [vmem:[#allocation92_spill] sm:$0xff] %v5220_v16  ;;  %v261_v17 = vld [vmem:[%s7284_s0 + $0xfd] sm:$0x1]  ;;  %v5247_v30 = vmax.bf16 %v257_v27, %v249_v0  ;;  %v5249_v16 = vmax.bf16 %v258_v9, %v250_v40  ;;  %v5251_v21 = vmax.bf16 %v259_v60, %v251_v41  ;;  %v7577_v48 = vld [vmem:[#allocation2_spill] sm:$0xff] }
  0x65   :  { %v262_v18 = vld [vmem:[%s7284_s0 + $0xfe] sm:$0x1]  ;;  %v263_v19 = vld [vmem:[%s7284_s0 + $0xff] sm:$0x1]  ;;  %v5253_v22 = vmax.bf16 %v260_v59, %v252_v42  ;;  %v5255_v23 = vmax.bf16 %v261_v17, %v253_v61  ;;  %v7578_v41 = vld [vmem:[#allocation3_spill] sm:$0xff]  ;;  %v7667_v40 = vshrl.u32 %v3902_v45, 16 }
  0x66   :  { %v5257_v25 = vmax.bf16 %v262_v18, %v254_v1  ;;  %v5259_v31 = vmax.bf16 %v263_v19, %v255_v51  ;;  %v7579_v59 = vld [vmem:[#allocation4_spill] sm:$0xff]  ;;  %v7580_v61 = vld [vmem:[#allocation5_spill] sm:$0xff]  ;;  %v7653_v38 = vld [vmem:[#allocation78_spill] sm:$0xff]  ;;  %v7666_v1 = vshrl.u32 %v3900_v44, 16  ;;  %v7668_v60 = vshrl.u32 %v3940_v54, 16 }
  0x67   :  { %v7648_v9 = vld [vmem:[#allocation73_spill] sm:$0xff]  ;;  %v7654_v0 = vld [vmem:[#allocation79_spill] sm:$0xff]  ;;  %v7657_v24 = vld [vmem:[#allocation82_spill] sm:$0xff]  ;;  %v5397_v47 = vmax.bf16 %v7667_v40, %v3902_v45  ;;  %v7669_v17 = vshrl.u32 %v3942_v55, 16  ;;  %v7670_v19 = vshrl.u32 %v3944_v56, 16  ;;  %v7672_v40 = vshrl.u32 %v3980_v2, 16 }
  0x68   :  { %v7652_v32 = vld [vmem:[#allocation77_spill] sm:$0xff]  ;;  %v7660_v35 = vld [vmem:[#allocation86_spill] sm:$0xff]  ;;  %v7661_v33 = vld [vmem:[#allocation87_spill] sm:$0xff]  ;;  %v5392_v46 = vmax.bf16 %v7666_v1, %v3900_v44  ;;  %v5402_v51 = vmax.bf16 %v7668_v60, %v3940_v54  ;;  %v7671_v1 = vshrl.u32 %v3946_v57, 16  ;;  %v7673_v60 = vshrl.u32 %v3982_v3, 16 }
  0x69   :  { %v7656_v36 = vld [vmem:[#allocation81_spill] sm:$0xff]  ;;  %v7662_v37 = vld [vmem:[#allocation88_spill] sm:$0xff]  ;;  %v7663_v52 = vld [vmem:[#allocation90_spill] sm:$0xff]  ;;  %v5407_v27 = vmax.bf16 %v7669_v17, %v3942_v55  ;;  %v5412_v44 = vmax.bf16 %v7670_v19, %v3944_v56  ;;  %v5422_v54 = vmax.bf16 %v7672_v40, %v3980_v2  ;;  %v7674_v17 = vshrl.u32 %v3984_v4, 16 }
  0x6a   :  { %v7659_v18 = vld [vmem:[#allocation85_spill] sm:$0xff]  ;;  %v7664_v39 = vld [vmem:[#allocation91_spill] sm:$0xff]  ;;  %v5417_v45 = vmax.bf16 %v7671_v1, %v3946_v57  ;;  %v5427_v55 = vmax.bf16 %v7673_v60, %v3982_v3  ;;  %v7675_v19 = vshrl.u32 %v3986_v5, 16  ;;  %v7676_v1 = vshrl.u32 %v4018_v12, 16 }
  0x6b   :  { %v7665_v58 = vld [vmem:[#allocation92_spill] sm:$0xff]  ;;  %v5432_v56 = vmax.bf16 %v7674_v17, %v3984_v4  ;;  %v7677_v40 = vshrl.u32 %v7577_v48, 16  ;;  %v7679_v60 = vshrl.u32 %v7578_v41, 16  ;;  %v7681_v17 = vshrl.u32 %v7579_v59, 16 }
  0x6c   :  { %v5437_v57 = vmax.bf16 %v7675_v19, %v3986_v5  ;;  %v5442_v2 = vmax.bf16 %v7676_v1, %v4018_v12  ;;  %v7683_v19 = vshrl.u32 %v7580_v61, 16  ;;  %v7685_v1 = vld [vmem:[#allocation6_spill] sm:$0xff]  ;;  %vm3349_vm4 = vcmask 1045509  }
  0x6d   :  { %v5447_v3 = vmax.bf16 %v7677_v40, %v7577_v48  ;;  %v5452_v4 = vmax.bf16 %v7679_v60, %v7578_v41  ;;  %v5457_v5 = vmax.bf16 %v7681_v17, %v7579_v59  ;;  %v7686_v42 = vshrl.u32 %v7685_v1, 16  ;;  %v7688_v40 = vld [vmem:[#allocation7_spill] sm:$0xff]  ;;  %v7691_v60 = vld [vmem:[#allocation8_spill] sm:$0xff]  ;;  %v7694_v17 = vld [vmem:[#allocation9_spill] sm:$0xff] }
  0x6e   :  { %v5462_v12 = vmax.bf16 %v7683_v19, %v7580_v61  ;;  %v7697_v19 = vld [vmem:[#allocation10_spill] sm:$0xff]  ;;  %vm3352_vm5 = vcmask 1046534   ;;  %vm3355_vm6 = vcmask 1047559   ;;  %vm3599_vm7 = vcmask 27648  }
  0x6f   :  { %7678 = vst [vmem:[#allocation2_spill] sm:$0xff] %v5447_v3  ;;  %7680 = vst [vmem:[#allocation3_spill] sm:$0xff] %v5452_v4  ;;  %v5467_v48 = vmax.bf16 %v7686_v42, %v7685_v1  ;;  %v7689_v3 = vshrl.u32 %v7688_v40, 16  ;;  %v7692_v4 = vshrl.u32 %v7691_v60, 16  ;;  %v7700_v1 = vld [vmem:[#allocation11_spill] sm:$0xff] }
  0x70   :  { %7682 = vst [vmem:[#allocation4_spill] sm:$0xff] %v5457_v5  ;;  %7684 = vst [vmem:[#allocation5_spill] sm:$0xff] %v5462_v12  ;;  %v7695_v5 = vshrl.u32 %v7694_v17, 16  ;;  %v7698_v12 = vshrl.u32 %v7697_v19, 16 }
  0x71   :  { %7687 = vst [vmem:[#allocation73_spill] sm:$0xff] %v5467_v48  ;;  %v5472_v41 = vmax.bf16 %v7689_v3, %v7688_v40  ;;  %v5477_v59 = vmax.bf16 %v7692_v4, %v7691_v60  ;;  %v7701_v48 = vshrl.u32 %v7700_v1, 16  ;;  %v7703_v40 = vld [vmem:[#allocation12_spill] sm:$0xff]  ;;  %v7706_v60 = vld [vmem:[#allocation13_spill] sm:$0xff] }
  0x72   :  { %v5482_v61 = vmax.bf16 %v7695_v5, %v7694_v17  ;;  %v5487_v42 = vmax.bf16 %v7698_v12, %v7697_v19  ;;  %v7709_v17 = vld [vmem:[#allocation14_spill] sm:$0xff]  ;;  %v7712_v19 = vld [vmem:[#allocation15_spill] sm:$0xff] }
  0x73   :  { %7690 = vst [vmem:[#allocation77_spill] sm:$0xff] %v5472_v41  ;;  %7693 = vst [vmem:[#allocation78_spill] sm:$0xff] %v5477_v59  ;;  %v5492_v3 = vmax.bf16 %v7701_v48, %v7700_v1  ;;  %v7704_v41 = vshrl.u32 %v7703_v40, 16  ;;  %v7707_v59 = vshrl.u32 %v7706_v60, 16  ;;  %v7715_v1 = vld [vmem:[#allocation16_spill] sm:$0xff] }
  0x74   :  { %7696 = vst [vmem:[#allocation79_spill] sm:$0xff] %v5482_v61  ;;  %7699 = vst [vmem:[#allocation81_spill] sm:$0xff] %v5487_v42  ;;  %v7710_v61 = vshrl.u32 %v7709_v17, 16  ;;  %v7713_v42 = vshrl.u32 %v7712_v19, 16 }
  0x75   :  { %7702 = vst [vmem:[#allocation82_spill] sm:$0xff] %v5492_v3  ;;  %v5497_v4 = vmax.bf16 %v7704_v41, %v7703_v40  ;;  %v5502_v5 = vmax.bf16 %v7707_v59, %v7706_v60  ;;  %v7716_v3 = vshrl.u32 %v7715_v1, 16  ;;  %v7718_v40 = vld [vmem:[#allocation17_spill] sm:$0xff]  ;;  %v7721_v60 = vld [vmem:[#allocation18_spill] sm:$0xff] }
  0x76   :  { %v5507_v12 = vmax.bf16 %v7710_v61, %v7709_v17  ;;  %v5512_v48 = vmax.bf16 %v7713_v42, %v7712_v19  ;;  %v7724_v17 = vld [vmem:[#allocation19_spill] sm:$0xff]  ;;  %v7727_v19 = vld [vmem:[#allocation20_spill] sm:$0xff] }
  0x77   :  { %7705 = vst [vmem:[#allocation85_spill] sm:$0xff] %v5497_v4  ;;  %7708 = vst [vmem:[#allocation86_spill] sm:$0xff] %v5502_v5  ;;  %v5517_v41 = vmax.bf16 %v7716_v3, %v7715_v1  ;;  %v7719_v4 = vshrl.u32 %v7718_v40, 16  ;;  %v7722_v5 = vshrl.u32 %v7721_v60, 16  ;;  %v7730_v1 = vld [vmem:[#allocation21_spill] sm:$0xff] }
  0x78   :  { %7711 = vst [vmem:[#allocation87_spill] sm:$0xff] %v5507_v12  ;;  %7714 = vst [vmem:[#allocation88_spill] sm:$0xff] %v5512_v48  ;;  %v7725_v12 = vshrl.u32 %v7724_v17, 16  ;;  %v7728_v48 = vshrl.u32 %v7727_v19, 16 }
  0x79   :  { %7717 = vst [vmem:[#allocation90_spill] sm:$0xff] %v5517_v41  ;;  %v5522_v59 = vmax.bf16 %v7719_v4, %v7718_v40  ;;  %v5527_v61 = vmax.bf16 %v7722_v5, %v7721_v60  ;;  %v7731_v41 = vshrl.u32 %v7730_v1, 16  ;;  %v7733_v40 = vld [vmem:[#allocation22_spill] sm:$0xff]  ;;  %v7736_v60 = vld [vmem:[#allocation23_spill] sm:$0xff] }
  0x7a   :  { %v5532_v42 = vmax.bf16 %v7725_v12, %v7724_v17  ;;  %v5537_v3 = vmax.bf16 %v7728_v48, %v7727_v19  ;;  %v7739_v17 = vld [vmem:[#allocation24_spill] sm:$0xff]  ;;  %v7742_v19 = vld [vmem:[#allocation25_spill] sm:$0xff] }
  0x7b   :  { %7720 = vst [vmem:[#allocation91_spill] sm:$0xff] %v5522_v59  ;;  %7723 = vst [vmem:[#allocation92_spill] sm:$0xff] %v5527_v61  ;;  %v5542_v4 = vmax.bf16 %v7731_v41, %v7730_v1  ;;  %v7734_v59 = vshrl.u32 %v7733_v40, 16  ;;  %v7737_v61 = vshrl.u32 %v7736_v60, 16  ;;  %v7745_v1 = vld [vmem:[#allocation26_spill] sm:$0xff] }
  0x7c   :  { %7726 = vst [vmem:[#allocation6_spill] sm:$0xff] %v5532_v42  ;;  %7729 = vst [vmem:[#allocation7_spill] sm:$0xff] %v5537_v3  ;;  %v7740_v42 = vshrl.u32 %v7739_v17, 16  ;;  %v7743_v3 = vshrl.u32 %v7742_v19, 16 }
  0x7d   :  { %7732 = vst [vmem:[#allocation8_spill] sm:$0xff] %v5542_v4  ;;  %v5547_v5 = vmax.bf16 %v7734_v59, %v7733_v40  ;;  %v5552_v12 = vmax.bf16 %v7737_v61, %v7736_v60  ;;  %v7746_v4 = vshrl.u32 %v7745_v1, 16  ;;  %v7748_v40 = vld [vmem:[#allocation27_spill] sm:$0xff]  ;;  %v7751_v60 = vld [vmem:[#allocation28_spill] sm:$0xff] }
  0x7e   :  { %v5557_v48 = vmax.bf16 %v7740_v42, %v7739_v17  ;;  %v5562_v41 = vmax.bf16 %v7743_v3, %v7742_v19  ;;  %v7754_v17 = vld [vmem:[#allocation29_spill] sm:$0xff]  ;;  %v7757_v19 = vld [vmem:[#allocation30_spill] sm:$0xff] }
  0x7f   :  { %7735 = vst [vmem:[#allocation9_spill] sm:$0xff] %v5547_v5  ;;  %7738 = vst [vmem:[#allocation10_spill] sm:$0xff] %v5552_v12  ;;  %v5567_v59 = vmax.bf16 %v7746_v4, %v7745_v1  ;;  %v7749_v5 = vshrl.u32 %v7748_v40, 16  ;;  %v7752_v12 = vshrl.u32 %v7751_v60, 16  ;;  %v7760_v1 = vld [vmem:[#allocation31_spill] sm:$0xff] }
  0x80   :  { %7741 = vst [vmem:[#allocation11_spill] sm:$0xff] %v5557_v48  ;;  %7744 = vst [vmem:[#allocation12_spill] sm:$0xff] %v5562_v41  ;;  %v7755_v48 = vshrl.u32 %v7754_v17, 16  ;;  %v7758_v41 = vshrl.u32 %v7757_v19, 16 }
  0x81   :  { %7747 = vst [vmem:[#allocation13_spill] sm:$0xff] %v5567_v59  ;;  %v5572_v61 = vmax.bf16 %v7749_v5, %v7748_v40  ;;  %v5577_v42 = vmax.bf16 %v7752_v12, %v7751_v60  ;;  %v7761_v59 = vshrl.u32 %v7760_v1, 16  ;;  %v7763_v40 = vld [vmem:[#allocation32_spill] sm:$0xff]  ;;  %v7766_v60 = vld [vmem:[#allocation33_spill] sm:$0xff] }
  0x82   :  { %v5582_v3 = vmax.bf16 %v7755_v48, %v7754_v17  ;;  %v5587_v4 = vmax.bf16 %v7758_v41, %v7757_v19  ;;  %v7769_v17 = vld [vmem:[#allocation34_spill] sm:$0xff]  ;;  %v7772_v19 = vld [vmem:[#allocation35_spill] sm:$0xff] }
  0x83   :  { %7750 = vst [vmem:[#allocation14_spill] sm:$0xff] %v5572_v61  ;;  %7753 = vst [vmem:[#allocation15_spill] sm:$0xff] %v5577_v42  ;;  %v5592_v5 = vmax.bf16 %v7761_v59, %v7760_v1  ;;  %v7764_v61 = vshrl.u32 %v7763_v40, 16  ;;  %v7767_v42 = vshrl.u32 %v7766_v60, 16  ;;  %v7775_v1 = vld [vmem:[#allocation36_spill] sm:$0xff] }
  0x84   :  { %7756 = vst [vmem:[#allocation16_spill] sm:$0xff] %v5582_v3  ;;  %7759 = vst [vmem:[#allocation17_spill] sm:$0xff] %v5587_v4  ;;  %v7770_v3 = vshrl.u32 %v7769_v17, 16  ;;  %v7773_v4 = vshrl.u32 %v7772_v19, 16 }
  0x85   :  { %7762 = vst [vmem:[#allocation18_spill] sm:$0xff] %v5592_v5  ;;  %v5597_v12 = vmax.bf16 %v7764_v61, %v7763_v40  ;;  %v5602_v48 = vmax.bf16 %v7767_v42, %v7766_v60  ;;  %v7776_v5 = vshrl.u32 %v7775_v1, 16  ;;  %v7778_v40 = vld [vmem:[#allocation37_spill] sm:$0xff]  ;;  %v7781_v60 = vld [vmem:[#allocation38_spill] sm:$0xff] }
  0x86   :  { %v5607_v41 = vmax.bf16 %v7770_v3, %v7769_v17  ;;  %v5612_v59 = vmax.bf16 %v7773_v4, %v7772_v19  ;;  %v7784_v17 = vld [vmem:[#allocation39_spill] sm:$0xff]  ;;  %v7787_v19 = vld [vmem:[#allocation40_spill] sm:$0xff] }
  0x87   :  { %7765 = vst [vmem:[#allocation19_spill] sm:$0xff] %v5597_v12  ;;  %7768 = vst [vmem:[#allocation20_spill] sm:$0xff] %v5602_v48  ;;  %v5617_v61 = vmax.bf16 %v7776_v5, %v7775_v1  ;;  %v7779_v12 = vshrl.u32 %v7778_v40, 16  ;;  %v7782_v48 = vshrl.u32 %v7781_v60, 16  ;;  %v7790_v1 = vld [vmem:[#allocation41_spill] sm:$0xff] }
  0x88   :  { %7771 = vst [vmem:[#allocation21_spill] sm:$0xff] %v5607_v41  ;;  %7774 = vst [vmem:[#allocation22_spill] sm:$0xff] %v5612_v59  ;;  %v7785_v41 = vshrl.u32 %v7784_v17, 16  ;;  %v7788_v59 = vshrl.u32 %v7787_v19, 16 }
  0x89   :  { %7777 = vst [vmem:[#allocation23_spill] sm:$0xff] %v5617_v61  ;;  %v5622_v42 = vmax.bf16 %v7779_v12, %v7778_v40  ;;  %v5627_v3 = vmax.bf16 %v7782_v48, %v7781_v60  ;;  %v7791_v61 = vshrl.u32 %v7790_v1, 16  ;;  %v7793_v40 = vld [vmem:[#allocation42_spill] sm:$0xff]  ;;  %v7796_v60 = vld [vmem:[#allocation43_spill] sm:$0xff] }
  0x8a   :  { %v5632_v4 = vmax.bf16 %v7785_v41, %v7784_v17  ;;  %v5637_v5 = vmax.bf16 %v7788_v59, %v7787_v19  ;;  %v7799_v17 = vld [vmem:[#allocation44_spill] sm:$0xff]  ;;  %v7802_v19 = vld [vmem:[#allocation45_spill] sm:$0xff] }
  0x8b   :  { %7780 = vst [vmem:[#allocation24_spill] sm:$0xff] %v5622_v42  ;;  %7783 = vst [vmem:[#allocation25_spill] sm:$0xff] %v5627_v3  ;;  %v5642_v12 = vmax.bf16 %v7791_v61, %v7790_v1  ;;  %v7794_v42 = vshrl.u32 %v7793_v40, 16  ;;  %v7797_v3 = vshrl.u32 %v7796_v60, 16  ;;  %v7805_v1 = vld [vmem:[#allocation46_spill] sm:$0xff] }
  0x8c   :  { %7786 = vst [vmem:[#allocation26_spill] sm:$0xff] %v5632_v4  ;;  %7789 = vst [vmem:[#allocation27_spill] sm:$0xff] %v5637_v5  ;;  %v7800_v4 = vshrl.u32 %v7799_v17, 16  ;;  %v7803_v5 = vshrl.u32 %v7802_v19, 16 }
  0x8d   :  { %7792 = vst [vmem:[#allocation28_spill] sm:$0xff] %v5642_v12  ;;  %v5647_v48 = vmax.bf16 %v7794_v42, %v7793_v40  ;;  %v5652_v41 = vmax.bf16 %v7797_v3, %v7796_v60  ;;  %v7806_v12 = vshrl.u32 %v7805_v1, 16  ;;  %v7808_v40 = vld [vmem:[#allocation47_spill] sm:$0xff]  ;;  %v7811_v60 = vld [vmem:[#allocation48_spill] sm:$0xff] }
  0x8e   :  { %v5657_v59 = vmax.bf16 %v7800_v4, %v7799_v17  ;;  %v5662_v61 = vmax.bf16 %v7803_v5, %v7802_v19  ;;  %v7814_v17 = vld [vmem:[#allocation49_spill] sm:$0xff]  ;;  %v7817_v19 = vld [vmem:[#allocation50_spill] sm:$0xff] }
  0x8f   :  { %7795 = vst [vmem:[#allocation29_spill] sm:$0xff] %v5647_v48  ;;  %7798 = vst [vmem:[#allocation30_spill] sm:$0xff] %v5652_v41  ;;  %v5667_v42 = vmax.bf16 %v7806_v12, %v7805_v1  ;;  %v7809_v48 = vshrl.u32 %v7808_v40, 16  ;;  %v7812_v41 = vshrl.u32 %v7811_v60, 16  ;;  %v7820_v1 = vld [vmem:[#allocation51_spill] sm:$0xff] }
  0x90   :  { %7801 = vst [vmem:[#allocation31_spill] sm:$0xff] %v5657_v59  ;;  %7804 = vst [vmem:[#allocation32_spill] sm:$0xff] %v5662_v61  ;;  %v7815_v59 = vshrl.u32 %v7814_v17, 16  ;;  %v7818_v61 = vshrl.u32 %v7817_v19, 16 }
  0x91   :  { %7807 = vst [vmem:[#allocation33_spill] sm:$0xff] %v5667_v42  ;;  %v5672_v3 = vmax.bf16 %v7809_v48, %v7808_v40  ;;  %v5677_v4 = vmax.bf16 %v7812_v41, %v7811_v60  ;;  %v7821_v42 = vshrl.u32 %v7820_v1, 16  ;;  %v7823_v40 = vld [vmem:[#allocation52_spill] sm:$0xff]  ;;  %v7826_v60 = vld [vmem:[#allocation53_spill] sm:$0xff] }
  0x92   :  { %v5682_v5 = vmax.bf16 %v7815_v59, %v7814_v17  ;;  %v5687_v12 = vmax.bf16 %v7818_v61, %v7817_v19  ;;  %v7829_v17 = vld [vmem:[#allocation54_spill] sm:$0xff]  ;;  %v7832_v19 = vld [vmem:[#allocation55_spill] sm:$0xff] }
  0x93   :  { %7810 = vst [vmem:[#allocation34_spill] sm:$0xff] %v5672_v3  ;;  %7813 = vst [vmem:[#allocation35_spill] sm:$0xff] %v5677_v4  ;;  %v5692_v48 = vmax.bf16 %v7821_v42, %v7820_v1  ;;  %v7824_v3 = vshrl.u32 %v7823_v40, 16  ;;  %v7827_v4 = vshrl.u32 %v7826_v60, 16  ;;  %v7835_v1 = vld [vmem:[#allocation56_spill] sm:$0xff] }
  0x94   :  { %7816 = vst [vmem:[#allocation36_spill] sm:$0xff] %v5682_v5  ;;  %7819 = vst [vmem:[#allocation37_spill] sm:$0xff] %v5687_v12  ;;  %v7830_v5 = vshrl.u32 %v7829_v17, 16  ;;  %v7833_v12 = vshrl.u32 %v7832_v19, 16 }
  0x95   :  { %7822 = vst [vmem:[#allocation38_spill] sm:$0xff] %v5692_v48  ;;  %v5697_v41 = vmax.bf16 %v7824_v3, %v7823_v40  ;;  %v5702_v59 = vmax.bf16 %v7827_v4, %v7826_v60  ;;  %v7836_v48 = vshrl.u32 %v7835_v1, 16  ;;  %v7838_v40 = vld [vmem:[#allocation57_spill] sm:$0xff]  ;;  %v7841_v60 = vld [vmem:[#allocation58_spill] sm:$0xff] }
  0x96   :  { %v5707_v61 = vmax.bf16 %v7830_v5, %v7829_v17  ;;  %v5712_v42 = vmax.bf16 %v7833_v12, %v7832_v19  ;;  %v7844_v17 = vld [vmem:[#allocation59_spill] sm:$0xff]  ;;  %v7847_v19 = vld [vmem:[#allocation60_spill] sm:$0xff] }
  0x97   :  { %7825 = vst [vmem:[#allocation39_spill] sm:$0xff] %v5697_v41  ;;  %7828 = vst [vmem:[#allocation40_spill] sm:$0xff] %v5702_v59  ;;  %v5717_v3 = vmax.bf16 %v7836_v48, %v7835_v1  ;;  %v7839_v41 = vshrl.u32 %v7838_v40, 16  ;;  %v7842_v59 = vshrl.u32 %v7841_v60, 16  ;;  %v7850_v1 = vld [vmem:[#allocation61_spill] sm:$0xff] }
  0x98   :  { %7831 = vst [vmem:[#allocation41_spill] sm:$0xff] %v5707_v61  ;;  %7834 = vst [vmem:[#allocation42_spill] sm:$0xff] %v5712_v42  ;;  %v7845_v61 = vshrl.u32 %v7844_v17, 16  ;;  %v7848_v42 = vshrl.u32 %v7847_v19, 16 }
  0x99   :  { %7837 = vst [vmem:[#allocation43_spill] sm:$0xff] %v5717_v3  ;;  %v5722_v4 = vmax.bf16 %v7839_v41, %v7838_v40  ;;  %v5727_v5 = vmax.bf16 %v7842_v59, %v7841_v60  ;;  %v7851_v3 = vshrl.u32 %v7850_v1, 16  ;;  %v7853_v40 = vld [vmem:[#allocation62_spill] sm:$0xff]  ;;  %v7856_v60 = vld [vmem:[#allocation63_spill] sm:$0xff] }
  0x9a   :  { %v5732_v12 = vmax.bf16 %v7845_v61, %v7844_v17  ;;  %v5737_v48 = vmax.bf16 %v7848_v42, %v7847_v19  ;;  %v7859_v17 = vld [vmem:[#allocation64_spill] sm:$0xff]  ;;  %v7862_v19 = vld [vmem:[#allocation65_spill] sm:$0xff] }
  0x9b   :  { %7840 = vst [vmem:[#allocation44_spill] sm:$0xff] %v5722_v4  ;;  %7843 = vst [vmem:[#allocation45_spill] sm:$0xff] %v5727_v5  ;;  %v5742_v41 = vmax.bf16 %v7851_v3, %v7850_v1  ;;  %v7854_v4 = vshrl.u32 %v7853_v40, 16  ;;  %v7857_v5 = vshrl.u32 %v7856_v60, 16  ;;  %v7865_v1 = vld [vmem:[#allocation66_spill] sm:$0xff] }
  0x9c   :  { %7846 = vst [vmem:[#allocation46_spill] sm:$0xff] %v5732_v12  ;;  %7849 = vst [vmem:[#allocation47_spill] sm:$0xff] %v5737_v48  ;;  %v7860_v12 = vshrl.u32 %v7859_v17, 16  ;;  %v7863_v48 = vshrl.u32 %v7862_v19, 16 }
  0x9d   :  { %7852 = vst [vmem:[#allocation48_spill] sm:$0xff] %v5742_v41  ;;  %v5747_v59 = vmax.bf16 %v7854_v4, %v7853_v40  ;;  %v5752_v61 = vmax.bf16 %v7857_v5, %v7856_v60  ;;  %v7866_v41 = vshrl.u32 %v7865_v1, 16  ;;  %v7868_v40 = vld [vmem:[#allocation67_spill] sm:$0xff]  ;;  %v7871_v60 = vld [vmem:[#allocation68_spill] sm:$0xff] }
  0x9e   :  { %v5757_v42 = vmax.bf16 %v7860_v12, %v7859_v17  ;;  %v5762_v3 = vmax.bf16 %v7863_v48, %v7862_v19  ;;  %v7873_v17 = vld [vmem:[#allocation69_spill] sm:$0xff]  ;;  %v7876_v19 = vld [vmem:[#allocation70_spill] sm:$0xff] }
  0x9f   :  { %7855 = vst [vmem:[#allocation49_spill] sm:$0xff] %v5747_v59  ;;  %7858 = vst [vmem:[#allocation50_spill] sm:$0xff] %v5752_v61  ;;  %v5767_v4 = vmax.bf16 %v7866_v41, %v7865_v1  ;;  %v7869_v59 = vshrl.u32 %v7868_v40, 16  ;;  %v7872_v61 = vshrl.u32 %v7871_v60, 16  ;;  %v7879_v1 = vld [vmem:[#allocation71_spill] sm:$0xff] }
  0xa0   :  { %7861 = vst [vmem:[#allocation51_spill] sm:$0xff] %v5757_v42  ;;  %7864 = vst [vmem:[#allocation52_spill] sm:$0xff] %v5762_v3  ;;  %v7874_v42 = vshrl.u32 %v7873_v17, 16  ;;  %v7877_v3 = vshrl.u32 %v7876_v19, 16 }
  0xa1   :  { %7867 = vst [vmem:[#allocation53_spill] sm:$0xff] %v5767_v4  ;;  %v5772_v5 = vmax.bf16 %v7869_v59, %v7868_v40  ;;  %v5777_v12 = vmax.bf16 %v7872_v61, %v7871_v60  ;;  %v7880_v4 = vshrl.u32 %v7879_v1, 16  ;;  %v7882_v40 = vld [vmem:[#allocation72_spill] sm:$0xff]  ;;  %v7884_v60 = vshrl.u32 %v7648_v9, 16 }
  0xa2   :  { %v5782_v48 = vmax.bf16 %v7874_v42, %v7873_v17  ;;  %v5787_v41 = vmax.bf16 %v7877_v3, %v7876_v19  ;;  %v7885_v17 = vld [vmem:[#allocation74_spill] sm:$0xff]  ;;  %v7887_v19 = vld [vmem:[#allocation75_spill] sm:$0xff] }
  0xa3   :  { %7870 = vst [vmem:[#allocation54_spill] sm:$0xff] %v5772_v5  ;;  %v5792_v59 = vmax.bf16 %v7880_v4, %v7879_v1  ;;  %v7883_v5 = vshrl.u32 %v7882_v40, 16  ;;  %v5802_v42 = vmax.bf16 %v7884_v60, %v7648_v9  ;;  %v7890_v1 = vld [vmem:[#allocation76_spill] sm:$0xff]  ;;  %v7893_v60 = vshrl.u32 %v7653_v38, 16 }
  0xa4   :  { %7875 = vst [vmem:[#allocation55_spill] sm:$0xff] %v5782_v48  ;;  %7878 = vst [vmem:[#allocation56_spill] sm:$0xff] %v5787_v41  ;;  %v7886_v48 = vshrl.u32 %v7885_v17, 16  ;;  %v7888_v41 = vshrl.u32 %v7887_v19, 16 }
  0xa5   :  { %7881 = vst [vmem:[#allocation57_spill] sm:$0xff] %v5792_v59  ;;  %v5797_v61 = vmax.bf16 %v7883_v5, %v7882_v40  ;;  %v7891_v59 = vshrl.u32 %v7890_v1, 16  ;;  %v7892_v40 = vshrl.u32 %v7652_v32, 16 }
  0xa6   :  { %v5807_v3 = vmax.bf16 %v7886_v48, %v7885_v17  ;;  %v5812_v4 = vmax.bf16 %v7888_v41, %v7887_v19  ;;  %v5827_v48 = vmax.bf16 %v7893_v60, %v7653_v38  ;;  %v7895_v17 = vshrl.u32 %v7654_v0, 16  ;;  %v7897_v19 = vld [vmem:[#allocation80_spill] sm:$0xff]  ;;  %v7901_v60 = vld [vmem:[#allocation83_spill] sm:$0xff] }
  0xa7   :  { %v5817_v5 = vmax.bf16 %v7891_v59, %v7890_v1  ;;  %v5822_v9 = vmax.bf16 %v7892_v40, %v7652_v32  ;;  %v7899_v1 = vshrl.u32 %v7656_v36, 16  ;;  %v7900_v40 = vshrl.u32 %v7657_v24, 16 }
  0xa8   :  { %7889 = vst [vmem:[#allocation58_spill] sm:$0xff] %v5812_v4  ;;  %7894 = vst [vmem:[#allocation59_spill] sm:$0xff] %v5827_v48  ;;  %v5832_v41 = vmax.bf16 %v7895_v17, %v7654_v0  ;;  %v7898_v4 = vshrl.u32 %v7897_v19, 16  ;;  %v7902_v48 = vshrl.u32 %v7901_v60, 16  ;;  %v7903_v17 = vld [vmem:[#allocation84_spill] sm:$0xff] }
  0xa9   :  { %v5842_v32 = vmax.bf16 %v7899_v1, %v7656_v36  ;;  %v5847_v38 = vmax.bf16 %v7900_v40, %v7657_v24  ;;  %v7906_v1 = vshrl.u32 %v7660_v35, 16  ;;  %v7907_v40 = vshrl.u32 %v7661_v33, 16 }
  0xaa   :  { %7896 = vst [vmem:[#allocation60_spill] sm:$0xff] %v5832_v41  ;;  %v5837_v59 = vmax.bf16 %v7898_v4, %v7897_v19  ;;  %v5852_v0 = vmax.bf16 %v7902_v48, %v7901_v60  ;;  %v7904_v41 = vshrl.u32 %v7903_v17, 16  ;;  %v7905_v19 = vshrl.u32 %v7659_v18, 16 }
  0xab   :  { %v5867_v24 = vmax.bf16 %v7906_v1, %v7660_v35  ;;  %v5872_v48 = vmax.bf16 %v7907_v40, %v7661_v33  ;;  %v7909_v60 = vshrl.u32 %v5145_v49, 16  ;;  %v7912_v1 = vshrl.u32 %v7662_v37, 16  ;;  %v7913_v40 = vld [vmem:[#allocation89_spill] sm:$0xff] }
  0xac   :  { %v5857_v4 = vmax.bf16 %v7904_v41, %v7903_v17  ;;  %v5862_v36 = vmax.bf16 %v7905_v19, %v7659_v18  ;;  %v7910_v17 = vshrl.u32 %v5149_v50, 16  ;;  %v7911_v19 = vshrl.u32 %v5153_v43, 16 }
  0xad   :  { %7908 = vst [vmem:[#allocation61_spill] sm:$0xff] %v5872_v48  ;;  %v5877_v41 = vmax.bf16 %v7909_v60, %v5145_v49  ;;  %v5892_v33 = vmax.bf16 %v7912_v1, %v7662_v37  ;;  %v7914_v48 = vshrl.u32 %v7913_v40, 16  ;;  %v7915_v60 = vshrl.u32 %v5175_v34, 16 }
  0xae   :  { %v5882_v18 = vmax.bf16 %v7910_v17, %v5149_v50  ;;  %v5887_v35 = vmax.bf16 %v7911_v19, %v5153_v43  ;;  %v7916_v17 = vshrl.u32 %v7663_v52, 16  ;;  %v7917_v19 = vshrl.u32 %v7664_v39, 16 }
  0xaf   :  { %v5897_v49 = vmax.bf16 %v7914_v48, %v7913_v40  ;;  %v5902_v50 = vmax.bf16 %v7915_v60, %v5175_v34  ;;  %v7919_v1 = vshrl.u32 %v5197_v53, 16  ;;  %v7921_v40 = vshrl.u32 %v5199_v6, 16 }
  0xb0   :  { %v5907_v43 = vmax.bf16 %v7916_v17, %v7663_v52  ;;  %v5912_v37 = vmax.bf16 %v7917_v19, %v7664_v39  ;;  %v7923_v60 = vshrl.u32 %v5201_v7, 16  ;;  %v7924_v17 = vshrl.u32 %v5203_v8, 16 }
  0xb1   :  { %v5917_v48 = vmax.bf16 %v7919_v1, %v5197_v53  ;;  %v5922_v34 = vmax.bf16 %v7921_v40, %v5199_v6  ;;  %v7925_v19 = vshrl.u32 %v5214_v62, 16  ;;  %v3749_v1 = vmov 1935823168  }
  0xb2   :  { %7918 = vst [vmem:[#allocation62_spill] sm:$0xff] %v5912_v37  ;;  %v5927_v52 = vmax.bf16 %v7923_v60, %v5201_v7  ;;  %v5932_v39 = vmax.bf16 %v7924_v17, %v5203_v8  ;;  %v7926_v37 = vlaneseq  ;;  %v7927_v40 = vshrl.u32 %v5216_v63, 16 }
  0xb3   :  { %7920 = vst [vmem:[#allocation63_spill] sm:$0xff] %v5917_v48  ;;  %7922 = vst [vmem:[#allocation64_spill] sm:$0xff] %v5922_v34  ;;  %v5937_v53 = vmax.bf16 %v7925_v19, %v5214_v62  ;;  %v1417_v48 = vunpack.c.l.s4 %v3749_v1  ;;  %v7928_v7 = vshrl.u32 %v5218_v13, 16  ;;  %v7929_v8 = vshrl.u32 %v7665_v58, 16 }
  0xb4   :  { %v1420_v6 = vshrl.u32 %v7926_v37, 7  ;;  %v5943_v34 = vmax.bf16 %v7927_v40, %v5216_v63  ;;  %v7930_v62 = vshrl.u32 %v5231_v10, 16  ;;  %v7931_v37 = vshrl.u32 %v5233_v20, 16 }
  0xb5   :  { %v5948_v60 = vmax.bf16 %v7928_v7, %v5218_v13  ;;  %v5953_v17 = vmax.bf16 %v7929_v8, %v7665_v58  ;;  %v7932_v1 = vshrl.u32 %v5235_v11, 16  ;;  %v7933_v40 = vshrl.u32 %v5237_v26, 16 }
  0xb6   :  { %v5958_v19 = vmax.bf16 %v7930_v62, %v5231_v10  ;;  %v5963_v63 = vmax.bf16 %v7931_v37, %v5233_v20  ;;  %v1418_v7 = vunpack.c.0.s8 %v1417_v48  ;;  %v7934_v10 = vshrl.u32 %v5239_v15, 16 }
  0xb7   :  { %v5968_v13 = vmax.bf16 %v7932_v1, %v5235_v11  ;;  %v5973_v58 = vmax.bf16 %v7933_v40, %v5237_v26  ;;  %v7935_v20 = vshrl.u32 %v5241_v14, 16  ;;  %v7936_v11 = vshrl.u32 %v5243_v28, 16 }
  0xb8   :  { %v5978_v8 = vmax.bf16 %v7934_v10, %v5239_v15  ;;  %v7937_v26 = vshrl.u32 %v5245_v29, 16  ;;  %v7938_v48 = vshrl.u32 %v5247_v30, 16  ;;  %v7939_v40 = vshrl.u32 %v5249_v16, 16 }
  0xb9   :  { %v5983_v62 = vmax.bf16 %v7935_v20, %v5241_v14  ;;  %v5988_v37 = vmax.bf16 %v7936_v11, %v5243_v28  ;;  %v7940_v10 = vshrl.u32 %v5251_v21, 16  ;;  %v6010_v20 = vsub.s32 %v1418_v7, %v1420_v6 }
  0xba   :  { %v5993_v1 = vmax.bf16 %v7937_v26, %v5245_v29  ;;  %v5998_v15 = vmax.bf16 %v7938_v48, %v5247_v30  ;;  %v6003_v14 = vmax.bf16 %v7939_v40, %v5249_v16  ;;  %v7941_v29 = vshrl.u32 %v5253_v22, 16 }
  0xbb   :  { %v6008_v28 = vmax.bf16 %v7940_v10, %v5251_v21  ;;  %v7942_v30 = vshrl.u32 %v5255_v23, 16  ;;  %v7943_v16 = vshrl.u32 %v5257_v25, 16  ;;  %v7944_v21 = vshrl.u32 %v5259_v31, 16 }
  0xbc   :  { %v6015_v11 = vmax.bf16 %v7941_v29, %v5253_v22  ;;  %v1422_v7 = vrot.slane %v5392_v46, %v6010_v20  ;;  %v1436_v22 = vrot.slane %v5397_v47, %v6010_v20  ;;  %v1464_v40 = vrot.slane %v5407_v27, %v6010_v20 }
  0xbd   :  { %v6020_v26 = vmax.bf16 %v7942_v30, %v5255_v23  ;;  %v6025_v48 = vmax.bf16 %v7943_v16, %v5257_v25  ;;  %v6030_v6 = vmax.bf16 %v7944_v21, %v5259_v31  ;;  %v1450_v23 = vrot.slane %v5402_v51, %v6010_v20 }
  0xbe   :  { %v1478_v25 = vrot.slane %v5412_v44, %v6010_v20  ;;  %v1492_v10 = vrot.slane %v5417_v45, %v6010_v20  ;;  %v1506_v31 = vrot.slane %v5422_v54, %v6010_v20  ;;  %v1520_v46 = vrot.slane %v5427_v55, %v6010_v20 }
  0xbf   :  { %v6049_v47 = vrot.slane %v1422_v7, %v6010_v20  ;;  %v6052_v51 = vrot.slane %v1436_v22, %v6010_v20  ;;  %v6055_v27 = vrot.slane %v1450_v23, %v6010_v20  ;;  %v6058_v44 = vrot.slane %v1464_v40, %v6010_v20  ;;  %v7953_v7 = vld [vmem:[#allocation2_spill] sm:$0xff]  ;;  %v7954_v23 = vld [vmem:[#allocation3_spill] sm:$0xff] }
  0xc0   :  { %v6061_v45 = vrot.slane %v1478_v25, %v6010_v20  ;;  %v6064_v54 = vrot.slane %v1492_v10, %v6010_v20  ;;  %v6067_v55 = vrot.slane %v1506_v31, %v6010_v20  ;;  %v6070_v29 = vrot.slane %v1520_v46, %v6010_v20  ;;  %v7955_v25 = vld [vmem:[#allocation4_spill] sm:$0xff]  ;;  %v7956_v31 = vld [vmem:[#allocation5_spill] sm:$0xff] }
  0xc1   :  { %7945 = vst [vmem:[#allocation65_spill] sm:$0xff] %v6049_v47  ;;  %7946 = vst [vmem:[#allocation66_spill] sm:$0xff] %v6052_v51  ;;  %v1534_v30 = vrot.slane %v5432_v56, %v6010_v20  ;;  %v1548_v16 = vrot.slane %v5437_v57, %v6010_v20  ;;  %v1562_v21 = vrot.slane %v5442_v2, %v6010_v20  ;;  %v7957_v56 = vld [vmem:[#allocation73_spill] sm:$0xff] }
  0xc2   :  { %7947 = vst [vmem:[#allocation67_spill] sm:$0xff] %v6055_v27  ;;  %7948 = vst [vmem:[#allocation68_spill] sm:$0xff] %v6058_v44  ;;  %v1576_v22 = vrot.slane %v7953_v7, %v6010_v20  ;;  %v1590_v40 = vrot.slane %v7954_v23, %v6010_v20  ;;  %v1604_v10 = vrot.slane %v7955_v25, %v6010_v20 }
  0xc3   :  { %7949 = vst [vmem:[#allocation69_spill] sm:$0xff] %v6061_v45  ;;  %7950 = vst [vmem:[#allocation70_spill] sm:$0xff] %v6064_v54  ;;  %v1618_v46 = vrot.slane %v7956_v31, %v6010_v20  ;;  %v6089_v57 = vrot.slane %v1534_v30, %v6010_v20  ;;  %v6092_v2 = vrot.slane %v1548_v16, %v6010_v20  ;;  %v7966_v16 = vld [vmem:[#allocation77_spill] sm:$0xff] }
  0xc4   :  { %7951 = vst [vmem:[#allocation71_spill] sm:$0xff] %v6067_v55  ;;  %7952 = vst [vmem:[#allocation72_spill] sm:$0xff] %v6070_v29  ;;  %v1632_v29 = vrot.slane %v7957_v56, %v6010_v20  ;;  %v6095_v7 = vrot.slane %v1562_v21, %v6010_v20  ;;  %v6098_v23 = vrot.slane %v1576_v22, %v6010_v20  ;;  %v7967_v21 = vld [vmem:[#allocation78_spill] sm:$0xff]  ;;  %v7968_v22 = vld [vmem:[#allocation79_spill] sm:$0xff] }
  0xc5   :  { %7958 = vst [vmem:[#allocation74_spill] sm:$0xff] %v6089_v57  ;;  %7959 = vst [vmem:[#allocation75_spill] sm:$0xff] %v6092_v2  ;;  %v6101_v25 = vrot.slane %v1590_v40, %v6010_v20  ;;  %v6104_v31 = vrot.slane %v1604_v10, %v6010_v20  ;;  %v6107_v56 = vrot.slane %v1618_v46, %v6010_v20  ;;  %v7969_v40 = vld [vmem:[#allocation81_spill] sm:$0xff]  ;;  %v7970_v10 = vld [vmem:[#allocation82_spill] sm:$0xff] }
  0xc6   :  { %7960 = vst [vmem:[#allocation76_spill] sm:$0xff] %v6095_v7  ;;  %7961 = vst [vmem:[#allocation80_spill] sm:$0xff] %v6098_v23  ;;  %v6110_v30 = vrot.slane %v1632_v29, %v6010_v20  ;;  %v1646_v2 = vrot.slane %v7966_v16, %v6010_v20  ;;  %v1660_v7 = vrot.slane %v7967_v21, %v6010_v20  ;;  %v7971_v46 = vld [vmem:[#allocation85_spill] sm:$0xff]  ;;  %v7972_v29 = vld [vmem:[#allocation86_spill] sm:$0xff] }
  0xc7   :  { %7962 = vst [vmem:[#allocation83_spill] sm:$0xff] %v6101_v25  ;;  %7963 = vst [vmem:[#allocation84_spill] sm:$0xff] %v6104_v31  ;;  %v1674_v23 = vrot.slane %v7968_v22, %v6010_v20  ;;  %v1688_v25 = vrot.slane %v7969_v40, %v6010_v20  ;;  %v1702_v31 = vrot.slane %v7970_v10, %v6010_v20  ;;  %v7973_v16 = vld [vmem:[#allocation87_spill] sm:$0xff] }
  0xc8   :  { %7964 = vst [vmem:[#allocation89_spill] sm:$0xff] %v6107_v56  ;;  %7965 = vst [vmem:[#allocation2_spill] sm:$0xff] %v6110_v30  ;;  %v1716_v56 = vrot.slane %v7971_v46, %v6010_v20  ;;  %v1730_v30 = vrot.slane %v7972_v29, %v6010_v20  ;;  %v1744_v57 = vrot.slane %v7973_v16, %v6010_v20 }
  0xc9   :  { %v6129_v21 = vrot.slane %v1646_v2, %v6010_v20  ;;  %v6132_v22 = vrot.slane %v1660_v7, %v6010_v20  ;;  %v6135_v40 = vrot.slane %v1674_v23, %v6010_v20  ;;  %v6138_v10 = vrot.slane %v1688_v25, %v6010_v20  ;;  %v7982_v7 = vld [vmem:[#allocation88_spill] sm:$0xff]  ;;  %v7983_v23 = vld [vmem:[#allocation90_spill] sm:$0xff]  ;;  %v7984_v25 = vld [vmem:[#allocation91_spill] sm:$0xff] }
  0xca   :  { %v6141_v46 = vrot.slane %v1702_v31, %v6010_v20  ;;  %v6144_v29 = vrot.slane %v1716_v56, %v6010_v20  ;;  %v6147_v16 = vrot.slane %v1730_v30, %v6010_v20  ;;  %v6150_v2 = vrot.slane %v1744_v57, %v6010_v20  ;;  %v7985_v31 = vld [vmem:[#allocation92_spill] sm:$0xff]  ;;  %v7986_v56 = vld [vmem:[#allocation6_spill] sm:$0xff]  ;;  %v7987_v30 = vld [vmem:[#allocation7_spill] sm:$0xff] }
  0xcb   :  { %7974 = vst [vmem:[#allocation3_spill] sm:$0xff] %v6129_v21  ;;  %7975 = vst [vmem:[#allocation4_spill] sm:$0xff] %v6132_v22  ;;  %v1758_v22 = vrot.slane %v7982_v7, %v6010_v20  ;;  %v7988_v57 = vld [vmem:[#allocation8_spill] sm:$0xff]  ;;  %v7989_v7 = vld [vmem:[#allocation9_spill] sm:$0xff] }
  0xcc   :  { %7976 = vst [vmem:[#allocation5_spill] sm:$0xff] %v6135_v40  ;;  %7977 = vst [vmem:[#allocation73_spill] sm:$0xff] %v6138_v10  ;;  %v1772_v40 = vrot.slane %v7983_v23, %v6010_v20  ;;  %v1786_v10 = vrot.slane %v7984_v25, %v6010_v20  ;;  %v1856_v21 = vrot.slane %v7989_v7, %v6010_v20 }
  0xcd   :  { %7978 = vst [vmem:[#allocation77_spill] sm:$0xff] %v6141_v46  ;;  %7979 = vst [vmem:[#allocation78_spill] sm:$0xff] %v6144_v29  ;;  %v1800_v46 = vrot.slane %v7985_v31, %v6010_v20  ;;  %v1814_v29 = vrot.slane %v7986_v56, %v6010_v20  ;;  %v6169_v23 = vrot.slane %v1758_v22, %v6010_v20 }
  0xce   :  { %7980 = vst [vmem:[#allocation79_spill] sm:$0xff] %v6147_v16  ;;  %7981 = vst [vmem:[#allocation81_spill] sm:$0xff] %v6150_v2  ;;  %v1828_v16 = vrot.slane %v7987_v30, %v6010_v20  ;;  %v1842_v2 = vrot.slane %v7988_v57, %v6010_v20  ;;  %v6172_v25 = vrot.slane %v1772_v40, %v6010_v20  ;;  %v7998_v40 = vld [vmem:[#allocation10_spill] sm:$0xff] }
  0xcf   :  { %7990 = vst [vmem:[#allocation82_spill] sm:$0xff] %v6169_v23  ;;  %v6175_v31 = vrot.slane %v1786_v10, %v6010_v20  ;;  %v6178_v56 = vrot.slane %v1800_v46, %v6010_v20  ;;  %v6181_v30 = vrot.slane %v1814_v29, %v6010_v20  ;;  %v6190_v22 = vrot.slane %v1856_v21, %v6010_v20  ;;  %v7999_v10 = vld [vmem:[#allocation11_spill] sm:$0xff]  ;;  %v8000_v46 = vld [vmem:[#allocation12_spill] sm:$0xff]  ;;  %v8001_v29 = vld [vmem:[#allocation13_spill] sm:$0xff] }
  0xd0   :  { %7991 = vst [vmem:[#allocation85_spill] sm:$0xff] %v6172_v25  ;;  %v6184_v57 = vrot.slane %v1828_v16, %v6010_v20  ;;  %v6187_v7 = vrot.slane %v1842_v2, %v6010_v20  ;;  %v1870_v25 = vrot.slane %v7998_v40, %v6010_v20  ;;  %v8002_v16 = vld [vmem:[#allocation14_spill] sm:$0xff]  ;;  %v8003_v2 = vld [vmem:[#allocation15_spill] sm:$0xff]  ;;  %v8004_v21 = vld [vmem:[#allocation16_spill] sm:$0xff] }
  0xd1   :  { %7992 = vst [vmem:[#allocation86_spill] sm:$0xff] %v6175_v31  ;;  %7993 = vst [vmem:[#allocation87_spill] sm:$0xff] %v6178_v56  ;;  %v1884_v31 = vrot.slane %v7999_v10, %v6010_v20  ;;  %v1898_v56 = vrot.slane %v8000_v46, %v6010_v20  ;;  %v8005_v40 = vld [vmem:[#allocation17_spill] sm:$0xff] }
  0xd2   :  { %7994 = vst [vmem:[#allocation88_spill] sm:$0xff] %v6181_v30  ;;  %7995 = vst [vmem:[#allocation90_spill] sm:$0xff] %v6184_v57  ;;  %v1912_v30 = vrot.slane %v8001_v29, %v6010_v20  ;;  %v1926_v57 = vrot.slane %v8002_v16, %v6010_v20  ;;  %v1968_v23 = vrot.slane %v8005_v40, %v6010_v20 }
  0xd3   :  { %7996 = vst [vmem:[#allocation91_spill] sm:$0xff] %v6187_v7  ;;  %7997 = vst [vmem:[#allocation92_spill] sm:$0xff] %v6190_v22  ;;  %v1940_v7 = vrot.slane %v8003_v2, %v6010_v20  ;;  %v1954_v22 = vrot.slane %v8004_v21, %v6010_v20  ;;  %v6209_v10 = vrot.slane %v1870_v25, %v6010_v20 }
  0xd4   :  { %v6212_v46 = vrot.slane %v1884_v31, %v6010_v20  ;;  %v6215_v29 = vrot.slane %v1898_v56, %v6010_v20  ;;  %v6218_v16 = vrot.slane %v1912_v30, %v6010_v20  ;;  %v6221_v2 = vrot.slane %v1926_v57, %v6010_v20  ;;  %v8014_v31 = vld [vmem:[#allocation18_spill] sm:$0xff]  ;;  %v8015_v56 = vld [vmem:[#allocation19_spill] sm:$0xff]  ;;  %v8016_v30 = vld [vmem:[#allocation20_spill] sm:$0xff] }
  0xd5   :  { %8006 = vst [vmem:[#allocation6_spill] sm:$0xff] %v6209_v10  ;;  %v6224_v21 = vrot.slane %v1940_v7, %v6010_v20  ;;  %v6227_v40 = vrot.slane %v1954_v22, %v6010_v20  ;;  %v6230_v25 = vrot.slane %v1968_v23, %v6010_v20  ;;  %v8017_v57 = vld [vmem:[#allocation21_spill] sm:$0xff]  ;;  %v8018_v7 = vld [vmem:[#allocation22_spill] sm:$0xff]  ;;  %v8019_v22 = vld [vmem:[#allocation23_spill] sm:$0xff] }
  0xd6   :  { %8007 = vst [vmem:[#allocation7_spill] sm:$0xff] %v6212_v46  ;;  %8008 = vst [vmem:[#allocation8_spill] sm:$0xff] %v6215_v29  ;;  %v1982_v46 = vrot.slane %v8014_v31, %v6010_v20  ;;  %v1996_v29 = vrot.slane %v8015_v56, %v6010_v20  ;;  %v8020_v23 = vld [vmem:[#allocation24_spill] sm:$0xff]  ;;  %v8021_v31 = vld [vmem:[#allocation25_spill] sm:$0xff] }
  0xd7   :  { %8009 = vst [vmem:[#allocation9_spill] sm:$0xff] %v6218_v16  ;;  %8010 = vst [vmem:[#allocation10_spill] sm:$0xff] %v6221_v2  ;;  %v2010_v16 = vrot.slane %v8016_v30, %v6010_v20  ;;  %v2024_v2 = vrot.slane %v8017_v57, %v6010_v20  ;;  %v2080_v10 = vrot.slane %v8021_v31, %v6010_v20 }
  0xd8   :  { %8011 = vst [vmem:[#allocation11_spill] sm:$0xff] %v6224_v21  ;;  %8012 = vst [vmem:[#allocation12_spill] sm:$0xff] %v6227_v40  ;;  %v2038_v21 = vrot.slane %v8018_v7, %v6010_v20  ;;  %v2052_v40 = vrot.slane %v8019_v22, %v6010_v20  ;;  %v6249_v56 = vrot.slane %v1982_v46, %v6010_v20 }
  0xd9   :  { %8013 = vst [vmem:[#allocation13_spill] sm:$0xff] %v6230_v25  ;;  %v2066_v25 = vrot.slane %v8020_v23, %v6010_v20  ;;  %v6252_v30 = vrot.slane %v1996_v29, %v6010_v20  ;;  %v6255_v57 = vrot.slane %v2010_v16, %v6010_v20  ;;  %v6258_v7 = vrot.slane %v2024_v2, %v6010_v20  ;;  %v8030_v29 = vld [vmem:[#allocation26_spill] sm:$0xff]  ;;  %v8031_v16 = vld [vmem:[#allocation27_spill] sm:$0xff]  ;;  %v8032_v2 = vld [vmem:[#allocation28_spill] sm:$0xff] }
  0xda   :  { %8022 = vst [vmem:[#allocation14_spill] sm:$0xff] %v6249_v56  ;;  %v6261_v22 = vrot.slane %v2038_v21, %v6010_v20  ;;  %v6264_v23 = vrot.slane %v2052_v40, %v6010_v20  ;;  %v6270_v46 = vrot.slane %v2080_v10, %v6010_v20  ;;  %v8033_v21 = vld [vmem:[#allocation29_spill] sm:$0xff]  ;;  %v8034_v40 = vld [vmem:[#allocation30_spill] sm:$0xff]  ;;  %v8036_v10 = vld [vmem:[#allocation32_spill] sm:$0xff] }
  0xdb   :  { %8023 = vst [vmem:[#allocation15_spill] sm:$0xff] %v6252_v30  ;;  %8024 = vst [vmem:[#allocation16_spill] sm:$0xff] %v6255_v57  ;;  %v6267_v31 = vrot.slane %v2066_v25, %v6010_v20  ;;  %v2094_v30 = vrot.slane %v8030_v29, %v6010_v20  ;;  %v2108_v57 = vrot.slane %v8031_v16, %v6010_v20  ;;  %v8035_v25 = vld [vmem:[#allocation31_spill] sm:$0xff]  ;;  %v8037_v29 = vld [vmem:[#allocation33_spill] sm:$0xff] }
  0xdc   :  { %8025 = vst [vmem:[#allocation17_spill] sm:$0xff] %v6258_v7  ;;  %8026 = vst [vmem:[#allocation18_spill] sm:$0xff] %v6261_v22  ;;  %v2122_v7 = vrot.slane %v8032_v2, %v6010_v20  ;;  %v2136_v22 = vrot.slane %v8033_v21, %v6010_v20  ;;  %v2192_v56 = vrot.slane %v8037_v29, %v6010_v20 }
  0xdd   :  { %8027 = vst [vmem:[#allocation19_spill] sm:$0xff] %v6264_v23  ;;  %8028 = vst [vmem:[#allocation20_spill] sm:$0xff] %v6267_v31  ;;  %v2150_v23 = vrot.slane %v8034_v40, %v6010_v20  ;;  %v2164_v31 = vrot.slane %v8035_v25, %v6010_v20  ;;  %v6289_v16 = vrot.slane %v2094_v30, %v6010_v20 }
  0xde   :  { %8029 = vst [vmem:[#allocation21_spill] sm:$0xff] %v6270_v46  ;;  %v2178_v46 = vrot.slane %v8036_v10, %v6010_v20  ;;  %v6292_v2 = vrot.slane %v2108_v57, %v6010_v20  ;;  %v6295_v21 = vrot.slane %v2122_v7, %v6010_v20  ;;  %v6298_v40 = vrot.slane %v2136_v22, %v6010_v20  ;;  %v8046_v57 = vld [vmem:[#allocation34_spill] sm:$0xff]  ;;  %v8047_v7 = vld [vmem:[#allocation35_spill] sm:$0xff]  ;;  %v8048_v22 = vld [vmem:[#allocation36_spill] sm:$0xff] }
  0xdf   :  { %8038 = vst [vmem:[#allocation22_spill] sm:$0xff] %v6289_v16  ;;  %v6301_v25 = vrot.slane %v2150_v23, %v6010_v20  ;;  %v6304_v10 = vrot.slane %v2164_v31, %v6010_v20  ;;  %v6310_v30 = vrot.slane %v2192_v56, %v6010_v20  ;;  %v8049_v23 = vld [vmem:[#allocation37_spill] sm:$0xff]  ;;  %v8050_v31 = vld [vmem:[#allocation38_spill] sm:$0xff]  ;;  %v8052_v56 = vld [vmem:[#allocation40_spill] sm:$0xff] }
  0xe0   :  { %8039 = vst [vmem:[#allocation23_spill] sm:$0xff] %v6292_v2  ;;  %8040 = vst [vmem:[#allocation24_spill] sm:$0xff] %v6295_v21  ;;  %v6307_v29 = vrot.slane %v2178_v46, %v6010_v20  ;;  %v2206_v2 = vrot.slane %v8046_v57, %v6010_v20  ;;  %v2220_v21 = vrot.slane %v8047_v7, %v6010_v20  ;;  %v8051_v46 = vld [vmem:[#allocation39_spill] sm:$0xff]  ;;  %v8053_v57 = vld [vmem:[#allocation41_spill] sm:$0xff] }
  0xe1   :  { %8041 = vst [vmem:[#allocation25_spill] sm:$0xff] %v6298_v40  ;;  %8042 = vst [vmem:[#allocation26_spill] sm:$0xff] %v6301_v25  ;;  %v2234_v40 = vrot.slane %v8048_v22, %v6010_v20  ;;  %v2248_v25 = vrot.slane %v8049_v23, %v6010_v20  ;;  %v2304_v16 = vrot.slane %v8053_v57, %v6010_v20 }
  0xe2   :  { %8043 = vst [vmem:[#allocation27_spill] sm:$0xff] %v6304_v10  ;;  %8044 = vst [vmem:[#allocation28_spill] sm:$0xff] %v6307_v29  ;;  %v2262_v10 = vrot.slane %v8050_v31, %v6010_v20  ;;  %v2276_v29 = vrot.slane %v8051_v46, %v6010_v20  ;;  %v6329_v7 = vrot.slane %v2206_v2, %v6010_v20 }
  0xe3   :  { %8045 = vst [vmem:[#allocation29_spill] sm:$0xff] %v6310_v30  ;;  %v2290_v30 = vrot.slane %v8052_v56, %v6010_v20  ;;  %v6332_v22 = vrot.slane %v2220_v21, %v6010_v20  ;;  %v6335_v23 = vrot.slane %v2234_v40, %v6010_v20  ;;  %v6338_v31 = vrot.slane %v2248_v25, %v6010_v20  ;;  %v8062_v21 = vld [vmem:[#allocation42_spill] sm:$0xff]  ;;  %v8063_v40 = vld [vmem:[#allocation43_spill] sm:$0xff]  ;;  %v8064_v25 = vld [vmem:[#allocation44_spill] sm:$0xff] }
  0xe4   :  { %8054 = vst [vmem:[#allocation30_spill] sm:$0xff] %v6329_v7  ;;  %v6341_v46 = vrot.slane %v2262_v10, %v6010_v20  ;;  %v6344_v56 = vrot.slane %v2276_v29, %v6010_v20  ;;  %v6350_v2 = vrot.slane %v2304_v16, %v6010_v20  ;;  %v8065_v10 = vld [vmem:[#allocation45_spill] sm:$0xff]  ;;  %v8066_v29 = vld [vmem:[#allocation46_spill] sm:$0xff]  ;;  %v8068_v16 = vld [vmem:[#allocation48_spill] sm:$0xff] }
  0xe5   :  { %8055 = vst [vmem:[#allocation31_spill] sm:$0xff] %v6332_v22  ;;  %8056 = vst [vmem:[#allocation32_spill] sm:$0xff] %v6335_v23  ;;  %v6347_v57 = vrot.slane %v2290_v30, %v6010_v20  ;;  %v2318_v22 = vrot.slane %v8062_v21, %v6010_v20  ;;  %v2332_v23 = vrot.slane %v8063_v40, %v6010_v20  ;;  %v8067_v30 = vld [vmem:[#allocation47_spill] sm:$0xff]  ;;  %v8069_v21 = vld [vmem:[#allocation49_spill] sm:$0xff] }
  0xe6   :  { %8057 = vst [vmem:[#allocation33_spill] sm:$0xff] %v6338_v31  ;;  %8058 = vst [vmem:[#allocation34_spill] sm:$0xff] %v6341_v46  ;;  %v2346_v31 = vrot.slane %v8064_v25, %v6010_v20  ;;  %v2360_v46 = vrot.slane %v8065_v10, %v6010_v20  ;;  %v2416_v7 = vrot.slane %v8069_v21, %v6010_v20 }
  0xe7   :  { %8059 = vst [vmem:[#allocation35_spill] sm:$0xff] %v6344_v56  ;;  %8060 = vst [vmem:[#allocation36_spill] sm:$0xff] %v6347_v57  ;;  %v2374_v56 = vrot.slane %v8066_v29, %v6010_v20  ;;  %v2388_v57 = vrot.slane %v8067_v30, %v6010_v20  ;;  %v6369_v40 = vrot.slane %v2318_v22, %v6010_v20 }
  0xe8   :  { %8061 = vst [vmem:[#allocation37_spill] sm:$0xff] %v6350_v2  ;;  %v2402_v2 = vrot.slane %v8068_v16, %v6010_v20  ;;  %v6372_v25 = vrot.slane %v2332_v23, %v6010_v20  ;;  %v6375_v10 = vrot.slane %v2346_v31, %v6010_v20  ;;  %v6378_v29 = vrot.slane %v2360_v46, %v6010_v20  ;;  %v8078_v23 = vld [vmem:[#allocation50_spill] sm:$0xff]  ;;  %v8079_v31 = vld [vmem:[#allocation51_spill] sm:$0xff]  ;;  %v8080_v46 = vld [vmem:[#allocation52_spill] sm:$0xff] }
  0xe9   :  { %8070 = vst [vmem:[#allocation38_spill] sm:$0xff] %v6369_v40  ;;  %v6381_v30 = vrot.slane %v2374_v56, %v6010_v20  ;;  %v6384_v16 = vrot.slane %v2388_v57, %v6010_v20  ;;  %v6390_v22 = vrot.slane %v2416_v7, %v6010_v20  ;;  %v8081_v56 = vld [vmem:[#allocation53_spill] sm:$0xff]  ;;  %v8082_v57 = vld [vmem:[#allocation54_spill] sm:$0xff]  ;;  %v8083_v7 = vld [vmem:[#allocation55_spill] sm:$0xff] }
  0xea   :  { %8071 = vst [vmem:[#allocation39_spill] sm:$0xff] %v6372_v25  ;;  %8072 = vst [vmem:[#allocation40_spill] sm:$0xff] %v6375_v10  ;;  %v6387_v21 = vrot.slane %v2402_v2, %v6010_v20  ;;  %v2430_v25 = vrot.slane %v8078_v23, %v6010_v20  ;;  %v2444_v10 = vrot.slane %v8079_v31, %v6010_v20  ;;  %v8084_v23 = vld [vmem:[#allocation56_spill] sm:$0xff] }
  0xeb   :  { %8073 = vst [vmem:[#allocation41_spill] sm:$0xff] %v6378_v29  ;;  %8074 = vst [vmem:[#allocation42_spill] sm:$0xff] %v6381_v30  ;;  %v2458_v29 = vrot.slane %v8080_v46, %v6010_v20  ;;  %v2472_v30 = vrot.slane %v8081_v56, %v6010_v20  ;;  %v2500_v2 = vrot.slane %v5777_v12, %v6010_v20 }
  0xec   :  { %8075 = vst [vmem:[#allocation43_spill] sm:$0xff] %v6384_v16  ;;  %8076 = vst [vmem:[#allocation44_spill] sm:$0xff] %v6387_v21  ;;  %v2486_v16 = vrot.slane %v8082_v57, %v6010_v20  ;;  %v2528_v21 = vrot.slane %v8084_v23, %v6010_v20  ;;  %v6409_v31 = vrot.slane %v2430_v25, %v6010_v20 }
  0xed   :  { %8077 = vst [vmem:[#allocation45_spill] sm:$0xff] %v6390_v22  ;;  %v2514_v22 = vrot.slane %v8083_v7, %v6010_v20  ;;  %v6412_v46 = vrot.slane %v2444_v10, %v6010_v20  ;;  %v6415_v56 = vrot.slane %v2458_v29, %v6010_v20  ;;  %v6418_v57 = vrot.slane %v2472_v30, %v6010_v20  ;;  %v8089_v10 = vld [vmem:[#allocation57_spill] sm:$0xff] }
  0xee   :  { %v6421_v12 = vrot.slane %v2486_v16, %v6010_v20  ;;  %v6424_v7 = vrot.slane %v2500_v2, %v6010_v20  ;;  %v6430_v25 = vrot.slane %v2528_v21, %v6010_v20  ;;  %v2556_v29 = vrot.slane %v5797_v61, %v6010_v20  ;;  %v8090_v2 = vld [vmem:[#allocation58_spill] sm:$0xff]  ;;  %v8182_v55 = vld [vmem:[#allocation35_spill] sm:$0xff] }
  0xef   :  { %8085 = vst [vmem:[#allocation46_spill] sm:$0xff] %v6412_v46  ;;  %v6427_v23 = vrot.slane %v2514_v22, %v6010_v20  ;;  %v2542_v46 = vrot.slane %v8089_v10, %v6010_v20  ;;  %v2570_v30 = vrot.slane %v5802_v42, %v6010_v20  ;;  %v2584_v16 = vrot.slane %v5807_v3, %v6010_v20  ;;  %v8091_v10 = vld [vmem:[#allocation59_spill] sm:$0xff] }
  0xf0   :  { %8086 = vst [vmem:[#allocation47_spill] sm:$0xff] %v6424_v7  ;;  %8088 = vst [vmem:[#allocation49_spill] sm:$0xff] %v6430_v25  ;;  %v2598_v7 = vrot.slane %v8090_v2, %v6010_v20  ;;  %v2612_v22 = vrot.slane %v5817_v5, %v6010_v20  ;;  %v2626_v21 = vrot.slane %v5822_v9, %v6010_v20 }
  0xf1   :  { %8087 = vst [vmem:[#allocation48_spill] sm:$0xff] %v6427_v23  ;;  %v2640_v25 = vrot.slane %v8091_v10, %v6010_v20  ;;  %v6449_v61 = vrot.slane %v2542_v46, %v6010_v20  ;;  %v6452_v42 = vrot.slane %v2556_v29, %v6010_v20  ;;  %v6455_v3 = vrot.slane %v2570_v30, %v6010_v20  ;;  %v8094_v29 = vld [vmem:[#allocation60_spill] sm:$0xff] }
  0xf2   :  { %v6458_v2 = vrot.slane %v2584_v16, %v6010_v20  ;;  %v6461_v5 = vrot.slane %v2598_v7, %v6010_v20  ;;  %v6464_v9 = vrot.slane %v2612_v22, %v6010_v20  ;;  %v6467_v10 = vrot.slane %v2626_v21, %v6010_v20  ;;  %v8186_v47 = vld [vmem:[#allocation40_spill] sm:$0xff]  ;;  %v8187_v51 = vld [vmem:[#allocation41_spill] sm:$0xff] }
  0xf3   :  { %8092 = vst [vmem:[#allocation50_spill] sm:$0xff] %v6452_v42  ;;  %v6470_v46 = vrot.slane %v2640_v25, %v6010_v20  ;;  %v2654_v42 = vrot.slane %v8094_v29, %v6010_v20  ;;  %v2668_v30 = vrot.slane %v5837_v59, %v6010_v20  ;;  %v2682_v16 = vrot.slane %v5842_v32, %v6010_v20  ;;  %v8189_v44 = vld [vmem:[#allocation43_spill] sm:$0xff] }
  0xf4   :  { %v2696_v7 = vrot.slane %v5847_v38, %v6010_v20  ;;  %v2710_v22 = vrot.slane %v5852_v0, %v6010_v20  ;;  %v2724_v21 = vrot.slane %v5857_v4, %v6010_v20  ;;  %v2738_v25 = vrot.slane %v5862_v36, %v6010_v20  ;;  %v8191_v54 = vld [vmem:[#allocation45_spill] sm:$0xff] }
  0xf5   :  { %8093 = vst [vmem:[#allocation51_spill] sm:$0xff] %v6470_v46  ;;  %v2752_v29 = vrot.slane %v5867_v24, %v6010_v20  ;;  %v6489_v59 = vrot.slane %v2654_v42, %v6010_v20  ;;  %v6492_v32 = vrot.slane %v2668_v30, %v6010_v20  ;;  %v6495_v38 = vrot.slane %v2682_v16, %v6010_v20  ;;  %v8097_v30 = vld [vmem:[#allocation61_spill] sm:$0xff] }
  0xf6   :  { %v6498_v0 = vrot.slane %v2696_v7, %v6010_v20  ;;  %v6501_v4 = vrot.slane %v2710_v22, %v6010_v20  ;;  %v6504_v36 = vrot.slane %v2724_v21, %v6010_v20  ;;  %v6507_v24 = vrot.slane %v2738_v25, %v6010_v20 }
  0xf7   :  { %8095 = vst [vmem:[#allocation52_spill] sm:$0xff] %v6489_v59  ;;  %8096 = vst [vmem:[#allocation53_spill] sm:$0xff] %v6492_v32  ;;  %v6510_v42 = vrot.slane %v2752_v29, %v6010_v20  ;;  %v2766_v32 = vrot.slane %v8097_v30, %v6010_v20  ;;  %v2780_v16 = vrot.slane %v5877_v41, %v6010_v20  ;;  %v8193_v40 = vld [vmem:[#allocation47_spill] sm:$0xff]  ;;  %v8194_v27 = vld [vmem:[#allocation49_spill] sm:$0xff] }
  0xf8   :  { %v2794_v7 = vrot.slane %v5882_v18, %v6010_v20  ;;  %v2808_v22 = vrot.slane %v5887_v35, %v6010_v20  ;;  %v2822_v21 = vrot.slane %v5892_v33, %v6010_v20  ;;  %v2836_v25 = vrot.slane %v5897_v49, %v6010_v20  ;;  %v8218_v59 = vld [vmem:[#allocation72_spill] sm:$0xff] }
  0xf9   :  { %v2850_v29 = vrot.slane %v5902_v50, %v6010_v20  ;;  %v2864_v30 = vrot.slane %v5907_v43, %v6010_v20  ;;  %v6529_v41 = vrot.slane %v2766_v32, %v6010_v20  ;;  %v6532_v18 = vrot.slane %v2780_v16, %v6010_v20  ;;  %v8101_v16 = vld [vmem:[#allocation62_spill] sm:$0xff] }
  0xfa   :  { %v6535_v35 = vrot.slane %v2794_v7, %v6010_v20  ;;  %v6538_v33 = vrot.slane %v2808_v22, %v6010_v20  ;;  %v6541_v49 = vrot.slane %v2822_v21, %v6010_v20  ;;  %v6544_v50 = vrot.slane %v2836_v25, %v6010_v20  ;;  %v8102_v7 = vld [vmem:[#allocation63_spill] sm:$0xff]  ;;  %v8103_v22 = vld [vmem:[#allocation64_spill] sm:$0xff]  ;;  %v8195_v45 = vld [vmem:[#allocation50_spill] sm:$0xff] }
  0xfb   :  { %8098 = vst [vmem:[#allocation54_spill] sm:$0xff] %v6532_v18  ;;  %v6547_v43 = vrot.slane %v2850_v29, %v6010_v20  ;;  %v6550_v32 = vrot.slane %v2864_v30, %v6010_v20  ;;  %v2878_v18 = vrot.slane %v8101_v16, %v6010_v20  ;;  %v2920_v21 = vrot.slane %v5927_v52, %v6010_v20 }
  0xfc   :  { %8099 = vst [vmem:[#allocation55_spill] sm:$0xff] %v6535_v35  ;;  %8100 = vst [vmem:[#allocation56_spill] sm:$0xff] %v6538_v33  ;;  %v2892_v35 = vrot.slane %v8102_v7, %v6010_v20  ;;  %v2906_v33 = vrot.slane %v8103_v22, %v6010_v20  ;;  %v2934_v25 = vrot.slane %v5932_v39, %v6010_v20 }
  0xfd   :  { %v2948_v29 = vrot.slane %v5937_v53, %v6010_v20  ;;  %v2962_v30 = vrot.slane %v5943_v34, %v6010_v20  ;;  %v2976_v16 = vrot.slane %v5948_v60, %v6010_v20  ;;  %v6569_v7 = vrot.slane %v2878_v18, %v6010_v20 }
  0xfe   :  { %v6572_v22 = vrot.slane %v2892_v35, %v6010_v20  ;;  %v6575_v52 = vrot.slane %v2906_v33, %v6010_v20  ;;  %v6578_v39 = vrot.slane %v2920_v21, %v6010_v20  ;;  %v6581_v53 = vrot.slane %v2934_v25, %v6010_v20 }
  0xff   :  { %8104 = vst [vmem:[#allocation57_spill] sm:$0xff] %v6569_v7  ;;  %v6584_v34 = vrot.slane %v2948_v29, %v6010_v20  ;;  %v6587_v60 = vrot.slane %v2962_v30, %v6010_v20  ;;  %v6590_v18 = vrot.slane %v2976_v16, %v6010_v20  ;;  %v2990_v35 = vrot.slane %v5953_v17, %v6010_v20 }
 0x100   :  { %8105 = vst [vmem:[#allocation58_spill] sm:$0xff] %v6572_v22  ;;  %8106 = vst [vmem:[#allocation59_spill] sm:$0xff] %v6575_v52  ;;  %v3004_v33 = vrot.slane %v5958_v19, %v6010_v20  ;;  %v3018_v21 = vrot.slane %v5963_v63, %v6010_v20  ;;  %v3032_v25 = vrot.slane %v5968_v13, %v6010_v20  ;;  %v8234_v52 = vld [vmem:[#allocation89_spill] sm:$0xff] }
 0x101   :  { %8107 = vst [vmem:[#allocation60_spill] sm:$0xff] %v6578_v39  ;;  %8108 = vst [vmem:[#allocation61_spill] sm:$0xff] %v6581_v53  ;;  %v3046_v29 = vrot.slane %v5973_v58, %v6010_v20  ;;  %v3060_v30 = vrot.slane %v5978_v8, %v6010_v20  ;;  %v3074_v16 = vrot.slane %v5983_v62, %v6010_v20 }
 0x102   :  { %8109 = vst [vmem:[#allocation62_spill] sm:$0xff] %v6584_v34  ;;  %8110 = vst [vmem:[#allocation63_spill] sm:$0xff] %v6587_v60  ;;  %v3088_v17 = vrot.slane %v5988_v37, %v6010_v20  ;;  %v6609_v19 = vrot.slane %v2990_v35, %v6010_v20  ;;  %v6612_v63 = vrot.slane %v3004_v33, %v6010_v20 }
 0x103   :  { %8111 = vst [vmem:[#allocation64_spill] sm:$0xff] %v6590_v18  ;;  %v6615_v13 = vrot.slane %v3018_v21, %v6010_v20  ;;  %v6618_v58 = vrot.slane %v3032_v25, %v6010_v20  ;;  %v6621_v8 = vrot.slane %v3046_v29, %v6010_v20  ;;  %v6624_v62 = vrot.slane %v3060_v30, %v6010_v20 }
 0x104   :  { %8112 = vst [vmem:[#allocation93_spill] sm:$0xff] %v6609_v19  ;;  %8113 = vst [vmem:[#allocation94_spill] sm:$0xff] %v6612_v63  ;;  %v6627_v37 = vrot.slane %v3074_v16, %v6010_v20  ;;  %v6630_v35 = vrot.slane %v3088_v17, %v6010_v20  ;;  %v3102_v33 = vrot.slane %v5993_v1, %v6010_v20  ;;  %v8214_v19 = vld [vmem:[#allocation70_spill] sm:$0xff]  ;;  %v8216_v63 = vld [vmem:[#allocation71_spill] sm:$0xff] }
 0x105   :  { %8114 = vst [vmem:[#allocation95_spill] sm:$0xff] %v6615_v13  ;;  %8115 = vst [vmem:[#allocation96_spill] sm:$0xff] %v6618_v58  ;;  %v3116_v21 = vrot.slane %v5998_v15, %v6010_v20  ;;  %v3130_v25 = vrot.slane %v6003_v14, %v6010_v20  ;;  %v3144_v29 = vrot.slane %v6008_v28, %v6010_v20  ;;  %v8215_v46 = vunpack.c.l.b16 %v8214_v19 }
 0x106   :  { %8116 = vst [vmem:[#allocation97_spill] sm:$0xff] %v6621_v8  ;;  %8117 = vst [vmem:[#allocation98_spill] sm:$0xff] %v6624_v62  ;;  %v3158_v30 = vrot.slane %v6015_v11, %v6010_v20  ;;  %v3172_v16 = vrot.slane %v6020_v26, %v6010_v20  ;;  %v3186_v17 = vrot.slane %v6025_v48, %v6010_v20  ;;  %v8217_v58 = vunpack.c.l.b16 %v8216_v63 }
 0x107   :  { %8118 = vst [vmem:[#allocation99_spill] sm:$0xff] %v6627_v37  ;;  %8119 = vst [vmem:[#allocation100_spill] sm:$0xff] %v6630_v35  ;;  %v3200_v1 = vrot.slane %v6030_v6, %v6010_v20  ;;  %v6649_v15 = vrot.slane %v3102_v33, %v6010_v20  ;;  %v6652_v14 = vrot.slane %v3116_v21, %v6010_v20  ;;  %v8208_v35 = vld [vmem:[#allocation67_spill] sm:$0xff]  ;;  %v3348_v13 = vrot.slane %v8215_v46, 3 }
 0x108   :  { %v6655_v28 = vrot.slane %v3130_v25, %v6010_v20  ;;  %v6658_v11 = vrot.slane %v3144_v29, %v6010_v20  ;;  %v6661_v26 = vrot.slane %v3158_v30, %v6010_v20  ;;  %v6664_v48 = vrot.slane %v3172_v16, %v6010_v20  ;;  %v8206_v25 = vld [vmem:[#allocation66_spill] sm:$0xff]  ;;  %v8228_v46 = vld [vmem:[#allocation83_spill] sm:$0xff] }
 0x109   :  { %8120 = vst [vmem:[#allocation101_spill] sm:$0xff] %v6649_v15  ;;  %8121 = vst [vmem:[#allocation102_spill] sm:$0xff] %v6652_v14  ;;  %v6667_v6 = vrot.slane %v3186_v17, %v6010_v20  ;;  %v6670_v33 = vrot.slane %v3200_v1, %v6010_v20  ;;  %v8174_v20 = vld [vmem:[#allocation27_spill] sm:$0xff]  ;;  %v8197_v17 = vld [vmem:[#allocation54_spill] sm:$0xff]  ;;  %v8207_v37 = vunpack.c.l.b16 %v8206_v25  ;;  %v8209_v18 = vunpack.c.l.b16 %v8208_v35 }
 0x10a   :  { %8122 = vst [vmem:[#allocation103_spill] sm:$0xff] %v6655_v28  ;;  %8123 = vst [vmem:[#allocation104_spill] sm:$0xff] %v6658_v11  ;;  %v8198_v11 = vld [vmem:[#allocation55_spill] sm:$0xff]  ;;  %v8199_v1 = vld [vmem:[#allocation56_spill] sm:$0xff]  ;;  %v3351_v8 = vrot.slane %v8217_v58, 2  ;;  %v8219_v62 = vunpack.c.l.b16 %v8218_v59  ;;  %v8229_v7 = vunpack.c.l.b16 %v8228_v46 }
 0x10b   :  { %8124 = vst [vmem:[#allocation105_spill] sm:$0xff] %v6661_v26  ;;  %8125 = vst [vmem:[#allocation106_spill] sm:$0xff] %v6664_v48  ;;  %v8192_v48 = vld [vmem:[#allocation46_spill] sm:$0xff]  ;;  %v3336_v28 = vrot.slane %v8207_v37, 7  ;;  %v3339_v29 = vrot.slane %v8209_v18, 6  ;;  %v8210_v15 = vld [vmem:[#allocation68_spill] sm:$0xff] }
 0x10c   :  { %8126 = vst [vmem:[#allocation107_spill] sm:$0xff] %v6667_v6  ;;  %8127 = vst [vmem:[#allocation108_spill] sm:$0xff] %v6670_v33  ;;  %v8184_v6 = vld [vmem:[#allocation37_spill] sm:$0xff]  ;;  %v8185_v33 = vld [vmem:[#allocation39_spill] sm:$0xff]  ;;  %v8211_v30 = vunpack.c.l.b16 %v8210_v15  ;;  %v3354_v23 = vrot.slane %v8219_v62, 1  ;;  %v3363_v63 = vrot.slane %v8229_v7, 4 }
 0x10d   :  { %v8212_v26 = vld [vmem:[#allocation69_spill] sm:$0xff]  ;;  %v8220_v25 = vld [vmem:[#allocation75_spill] sm:$0xff]  ;;  %v8230_v59 = vld [vmem:[#allocation74_spill] sm:$0xff] }
 0x10e   :  { %v3342_v14 = vrot.slane %v8211_v30, 5  ;;  %v8213_v21 = vunpack.c.l.b16 %v8212_v26  ;;  %v8221_v37 = vunpack.c.l.b16 %v8220_v25  ;;  %v8222_v35 = vld [vmem:[#allocation65_spill] sm:$0xff]  ;;  %v8224_v30 = vld [vmem:[#allocation76_spill] sm:$0xff]  ;;  %v8231_v62 = vunpack.c.l.b16 %v8230_v59 }
 0x10f   :  { %v8223_v18 = vunpack.c.l.b16 %v8222_v35  ;;  %v8225_v34 = vunpack.c.l.b16 %v8224_v30  ;;  %v8238_v7 = vld [vmem:[#allocation4_spill] sm:$0xff]  ;;  %v8240_v59 = vld [vmem:[#allocation5_spill] sm:$0xff] }
 0x110   :  { %v3345_v16 = vrot.slane %v8213_v21, 4  ;;  %v3357_v60 = vrot.slane %v8221_v37, 7  ;;  %v8226_v21 = vld [vmem:[#allocation80_spill] sm:$0xff]  ;;  %v8239_v22 = vunpack.c.l.b16 %v8238_v7 }
 0x111   :  { %v3338_v15 = vsel %vm3337_vm0, %v3336_v28, %v8223_v18  ;;  %v3359_v26 = vrot.slane %v8225_v34, 6  ;;  %v8227_v53 = vunpack.c.l.b16 %v8226_v21  ;;  %v8232_v37 = vld [vmem:[#allocation84_spill] sm:$0xff]  ;;  %v8235_v28 = vunpack.c.l.b16 %v8234_v52 }
 0x112   :  { %v3341_v58 = vsel %vm3340_vm1, %v3339_v29, %v3338_v15  ;;  %v3358_v25 = vsel %vm3337_vm0, %v3357_v60, %v8231_v62  ;;  %v8233_v39 = vunpack.c.l.b16 %v8232_v37  ;;  %v3371_v29 = vrot.slane %v8239_v22, 7  ;;  %v8242_v37 = vld [vmem:[#allocation73_spill] sm:$0xff] }
 0x113   :  { %v3361_v19 = vrot.slane %v8227_v53, 5  ;;  %v3367_v18 = vrot.slane %v8235_v28, 2  ;;  %v3344_v34 = vsel %vm3343_vm2, %v3342_v14, %v3341_v58  ;;  %v3360_v30 = vsel %vm3340_vm1, %v3359_v26, %v3358_v25  ;;  %v8236_v53 = vld [vmem:[#allocation2_spill] sm:$0xff]  ;;  %v8244_v58 = vld [vmem:[#allocation3_spill] sm:$0xff] }
 0x114   :  { %v3365_v35 = vrot.slane %v8233_v39, 3  ;;  %v8237_v21 = vunpack.c.l.b16 %v8236_v53  ;;  %v3347_v15 = vsel %vm3346_vm3, %v3345_v16, %v3344_v34  ;;  %v8241_v62 = vunpack.c.l.b16 %v8240_v59 }
 0x115   :  { %v3362_v60 = vsel %vm3343_vm2, %v3361_v19, %v3360_v30  ;;  %v8243_v52 = vunpack.c.l.b16 %v8242_v37  ;;  %v3350_v14 = vsel %vm3349_vm4, %v3348_v13, %v3347_v15  ;;  %v8245_v25 = vunpack.c.l.b16 %v8244_v58  ;;  %v8248_v30 = vld [vmem:[#allocation78_spill] sm:$0xff] }
 0x116   :  { %v3369_v46 = vrot.slane %v8237_v21, 1  ;;  %v3373_v39 = vrot.slane %v8241_v62, 6  ;;  %v3364_v26 = vsel %vm3346_vm3, %v3363_v63, %v3362_v60  ;;  %v8246_v21 = vld [vmem:[#allocation77_spill] sm:$0xff]  ;;  %v3353_v16 = vsel %vm3352_vm5, %v3351_v8, %v3350_v14 }
 0x117   :  { %v3375_v28 = vrot.slane %v8243_v52, 5  ;;  %v3372_v53 = vsel %vm3337_vm0, %v3371_v29, %v8245_v25  ;;  %v8247_v22 = vunpack.c.l.b16 %v8246_v21  ;;  %v3366_v19 = vsel %vm3349_vm4, %v3365_v35, %v3364_v26  ;;  %v8250_v29 = vld [vmem:[#allocation79_spill] sm:$0xff]  ;;  %v8252_v35 = vld [vmem:[#allocation81_spill] sm:$0xff] }
 0x118   :  { %v3374_v34 = vsel %vm3340_vm1, %v3373_v39, %v3372_v53  ;;  %v8249_v59 = vunpack.c.l.b16 %v8248_v30  ;;  %v6858_v13 = vsel %vm3355_vm6, %v3354_v23, %v3353_v16  ;;  %v3368_v63 = vsel %vm3352_vm5, %v3367_v18, %v3366_v19  ;;  %v8254_v26 = vld [vmem:[#allocation85_spill] sm:$0xff]  ;;  %v8256_v53 = vld [vmem:[#allocation86_spill] sm:$0xff]  ;;  %v8260_v19 = vld [vmem:[#allocation88_spill] sm:$0xff] }
 0x119   :  { %v3377_v7 = vrot.slane %v8247_v22, 4  ;;  %v3376_v15 = vsel %vm3343_vm2, %v3375_v28, %v3374_v34  ;;  %v8251_v60 = vunpack.c.l.b16 %v8250_v29  ;;  %v6865_v52 = vsel %vm3355_vm6, %v3369_v46, %v3368_v63  ;;  %v8258_v28 = vld [vmem:[#allocation87_spill] sm:$0xff] }
 0x11a   :  { %v3379_v62 = vrot.slane %v8249_v59, 3  ;;  %v8253_v39 = vunpack.c.l.b16 %v8252_v35  ;;  %v8255_v58 = vunpack.c.l.b16 %v8254_v26  ;;  %v8257_v18 = vunpack.c.l.b16 %v8256_v53  ;;  %v8266_v35 = vld [vmem:[#allocation91_spill] sm:$0xff] }
 0x11b   :  { %v3381_v37 = vrot.slane %v8251_v60, 2  ;;  %v3378_v8 = vsel %vm3346_vm3, %v3377_v7, %v3376_v15  ;;  %v8259_v22 = vunpack.c.l.b16 %v8258_v28  ;;  %v8261_v34 = vunpack.c.l.b16 %v8260_v19  ;;  %v8262_v7 = vld [vmem:[#allocation82_spill] sm:$0xff]  ;;  %v8271_v28 = vld [vmem:[#allocation7_spill] sm:$0xff] }
 0x11c   :  { %v3383_v14 = vrot.slane %v8253_v39, 1  ;;  %v3385_v25 = vrot.slane %v8255_v58, 7  ;;  %v3380_v23 = vsel %vm3349_vm4, %v3379_v62, %v3378_v8  ;;  %v3387_v21 = vrot.slane %v8257_v18, 6  ;;  %v8264_v15 = vld [vmem:[#allocation90_spill] sm:$0xff]  ;;  %v8269_v58 = vld [vmem:[#allocation92_spill] sm:$0xff] }
 0x11d   :  { %v3389_v16 = vrot.slane %v8259_v22, 5  ;;  %v3391_v46 = vrot.slane %v8261_v34, 4  ;;  %v3382_v30 = vsel %vm3352_vm5, %v3381_v37, %v3380_v23  ;;  %v8263_v59 = vunpack.c.l.b16 %v8262_v7  ;;  %v8275_v7 = vld [vmem:[#allocation9_spill] sm:$0xff] }
 0x11e   :  { %v8265_v29 = vunpack.c.l.b16 %v8264_v15  ;;  %v8267_v62 = vunpack.c.l.b16 %v8266_v35  ;;  %v6888_v39 = vsel %vm3355_vm6, %v3383_v14, %v3382_v30  ;;  %v8270_v53 = vunpack.c.l.b16 %v8269_v58  ;;  %v8281_v58 = vld [vmem:[#allocation11_spill] sm:$0xff] }
 0x11f   :  { %v3386_v63 = vsel %vm3337_vm0, %v3385_v25, %v8263_v59  ;;  %8268 = vst [vmem:[#allocation27_spill] sm:$0xff] %v6888_v39  ;;  %v8272_v37 = vunpack.c.l.b16 %v8271_v28  ;;  %v8273_v25 = vld [vmem:[#allocation8_spill] sm:$0xff]  ;;  %v8276_v59 = vunpack.c.l.b16 %v8275_v7  ;;  %v8285_v7 = vld [vmem:[#allocation13_spill] sm:$0xff] }
 0x120   :  { %v3393_v60 = vrot.slane %v8265_v29, 3  ;;  %v3395_v8 = vrot.slane %v8267_v62, 2  ;;  %v3388_v26 = vsel %vm3340_vm1, %v3387_v21, %v3386_v63  ;;  %v3397_v18 = vrot.slane %v8270_v53, 1  ;;  %v8277_v29 = vld [vmem:[#allocation10_spill] sm:$0xff] }
 0x121   :  { %v3399_v23 = vrot.slane %v8272_v37, 7  ;;  %v3390_v22 = vsel %vm3343_vm2, %v3389_v16, %v3388_v26  ;;  %v8274_v19 = vunpack.c.l.b16 %v8273_v25  ;;  %v3403_v15 = vrot.slane %v8276_v59, 5  ;;  %v8279_v21 = vld [vmem:[#allocation6_spill] sm:$0xff]  ;;  %v8283_v37 = vld [vmem:[#allocation12_spill] sm:$0xff] }
 0x122   :  { %v8278_v35 = vunpack.c.l.b16 %v8277_v29  ;;  %v3392_v30 = vsel %vm3346_vm3, %v3391_v46, %v3390_v22  ;;  %v8280_v63 = vunpack.c.l.b16 %v8279_v21  ;;  %v8282_v53 = vunpack.c.l.b16 %v8281_v58  ;;  %v8289_v21 = vld [vmem:[#allocation16_spill] sm:$0xff] }
 0x123   :  { %v3401_v34 = vrot.slane %v8274_v19, 6  ;;  %v8284_v16 = vunpack.c.l.b16 %v8283_v37  ;;  %v3394_v25 = vsel %vm3349_vm4, %v3393_v60, %v3392_v30  ;;  %v8286_v59 = vunpack.c.l.b16 %v8285_v7  ;;  %v8293_v30 = vld [vmem:[#allocation14_spill] sm:$0xff] }
 0x124   :  { %v3405_v14 = vrot.slane %v8278_v35, 4  ;;  %v3400_v62 = vsel %vm3337_vm0, %v3399_v23, %v8280_v63  ;;  %v3407_v28 = vrot.slane %v8282_v53, 3  ;;  %v8287_v35 = vld [vmem:[#allocation15_spill] sm:$0xff]  ;;  %v3396_v22 = vsel %vm3352_vm5, %v3395_v8, %v3394_v25  ;;  %v8291_v53 = vld [vmem:[#allocation17_spill] sm:$0xff] }
 0x125   :  { %v3409_v26 = vrot.slane %v8284_v16, 2  ;;  %v3402_v19 = vsel %vm3340_vm1, %v3401_v34, %v3400_v62  ;;  %v3411_v29 = vrot.slane %v8286_v59, 1  ;;  %v8288_v39 = vunpack.c.l.b16 %v8287_v35 }
 0x126   :  { %v3404_v23 = vsel %vm3343_vm2, %v3403_v15, %v3402_v19  ;;  %v8290_v63 = vunpack.c.l.b16 %v8289_v21  ;;  %v8292_v37 = vunpack.c.l.b16 %v8291_v53  ;;  %v6923_v60 = vsel %vm3355_vm6, %v3397_v18, %v3396_v22  ;;  %v8297_v19 = vld [vmem:[#allocation19_spill] sm:$0xff] }
 0x127   :  { %v3413_v46 = vrot.slane %v8288_v39, 7  ;;  %v3406_v34 = vsel %vm3346_vm3, %v3405_v14, %v3404_v23  ;;  %v8294_v62 = vunpack.c.l.b16 %v8293_v30  ;;  %v8295_v39 = vld [vmem:[#allocation18_spill] sm:$0xff]  ;;  %v8298_v35 = vunpack.c.l.b16 %v8297_v19  ;;  %v8301_v23 = vld [vmem:[#allocation21_spill] sm:$0xff]  ;;  %v8303_v30 = vld [vmem:[#allocation23_spill] sm:$0xff] }
 0x128   :  { %v3415_v58 = vrot.slane %v8290_v63, 6  ;;  %v3417_v16 = vrot.slane %v8292_v37, 5  ;;  %v8296_v59 = vunpack.c.l.b16 %v8295_v39  ;;  %v3408_v15 = vsel %vm3349_vm4, %v3407_v28, %v3406_v34  ;;  %v8299_v63 = vld [vmem:[#allocation20_spill] sm:$0xff]  ;;  %v8307_v19 = vld [vmem:[#allocation25_spill] sm:$0xff] }
 0x129   :  { %v3414_v7 = vsel %vm3337_vm0, %v3413_v46, %v8294_v62  ;;  %v3421_v21 = vrot.slane %v8298_v35, 3  ;;  %v8300_v53 = vunpack.c.l.b16 %v8299_v63  ;;  %v3410_v22 = vsel %vm3352_vm5, %v3409_v26, %v3408_v15  ;;  %v8305_v34 = vld [vmem:[#allocation24_spill] sm:$0xff] }
 0x12a   :  { %v3419_v8 = vrot.slane %v8296_v59, 4  ;;  %v3416_v25 = vsel %vm3340_vm1, %v3415_v58, %v3414_v7  ;;  %v8302_v37 = vunpack.c.l.b16 %v8301_v23  ;;  %v8304_v62 = vunpack.c.l.b16 %v8303_v30  ;;  %v8314_v30 = vld [vmem:[#allocation28_spill] sm:$0xff] }
 0x12b   :  { %v3423_v18 = vrot.slane %v8300_v53, 2  ;;  %v3418_v14 = vsel %vm3343_vm2, %v3417_v16, %v3416_v25  ;;  %v6944_v28 = vsel %vm3355_vm6, %v3411_v29, %v3410_v22  ;;  %v8306_v7 = vunpack.c.l.b16 %v8305_v34  ;;  %v8309_v16 = vld [vmem:[#allocation22_spill] sm:$0xff] }
 0x12c   :  { %v3425_v46 = vrot.slane %v8302_v37, 1  ;;  %v3427_v39 = vrot.slane %v8304_v62, 7  ;;  %v3420_v58 = vsel %vm3346_vm3, %v3419_v8, %v3418_v14  ;;  %v8308_v35 = vunpack.c.l.b16 %v8307_v19  ;;  %v8311_v53 = vld [vmem:[#allocation26_spill] sm:$0xff] }
 0x12d   :  { %v3429_v59 = vrot.slane %v8306_v7, 6  ;;  %v3422_v26 = vsel %vm3349_vm4, %v3421_v21, %v3420_v58  ;;  %v8310_v15 = vunpack.c.l.b16 %v8309_v16  ;;  %v8312_v23 = vunpack.c.l.b16 %v8311_v53  ;;  %v8316_v7 = vld [vmem:[#allocation29_spill] sm:$0xff] }
 0x12e   :  { %v3431_v63 = vrot.slane %v8308_v35, 5  ;;  %v8313_v29 = vunpack.c.l.b16 %v8174_v20  ;;  %v3424_v8 = vsel %vm3352_vm5, %v3423_v18, %v3422_v26  ;;  %v8315_v62 = vunpack.c.l.b16 %v8314_v30  ;;  %v8318_v35 = vld [vmem:[#allocation31_spill] sm:$0xff]  ;;  %v8320_v20 = vld [vmem:[#allocation32_spill] sm:$0xff] }
 0x12f   :  { %v3428_v25 = vsel %vm3337_vm0, %v3427_v39, %v8310_v15  ;;  %v3433_v37 = vrot.slane %v8312_v23, 4  ;;  %v8317_v19 = vunpack.c.l.b16 %v8316_v7  ;;  %v6966_v58 = vsel %vm3355_vm6, %v3425_v46, %v3424_v8 }
 0x130   :  { %v3435_v22 = vrot.slane %v8313_v29, 3  ;;  %v3430_v14 = vsel %vm3340_vm1, %v3429_v59, %v3428_v25  ;;  %v3437_v34 = vrot.slane %v8315_v62, 2  ;;  %v8319_v16 = vunpack.c.l.b16 %v8318_v35  ;;  %v8322_v59 = vld [vmem:[#allocation33_spill] sm:$0xff]  ;;  %v8324_v29 = vld [vmem:[#allocation34_spill] sm:$0xff]  ;;  %v8329_v35 = vld [vmem:[#allocation36_spill] sm:$0xff] }
 0x131   :  { %v3439_v21 = vrot.slane %v8317_v19, 1  ;;  %v3432_v39 = vsel %vm3343_vm2, %v3431_v63, %v3430_v14  ;;  %v8321_v53 = vunpack.c.l.b16 %v8320_v20  ;;  %v8323_v26 = vunpack.c.l.b16 %v8322_v59  ;;  %v8327_v63 = vld [vmem:[#allocation30_spill] sm:$0xff] }
 0x132   :  { %v3441_v15 = vrot.slane %v8319_v16, 7  ;;  %v3434_v18 = vsel %vm3346_vm3, %v3433_v37, %v3432_v39  ;;  %v8325_v30 = vunpack.c.l.b16 %v8324_v29  ;;  %v8326_v7 = vunpack.c.l.b16 %v8182_v55 }
 0x133   :  { %v3443_v23 = vrot.slane %v8321_v53, 6  ;;  %v3445_v25 = vrot.slane %v8323_v26, 5  ;;  %v3436_v8 = vsel %vm3349_vm4, %v3435_v22, %v3434_v18  ;;  %v8328_v14 = vunpack.c.l.b16 %v8327_v63 }
 0x134   :  { %v3447_v62 = vrot.slane %v8325_v30, 4  ;;  %v3449_v46 = vrot.slane %v8326_v7, 3  ;;  %v8330_v16 = vunpack.c.l.b16 %v8329_v35  ;;  %v8331_v37 = vunpack.c.l.b16 %v8184_v6  ;;  %v8335_v6 = vld [vmem:[#allocation42_spill] sm:$0xff]  ;;  %v8340_v35 = vld [vmem:[#allocation44_spill] sm:$0xff] }
 0x135   :  { %v3442_v19 = vsel %vm3337_vm0, %v3441_v15, %v8328_v14  ;;  %v3438_v53 = vsel %vm3352_vm5, %v3437_v34, %v3436_v8  ;;  %v8332_v26 = vunpack.c.l.b16 %v8185_v33  ;;  %v8333_v29 = vunpack.c.l.b16 %v8186_v47 }
 0x136   :  { %v3451_v20 = vrot.slane %v8330_v16, 2  ;;  %v3453_v39 = vrot.slane %v8331_v37, 1  ;;  %v3444_v59 = vsel %vm3340_vm1, %v3443_v23, %v3442_v19  ;;  %v6995_v18 = vsel %vm3355_vm6, %v3439_v21, %v3438_v53  ;;  %v8337_v23 = vld [vmem:[#allocation38_spill] sm:$0xff] }
 0x137   :  { %v3455_v55 = vrot.slane %v8332_v26, 7  ;;  %v3457_v22 = vrot.slane %v8333_v29, 6  ;;  %v3446_v15 = vsel %vm3343_vm2, %v3445_v25, %v3444_v59  ;;  %v8334_v30 = vunpack.c.l.b16 %v8187_v51 }
 0x138   :  { %v8336_v63 = vunpack.c.l.b16 %v8335_v6  ;;  %v3448_v34 = vsel %vm3346_vm3, %v3447_v62, %v3446_v15  ;;  %v8338_v8 = vunpack.c.l.b16 %v8337_v23  ;;  %v8339_v47 = vunpack.c.l.b16 %v8189_v44 }
 0x139   :  { %v3459_v7 = vrot.slane %v8334_v30, 5  ;;  %v8341_v21 = vunpack.c.l.b16 %v8340_v35  ;;  %v3450_v25 = vsel %vm3349_vm4, %v3449_v46, %v3448_v34  ;;  %v8342_v37 = vunpack.c.l.b16 %v8191_v54  ;;  %v8349_v34 = vld [vmem:[#allocation48_spill] sm:$0xff] }
 0x13a   :  { %v3461_v14 = vrot.slane %v8336_v63, 4  ;;  %v3456_v33 = vsel %vm3337_vm0, %v3455_v55, %v8338_v8  ;;  %v3463_v19 = vrot.slane %v8339_v47, 3  ;;  %v8343_v59 = vunpack.c.l.b16 %v8192_v48 }
 0x13b   :  { %v3465_v16 = vrot.slane %v8341_v21, 2  ;;  %v3458_v51 = vsel %vm3340_vm1, %v3457_v22, %v3456_v33  ;;  %v3467_v53 = vrot.slane %v8342_v37, 1  ;;  %v3452_v26 = vsel %vm3352_vm5, %v3451_v20, %v3450_v25 }
 0x13c   :  { %v3469_v62 = vrot.slane %v8343_v59, 7  ;;  %v3460_v55 = vsel %vm3343_vm2, %v3459_v7, %v3458_v51  ;;  %v8344_v44 = vunpack.c.l.b16 %v6415_v56  ;;  %v8345_v15 = vunpack.c.l.b16 %v6418_v57 }
 0x13d   :  { %v7023_v46 = vsel %vm3355_vm6, %v3453_v39, %v3452_v26  ;;  %v3462_v22 = vsel %vm3346_vm3, %v3461_v14, %v3460_v55  ;;  %v8346_v54 = vunpack.c.l.b16 %v6409_v31  ;;  %v8347_v6 = vunpack.c.l.b16 %v6421_v12 }
 0x13e   :  { %v3471_v29 = vrot.slane %v8344_v44, 6  ;;  %v3473_v30 = vrot.slane %v8345_v15, 5  ;;  %v3464_v7 = vsel %vm3349_vm4, %v3463_v19, %v3462_v22  ;;  %v8348_v63 = vunpack.c.l.b16 %v8193_v40  ;;  %v8359_v44 = vld [vmem:[#allocation51_spill] sm:$0xff] }
 0x13f   :  { %v3470_v48 = vsel %vm3337_vm0, %v3469_v62, %v8346_v54  ;;  %v3475_v20 = vrot.slane %v8347_v6, 4  ;;  %v8350_v23 = vunpack.c.l.b16 %v8349_v34  ;;  %v3466_v8 = vsel %vm3352_vm5, %v3465_v16, %v3464_v7 }
 0x140   :  { %v3472_v56 = vsel %vm3340_vm1, %v3471_v29, %v3470_v48  ;;  %v3477_v57 = vrot.slane %v8348_v63, 3  ;;  %v8351_v31 = vunpack.c.l.b16 %v8194_v27  ;;  %v8352_v12 = vunpack.c.l.b16 %v8195_v45 }
 0x141   :  { %v3479_v39 = vrot.slane %v8350_v23, 2  ;;  %v3474_v14 = vsel %vm3343_vm2, %v3473_v30, %v3472_v56  ;;  %v7044_v19 = vsel %vm3355_vm6, %v3467_v53, %v3466_v8  ;;  %v8353_v40 = vunpack.c.l.b16 %v6455_v3  ;;  %v8367_v23 = vld [vmem:[#allocation52_spill] sm:$0xff] }
 0x142   :  { %v3481_v33 = vrot.slane %v8351_v31, 1  ;;  %v3483_v47 = vrot.slane %v8352_v12, 7  ;;  %v3476_v35 = vsel %vm3346_vm3, %v3475_v20, %v3474_v14  ;;  %v8354_v25 = vunpack.c.l.b16 %v6458_v2 }
 0x143   :  { %v3485_v21 = vrot.slane %v8353_v40, 6  ;;  %v3478_v16 = vsel %vm3349_vm4, %v3477_v57, %v3476_v35  ;;  %v8355_v37 = vunpack.c.l.b16 %v6449_v61  ;;  %v8356_v45 = vunpack.c.l.b16 %v6461_v5  ;;  %v8361_v5 = vld [vmem:[#allocation53_spill] sm:$0xff] }
 0x144   :  { %v3487_v51 = vrot.slane %v8354_v25, 5  ;;  %v8357_v53 = vunpack.c.l.b16 %v6464_v9  ;;  %v3480_v26 = vsel %vm3352_vm5, %v3479_v39, %v3478_v16  ;;  %v8358_v55 = vunpack.c.l.b16 %v6467_v10 }
 0x145   :  { %v3484_v27 = vsel %vm3337_vm0, %v3483_v47, %v8355_v37  ;;  %v3489_v59 = vrot.slane %v8356_v45, 4  ;;  %v8360_v29 = vunpack.c.l.b16 %v8359_v44  ;;  %v7066_v61 = vsel %vm3355_vm6, %v3481_v33, %v3480_v26  ;;  %v8379_v26 = vld [vmem:[#allocation58_spill] sm:$0xff]  ;;  %v8381_v44 = vld [vmem:[#allocation59_spill] sm:$0xff] }
 0x146   :  { %v3491_v62 = vrot.slane %v8357_v53, 3  ;;  %v3486_v3 = vsel %vm3340_vm1, %v3485_v21, %v3484_v27  ;;  %v3493_v2 = vrot.slane %v8358_v55, 2  ;;  %v8362_v22 = vunpack.c.l.b16 %v8361_v5 }
 0x147   :  { %v3495_v15 = vrot.slane %v8360_v29, 1  ;;  %v3488_v30 = vsel %vm3343_vm2, %v3487_v51, %v3486_v3  ;;  %v8363_v9 = vunpack.c.l.b16 %v6495_v38  ;;  %v8364_v20 = vunpack.c.l.b16 %v6498_v0 }
 0x148   :  { %v3497_v54 = vrot.slane %v8362_v22, 7  ;;  %v3490_v6 = vsel %vm3346_vm3, %v3489_v59, %v3488_v30  ;;  %v8365_v7 = vunpack.c.l.b16 %v6501_v4  ;;  %v8366_v63 = vunpack.c.l.b16 %v6504_v36 }
 0x149   :  { %v3499_v48 = vrot.slane %v8363_v9, 6  ;;  %v3501_v10 = vrot.slane %v8364_v20, 5  ;;  %v3492_v34 = vsel %vm3349_vm4, %v3491_v62, %v3490_v6  ;;  %v8368_v39 = vunpack.c.l.b16 %v8367_v23 }
 0x14a   :  { %v3503_v56 = vrot.slane %v8365_v7, 4  ;;  %v3505_v57 = vrot.slane %v8366_v63, 3  ;;  %v8369_v38 = vunpack.c.l.b16 %v6507_v24  ;;  %v8370_v31 = vunpack.c.l.b16 %v6510_v42 }
 0x14b   :  { %v3498_v8 = vsel %vm3337_vm0, %v3497_v54, %v8368_v39  ;;  %v3494_v0 = vsel %vm3352_vm5, %v3493_v2, %v3492_v34  ;;  %v8371_v12 = vunpack.c.l.b16 %v8197_v17  ;;  %v8372_v47 = vunpack.c.l.b16 %v8198_v11  ;;  %v8391_v34 = vld [vmem:[#allocation63_spill] sm:$0xff] }
 0x14c   :  { %v3507_v14 = vrot.slane %v8369_v38, 2  ;;  %v3509_v33 = vrot.slane %v8370_v31, 1  ;;  %v3500_v4 = vsel %vm3340_vm1, %v3499_v48, %v3498_v8  ;;  %v7095_v40 = vsel %vm3355_vm6, %v3495_v15, %v3494_v0  ;;  %v8383_v15 = vld [vmem:[#allocation60_spill] sm:$0xff]  ;;  %v8387_v48 = vld [vmem:[#allocation61_spill] sm:$0xff]  ;;  %v8395_v0 = vld [vmem:[#allocation94_spill] sm:$0xff] }
 0x14d   :  { %v3511_v36 = vrot.slane %v8371_v12, 7  ;;  %v3513_v35 = vrot.slane %v8372_v47, 6  ;;  %v3502_v21 = vsel %vm3343_vm2, %v3501_v10, %v3500_v4  ;;  %v8373_v24 = vunpack.c.l.b16 %v8199_v1 }
 0x14e   :  { %v8374_v42 = vunpack.c.l.b16 %v6541_v49  ;;  %v3504_v16 = vsel %vm3346_vm3, %v3503_v56, %v3502_v21  ;;  %v8375_v37 = vunpack.c.l.b16 %v6529_v41  ;;  %v8376_v11 = vunpack.c.l.b16 %v6544_v50  ;;  %v8389_v56 = vld [vmem:[#allocation62_spill] sm:$0xff] }
 0x14f   :  { %v3515_v25 = vrot.slane %v8373_v24, 5  ;;  %v8377_v45 = vunpack.c.l.b16 %v6547_v43  ;;  %v3506_v53 = vsel %vm3349_vm4, %v3505_v57, %v3504_v16  ;;  %v8378_v62 = vunpack.c.l.b16 %v6550_v32  ;;  %v8385_v32 = vld [vmem:[#allocation57_spill] sm:$0xff] }
 0x150   :  { %v3517_v51 = vrot.slane %v8374_v42, 4  ;;  %v3512_v17 = vsel %vm3337_vm0, %v3511_v36, %v8375_v37  ;;  %v3519_v27 = vrot.slane %v8376_v11, 3  ;;  %v8380_v3 = vunpack.c.l.b16 %v8379_v26  ;;  %v8401_v37 = vld [vmem:[#allocation93_spill] sm:$0xff] }
 0x151   :  { %v3521_v59 = vrot.slane %v8377_v45, 2  ;;  %v3514_v1 = vsel %vm3340_vm1, %v3513_v35, %v3512_v17  ;;  %v3523_v49 = vrot.slane %v8378_v62, 1  ;;  %v3508_v41 = vsel %vm3352_vm5, %v3507_v14, %v3506_v53  ;;  %v8393_v14 = vld [vmem:[#allocation64_spill] sm:$0xff]  ;;  %v8397_v35 = vld [vmem:[#allocation95_spill] sm:$0xff]  ;;  %v8405_v53 = vld [vmem:[#allocation98_spill] sm:$0xff] }
 0x152   :  { %v3525_v55 = vrot.slane %v8380_v3, 7  ;;  %v3516_v2 = vsel %vm3343_vm2, %v3515_v25, %v3514_v1  ;;  %v8382_v50 = vunpack.c.l.b16 %v8381_v44  ;;  %v8384_v43 = vunpack.c.l.b16 %v8383_v15  ;;  %v8399_v25 = vld [vmem:[#allocation96_spill] sm:$0xff]  ;;  %v8407_v3 = vld [vmem:[#allocation99_spill] sm:$0xff] }
 0x153   :  { %v7123_v5 = vsel %vm3355_vm6, %v3509_v33, %v3508_v41  ;;  %v3518_v22 = vsel %vm3346_vm3, %v3517_v51, %v3516_v2  ;;  %v8386_v54 = vunpack.c.l.b16 %v8385_v32  ;;  %v8388_v6 = vunpack.c.l.b16 %v8387_v48  ;;  %v8409_v2 = vld [vmem:[#allocation100_spill] sm:$0xff]  ;;  %v8413_v32 = vld [vmem:[#allocation103_spill] sm:$0xff] }
 0x154   :  { %v3527_v29 = vrot.slane %v8382_v50, 6  ;;  %v3529_v30 = vrot.slane %v8384_v43, 5  ;;  %v3520_v10 = vsel %vm3349_vm4, %v3519_v27, %v3518_v22  ;;  %v8390_v63 = vunpack.c.l.b16 %v8389_v56  ;;  %v8403_v27 = vld [vmem:[#allocation97_spill] sm:$0xff]  ;;  %v8411_v43 = vld [vmem:[#allocation102_spill] sm:$0xff] }
 0x155   :  { %v3526_v9 = vsel %vm3337_vm0, %v3525_v55, %v8386_v54  ;;  %v3531_v20 = vrot.slane %v8388_v6, 4  ;;  %v8392_v23 = vunpack.c.l.b16 %v8391_v34  ;;  %v3522_v8 = vsel %vm3352_vm5, %v3521_v59, %v3520_v10  ;;  %v8415_v6 = vld [vmem:[#allocation104_spill] sm:$0xff] }
 0x156   :  { %v3528_v7 = vsel %vm3340_vm1, %v3527_v29, %v3526_v9  ;;  %v3533_v57 = vrot.slane %v8390_v63, 3  ;;  %v8394_v31 = vunpack.c.l.b16 %v8393_v14  ;;  %v8396_v4 = vunpack.c.l.b16 %v8395_v0 }
 0x157   :  { %v3535_v39 = vrot.slane %v8392_v23, 2  ;;  %v3530_v38 = vsel %vm3343_vm2, %v3529_v30, %v3528_v7  ;;  %v7144_v36 = vsel %vm3355_vm6, %v3523_v49, %v3522_v8  ;;  %v8398_v21 = vunpack.c.l.b16 %v8397_v35  ;;  %v8417_v7 = vld [vmem:[#allocation105_spill] sm:$0xff] }
 0x158   :  { %v3537_v33 = vrot.slane %v8394_v31, 1  ;;  %v3539_v12 = vrot.slane %v8396_v4, 7  ;;  %v3532_v47 = vsel %vm3346_vm3, %v3531_v20, %v3530_v38  ;;  %v8400_v42 = vunpack.c.l.b16 %v8399_v25  ;;  %v8421_v8 = vld [vmem:[#allocation101_spill] sm:$0xff]  ;;  %v8423_v31 = vld [vmem:[#allocation107_spill] sm:$0xff]  ;;  %v8425_v4 = vld [vmem:[#allocation108_spill] sm:$0xff] }
 0x159   :  { %v3541_v24 = vrot.slane %v8398_v21, 6  ;;  %v3534_v16 = vsel %vm3349_vm4, %v3533_v57, %v3532_v47  ;;  %v8402_v17 = vunpack.c.l.b16 %v8401_v37  ;;  %v8404_v45 = vunpack.c.l.b16 %v8403_v27  ;;  %v8419_v57 = vld [vmem:[#allocation106_spill] sm:$0xff] }
 0x15a   :  { %v3543_v51 = vrot.slane %v8400_v42, 5  ;;  %v8406_v1 = vunpack.c.l.b16 %v8405_v53  ;;  %v3536_v49 = vsel %vm3352_vm5, %v3535_v39, %v3534_v16  ;;  %v8408_v55 = vunpack.c.l.b16 %v8407_v3  ;;  %v8427_v16 = vld [vmem:[#allocation27_spill] sm:$0xff] }
 0x15b   :  { %v3540_v11 = vsel %vm3337_vm0, %v3539_v12, %v8402_v17  ;;  %v3545_v59 = vrot.slane %v8404_v45, 4  ;;  %v8410_v44 = vunpack.c.l.b16 %v8409_v2  ;;  %v3538_v29 = vsel %vm3355_vm6, %v3537_v33, %v3536_v49 }
 0x15c   :  { %v3547_v62 = vrot.slane %v8406_v1, 3  ;;  %v3542_v26 = vsel %vm3340_vm1, %v3541_v24, %v3540_v11  ;;  %v3549_v41 = vrot.slane %v8408_v55, 2  ;;  %v8412_v30 = vunpack.c.l.b16 %v8411_v43 }
 0x15d   :  { %v3551_v50 = vrot.slane %v8410_v44, 1  ;;  %v3544_v15 = vsel %vm3343_vm2, %v3543_v51, %v3542_v26  ;;  %v8414_v54 = vunpack.c.l.b16 %v8413_v32  ;;  %v8416_v20 = vunpack.c.l.b16 %v8415_v6 }
 0x15e   :  { %v3553_v22 = vrot.slane %v8412_v30, 7  ;;  %v3546_v48 = vsel %vm3346_vm3, %v3545_v59, %v3544_v15  ;;  %v8418_v56 = vunpack.c.l.b16 %v8417_v7  ;;  %v8420_v34 = vunpack.c.l.b16 %v8419_v57 }
 0x15f   :  { %v3555_v9 = vrot.slane %v8414_v54, 6  ;;  %v3557_v10 = vrot.slane %v8416_v20, 5  ;;  %v3548_v39 = vsel %vm3349_vm4, %v3547_v62, %v3546_v48  ;;  %v8422_v38 = vunpack.c.l.b16 %v8421_v8 }
 0x160   :  { %v3559_v63 = vrot.slane %v8418_v56, 4  ;;  %v3561_v23 = vrot.slane %v8420_v34, 3  ;;  %v8424_v33 = vunpack.c.l.b16 %v8423_v31  ;;  %v8426_v12 = vunpack.c.l.b16 %v8425_v4 }
 0x161   :  { %v3554_v14 = vsel %vm3337_vm0, %v3553_v22, %v8422_v38  ;;  %v3550_v35 = vsel %vm3352_vm5, %v3549_v41, %v3548_v39  ;;  %v3567_v24 = vpack.c.b16 %v6858_v13, %v6858_v13  ;;  %v3568_v25 = vpack.c.b16 %v6865_v52, %v6865_v52 }
 0x162   :  { %v3563_v0 = vrot.slane %v8424_v33, 2  ;;  %v3565_v47 = vrot.slane %v8426_v12, 1  ;;  %v3556_v21 = vsel %vm3340_vm1, %v3555_v9, %v3554_v14  ;;  %v3552_v42 = vsel %vm3355_vm6, %v3551_v50, %v3550_v35 }
 0x163   :  { %v3558_v51 = vsel %vm3343_vm2, %v3557_v10, %v3556_v21  ;;  %v3569_v37 = vpack.c.b16 %v8427_v16, %v8427_v16  ;;  %v3570_v17 = vpack.c.b16 %v6923_v60, %v6923_v60  ;;  %v3571_v27 = vpack.c.b16 %v6944_v28, %v6944_v28  ;;  %3600 = vst.msk [vmem:[%s7285_s1] sm:$0xf] %vm3599_vm7, %v3567_v24 }
 0x164   :  { %v3560_v11 = vsel %vm3346_vm3, %v3559_v63, %v3558_v51  ;;  %v3572_v13 = vpack.c.b16 %v6966_v58, %v6966_v58  ;;  %v3573_v52 = vpack.c.b16 %v6995_v18, %v6995_v18  ;;  %v3574_v59 = vpack.c.b16 %v7023_v46, %v7023_v46  ;;  %3601 = vst.msk [vmem:[%s7285_s1 + $0x4] sm:$0xf] %vm3599_vm7, %v3568_v25 }
 0x165   :  { %v3562_v45 = vsel %vm3349_vm4, %v3561_v23, %v3560_v11  ;;  %v3575_v53 = vpack.c.b16 %v7044_v19, %v7044_v19  ;;  %v3576_v60 = vpack.c.b16 %v7066_v61, %v7066_v61  ;;  %v3577_v28 = vpack.c.b16 %v7095_v40, %v7095_v40  ;;  %3602 = vst.msk [vmem:[%s7285_s1 + $0x8] sm:$0xf] %vm3599_vm7, %v3569_v37 }
 0x166   :  { %v3564_v1 = vsel %vm3352_vm5, %v3563_v0, %v3562_v45  ;;  %v3578_v58 = vpack.c.b16 %v7123_v5, %v7123_v5  ;;  %v3579_v18 = vpack.c.b16 %v7144_v36, %v7144_v36  ;;  %v3580_v46 = vpack.c.b16 %v3538_v29, %v3538_v29  ;;  %3603 = vst.msk [vmem:[%s7285_s1 + $0xc] sm:$0xf] %vm3599_vm7, %v3570_v17 }
 0x167   :  { %v3566_v62 = vsel %vm3355_vm6, %v3565_v47, %v3564_v1  ;;  %v3581_v49 = vpack.c.b16 %v3552_v42, %v3552_v42  ;;  %3604 = vst.msk [vmem:[%s7285_s1 + $0x10] sm:$0xf] %vm3599_vm7, %v3571_v27  ;;  %3605 = vst.msk [vmem:[%s7285_s1 + $0x14] sm:$0xf] %vm3599_vm7, %v3572_v13 }
 0x168   :  { %v3582_v19 = vpack.c.b16 %v3566_v62, %v3566_v62  ;;  %3606 = vst.msk [vmem:[%s7285_s1 + $0x18] sm:$0xf] %vm3599_vm7, %v3573_v52  ;;  %3607 = vst.msk [vmem:[%s7285_s1 + $0x1c] sm:$0xf] %vm3599_vm7, %v3574_v59 }
 0x169   :  { %3608 = vst.msk [vmem:[%s7285_s1 + $0x20] sm:$0xf] %vm3599_vm7, %v3575_v53  ;;  %3609 = vst.msk [vmem:[%s7285_s1 + $0x24] sm:$0xf] %vm3599_vm7, %v3576_v60 }
 0x16a   :  { %3610 = vst.msk [vmem:[%s7285_s1 + $0x28] sm:$0xf] %vm3599_vm7, %v3577_v28  ;;  %3611 = vst.msk [vmem:[%s7285_s1 + $0x2c] sm:$0xf] %vm3599_vm7, %v3578_v58 }
 0x16b   :  { %3612 = vst.msk [vmem:[%s7285_s1 + $0x30] sm:$0xf] %vm3599_vm7, %v3579_v18  ;;  %3613 = vst.msk [vmem:[%s7285_s1 + $0x34] sm:$0xf] %vm3599_vm7, %v3580_v46 }
 0x16c   :  { %3614 = vst.msk [vmem:[%s7285_s1 + $0x38] sm:$0xf] %vm3599_vm7, %v3581_v49  ;;  %3615 = vst.msk [vmem:[%s7285_s1 + $0x3c] sm:$0xf] %vm3599_vm7, %v3582_v19 }

</bundles_post_ra>
